<compile_context>
chip_gen: v5e
topology: v5e:2x2
jax: 0.10.0
libtpu: 0.0.40
codegen_flags: <defaults>
</compile_context>

<pallas_src>
import functools
import math

import jax
import jax.numpy as jnp
from jax import lax
from jax.experimental import pallas as pl
from jax.experimental.pallas import tpu as pltpu

C_IN, C_OUT, KH, KW = 3, 6, 3, 3


def _round_up(n, m):
    return ((n + m - 1) // m) * m


def _row_shift(plane, kh, h_store):
    """Result row r == plane[r + kh] for every row that matters (r < H_out)."""
    h_in = plane.shape[0]
    if kh == 0:
        return plane if h_store == h_in else plane[:h_store, :]
    if kh + h_store <= h_in:
        return plane[kh:kh + h_store, :]            # plain sublane slice, in bounds
    # Sublane roll (XLU): wrapped rows land at r >= h_in - kh >= H_out, which the
    # wrapper slices away, so their junk values never matter.
    rolled = pltpu.roll(plane, shift=h_in - kh, axis=0)
    return rolled if h_store == h_in else rolled[:h_store, :]


def _col_shift(slab, kw):
    """Result column j == slab[:, j + kw] for every column that matters."""
    if kw == 0:
        return slab
    # Lane roll (XLU): wrapped lanes land only in an image's columns w >= W - kw
    # >= W_out, which the wrapper discards.
    return pltpu.roll(slab, shift=slab.shape[1] - kw, axis=1)


def conv3x3_kernel(x_ref, w_ref, b_ref, o_ref, *, chunk):
    # x_ref: (1, C_IN, H, L)         VMEM  (batch lane-packed, L % 128 == 0)
    # w_ref: (C_OUT*C_IN*KH*KW,)     SMEM  (flattened f32 weights, scalar reads)
    # b_ref: (C_OUT,)                SMEM
    # o_ref: (1, C_OUT, H_store, L)  VMEM  (H_store padded to a multiple of 8)
    h_store = o_ref.shape[2]
    lanes = o_ref.shape[3]
    n_chunks = lanes // chunk

    def do_chunk(c, carry):
        col = c * chunk
        if not isinstance(col, int):             # hint alignment of dynamic offsets
            col = pl.multiple_of(col, 128)

        # One f32 accumulator per output channel, initialized from the SMEM bias.
        accs = [jnp.full((h_store, chunk), b_ref[co], dtype=jnp.float32)
                for co in range(C_OUT)]

        for ci in range(C_IN):
            plane = x_ref[0, ci, :, pl.ds(col, chunk)].astype(jnp.float32)  # (H, chunk)
            for kh in range(KH):
                ph = _row_shift(plane, kh, h_store)          # reused by 3 kw x 6 co
                for kw in range(KW):
                    slab = _col_shift(ph, kw)                # reused by 6 co
                    for co in range(C_OUT):
                        w = w_ref[((co * C_IN + ci) * KH + kh) * KW + kw]  # SMEM scalar
                        accs[co] = accs[co] + w * slab

        # Per-channel stores: (h_store, chunk) is sublane- and lane-dense -> unmasked vst.
        for co in range(C_OUT):
            o_ref[0, co, :, pl.ds(col, chunk)] = accs[co].astype(o_ref.dtype)
        return carry

    if n_chunks == 1:
        do_chunk(0, 0)
    else:
        lax.fori_loop(0, n_chunks, do_chunk, 0)


def _pick_images_per_step(b_pad, w, h, h_store, ipc,
                          target_lanes=1024, max_lanes=2048,
                          vmem_step_budget=4 << 20):
    """Largest lane-dense Bt dividing b_pad that fits the per-step VMEM budget
    (double-buffering included) and, when possible, leaves >= 2 grid steps so
    both v7x TensorCores get work."""
    per_image_bytes = 4 * w * (C_IN * h + C_OUT * h_store)
    cands = [k * ipc for k in range(1, b_pad // ipc + 1) if b_pad % (k * ipc) == 0]

    def feasible(bt):
        return bt * per_image_bytes <= vmem_step_budget and bt * w <= max_lanes

    for need_two_steps in (True, False):
        ok = [bt for bt in cands
              if feasible(bt) and (not need_two_steps or b_pad // bt >= 2)]
        if ok:
            preferred = [bt for bt in ok if bt * w <= target_lanes]
            return max(preferred) if preferred else min(ok)
    return cands[0]


def renshen_forward(x, weight, bias):
    """Conv2d(3->6, 3x3, stride 1, VALID), NCHW, with the batch packed along lanes."""
    B, cin, H, W = x.shape
    assert cin == C_IN and H >= KH and W >= KW
    H_out, W_out = H - KH + 1, W - KW + 1

    # Rows stored per image: pad H_out to a multiple of 8 for unmasked stores
    # whenever the input has enough rows to source the junk rows via a roll.
    H_store = _round_up(H_out, 8)
    if H_store > H:
        H_store = H_out

    # Smallest image count whose packed width is a multiple of 128 lanes.
    ipc = 128 // math.gcd(W, 128)
    B_pad = _round_up(B, ipc)
    Bt = _pick_images_per_step(B_pad, W, H, H_store, ipc)
    G = B_pad // Bt
    L = Bt * W

    # In-kernel column-chunk width: a multiple of both W (so the roll trick
    # stays inside one image block) and 128 (lane-dense), targeting ~256 lanes.
    chunk_imgs = ipc
    while chunk_imgs * W < 256 and Bt % (2 * chunk_imgs) == 0:
        chunk_imgs *= 2
    CHUNK = chunk_imgs * W

    # --- layout plumbing (plain XLA, outside the kernel) -------------------
    if B_pad != B:
        x = jnp.pad(x, ((0, B_pad - B), (0, 0), (0, 0), (0, 0)))
    xp = (x.reshape(G, Bt, C_IN, H, W)
           .transpose(0, 2, 3, 1, 4)
           .reshape(G, C_IN, H, L))
    w_flat = weight.reshape(-1).astype(jnp.float32)
    b_flat = bias.reshape(-1).astype(jnp.float32)

    out_packed = pl.pallas_call(
        functools.partial(conv3x3_kernel, chunk=CHUNK),
        out_shape=jax.ShapeDtypeStruct((G, C_OUT, H_store, L), x.dtype),
        grid_spec=pltpu.PrefetchScalarGridSpec(
            num_scalar_prefetch=0,
            grid=(G,),
            in_specs=[
                pl.BlockSpec((1, C_IN, H, L), lambda g: (g, 0, 0, 0)),
                pl.BlockSpec(memory_space=pltpu.SMEM),   # flattened weights
                pl.BlockSpec(memory_space=pltpu.SMEM),   # bias
            ],
            out_specs=pl.BlockSpec((1, C_OUT, H_store, L), lambda g: (g, 0, 0, 0)),
        ),
        compiler_params=pltpu.CompilerParams(
            dimension_semantics=("parallel",)),
    )(xp, w_flat, b_flat)

    # Unpack: drop junk rows/columns, restore (B, C_OUT, H_out, W_out).
    # (If the downstream consumer can take the packed layout, this HBM pass
    #  can be skipped entirely.)
    out = out_packed[:, :, :H_out, :]
    out = out.reshape(G, C_OUT, H_out, Bt, W)[..., :W_out]
    out = out.transpose(0, 3, 1, 2, 4).reshape(B_pad, C_OUT, H_out, W_out)
    return out[:B]


if __name__ == "__main__":
    key = jax.random.PRNGKey(0)
    k_x, k_w, k_b = jax.random.split(key, 3)

    # 64 images of 3x16x16: packs to 2 "parallel" grid steps (both v7x TCs busy)
    # of 512 lanes each, processed as two 256-lane chunks inside the kernel.
    B, H, W = 64, 16, 16
    x = jax.random.normal(k_x, (B, C_IN, H, W), dtype=jnp.float32)

    # Deterministic PyTorch-style init (uniform with bound 1/sqrt(fan_in)).
    fan_in = C_IN * KH * KW
    bound = 1.0 / (fan_in ** 0.5)
    weight = jax.random.uniform(k_w, (C_OUT, C_IN, KH, KW),
                                minval=-bound, maxval=bound, dtype=jnp.float32)
    bias = jax.random.uniform(k_b, (C_OUT,),
                              minval=-bound, maxval=bound, dtype=jnp.float32)

    out = jax.jit(renshen_forward)(x, weight, bias)
    out = jax.block_until_ready(out)

    # Pure-JAX reference (lax conv, NCHW / OIHW).
    ref = jax.lax.conv_general_dilated(
        x, weight, window_strides=(1, 1), padding="VALID",
        dimension_numbers=("NCHW", "OIHW", "NCHW"),
    ) + bias.reshape(1, C_OUT, 1, 1)

    assert out.shape == (B, C_OUT, H - 2, W - 2)
    assert jnp.allclose(out, ref, atol=1e-5, rtol=1e-5)

    print("KERNEL_OK")
</pallas_src>

<mosaic_0001>
module attributes {stable_mosaic.version = 11 : i64} {
  func.func @conv3x3_kernel(%arg0: i32, %arg1: memref<1x3x16x512xf32, #tpu.memory_space<vmem>>, %arg2: memref<162xf32, #tpu.memory_space<smem>>, %arg3: memref<6xf32, #tpu.memory_space<smem>>, %arg4: memref<1x6x16x512xf32, #tpu.memory_space<vmem>>) attributes {dimension_semantics = [#tpu.dimension_semantics<parallel>], iteration_bounds = array<i64: 2>, scalar_prefetch = 0 : i64, scratch_operands = 0 : i64, tpu.core_type = #tpu.core_type<tc>, window_params = [{transform_indices = @transform_0, window_bounds = array<i64: 1, 3, 16, 512>}, {transform_indices = @transform_1, window_bounds = array<i64: 162>}, {transform_indices = @transform_2, window_bounds = array<i64: 6>}, {transform_indices = @transform_3, window_bounds = array<i64: 1, 6, 16, 512>}]} {
    %c0_i32 = arith.constant 0 : i32
    %c2_i32 = arith.constant 2 : i32
    %0 = arith.addi %c0_i32, %c2_i32 : i32
    %c1_i32 = arith.constant 1 : i32
    scf.for %arg5 = %c0_i32 to %0 step %c1_i32  : i32 {
      %c256_i32 = arith.constant 256 : i32
      %1 = arith.muli %arg5, %c256_i32 : i32
      %2 = tpu.assume_multiple %1, 128 : i32
      %c0 = arith.constant 0 : index
      %3 = memref.load %arg3[%c0] : memref<6xf32, #tpu.memory_space<smem>>
      %4 = vector.broadcast %3 : f32 to vector<16x256xf32>
      %c1 = arith.constant 1 : index
      %5 = memref.load %arg3[%c1] : memref<6xf32, #tpu.memory_space<smem>>
      %6 = vector.broadcast %5 : f32 to vector<16x256xf32>
      %c2 = arith.constant 2 : index
      %7 = memref.load %arg3[%c2] : memref<6xf32, #tpu.memory_space<smem>>
      %8 = vector.broadcast %7 : f32 to vector<16x256xf32>
      %c3 = arith.constant 3 : index
      %9 = memref.load %arg3[%c3] : memref<6xf32, #tpu.memory_space<smem>>
      %10 = vector.broadcast %9 : f32 to vector<16x256xf32>
      %c4 = arith.constant 4 : index
      %11 = memref.load %arg3[%c4] : memref<6xf32, #tpu.memory_space<smem>>
      %12 = vector.broadcast %11 : f32 to vector<16x256xf32>
      %c5 = arith.constant 5 : index
      %13 = memref.load %arg3[%c5] : memref<6xf32, #tpu.memory_space<smem>>
      %14 = vector.broadcast %13 : f32 to vector<16x256xf32>
      %c0_1 = arith.constant 0 : index
      %c0_2 = arith.constant 0 : index
      %c0_3 = arith.constant 0 : index
      %15 = arith.index_cast %2 : i32 to index
      %16 = vector.load %arg1[%c0_1, %c0_2, %c0_3, %15] : memref<1x3x16x512xf32, #tpu.memory_space<vmem>>, vector<1x1x16x256xf32>
      %17 = vector.shape_cast %16 : vector<1x1x16x256xf32> to vector<16x256xf32>
      %c0_4 = arith.constant 0 : index
      %18 = memref.load %arg2[%c0_4] : memref<162xf32, #tpu.memory_space<smem>>
      %19 = vector.broadcast %18 : f32 to vector<16x256xf32>
      %20 = arith.mulf %19, %17 : vector<16x256xf32>
      %21 = arith.addf %4, %20 : vector<16x256xf32>
      %c27 = arith.constant 27 : index
      %22 = memref.load %arg2[%c27] : memref<162xf32, #tpu.memory_space<smem>>
      %23 = vector.broadcast %22 : f32 to vector<16x256xf32>
      %24 = arith.mulf %23, %17 : vector<16x256xf32>
      %25 = arith.addf %6, %24 : vector<16x256xf32>
      %c54 = arith.constant 54 : index
      %26 = memref.load %arg2[%c54] : memref<162xf32, #tpu.memory_space<smem>>
      %27 = vector.broadcast %26 : f32 to vector<16x256xf32>
      %28 = arith.mulf %27, %17 : vector<16x256xf32>
      %29 = arith.addf %8, %28 : vector<16x256xf32>
      %c81 = arith.constant 81 : index
      %30 = memref.load %arg2[%c81] : memref<162xf32, #tpu.memory_space<smem>>
      %31 = vector.broadcast %30 : f32 to vector<16x256xf32>
      %32 = arith.mulf %31, %17 : vector<16x256xf32>
      %33 = arith.addf %10, %32 : vector<16x256xf32>
      %c108 = arith.constant 108 : index
      %34 = memref.load %arg2[%c108] : memref<162xf32, #tpu.memory_space<smem>>
      %35 = vector.broadcast %34 : f32 to vector<16x256xf32>
      %36 = arith.mulf %35, %17 : vector<16x256xf32>
      %37 = arith.addf %12, %36 : vector<16x256xf32>
      %c135 = arith.constant 135 : index
      %38 = memref.load %arg2[%c135] : memref<162xf32, #tpu.memory_space<smem>>
      %39 = vector.broadcast %38 : f32 to vector<16x256xf32>
      %40 = arith.mulf %39, %17 : vector<16x256xf32>
      %41 = arith.addf %14, %40 : vector<16x256xf32>
      %c255_i32 = arith.constant 255 : i32
      %42 = tpu.dynamic_rotate %17 by %c255_i32 dim 1 : vector<16x256xf32>, i32 -> vector<16x256xf32>
      %c1_5 = arith.constant 1 : index
      %43 = memref.load %arg2[%c1_5] : memref<162xf32, #tpu.memory_space<smem>>
      %44 = vector.broadcast %43 : f32 to vector<16x256xf32>
      %45 = arith.mulf %44, %42 : vector<16x256xf32>
      %46 = arith.addf %21, %45 : vector<16x256xf32>
      %c28 = arith.constant 28 : index
      %47 = memref.load %arg2[%c28] : memref<162xf32, #tpu.memory_space<smem>>
      %48 = vector.broadcast %47 : f32 to vector<16x256xf32>
      %49 = arith.mulf %48, %42 : vector<16x256xf32>
      %50 = arith.addf %25, %49 : vector<16x256xf32>
      %c55 = arith.constant 55 : index
      %51 = memref.load %arg2[%c55] : memref<162xf32, #tpu.memory_space<smem>>
      %52 = vector.broadcast %51 : f32 to vector<16x256xf32>
      %53 = arith.mulf %52, %42 : vector<16x256xf32>
      %54 = arith.addf %29, %53 : vector<16x256xf32>
      %c82 = arith.constant 82 : index
      %55 = memref.load %arg2[%c82] : memref<162xf32, #tpu.memory_space<smem>>
      %56 = vector.broadcast %55 : f32 to vector<16x256xf32>
      %57 = arith.mulf %56, %42 : vector<16x256xf32>
      %58 = arith.addf %33, %57 : vector<16x256xf32>
      %c109 = arith.constant 109 : index
      %59 = memref.load %arg2[%c109] : memref<162xf32, #tpu.memory_space<smem>>
      %60 = vector.broadcast %59 : f32 to vector<16x256xf32>
      %61 = arith.mulf %60, %42 : vector<16x256xf32>
      %62 = arith.addf %37, %61 : vector<16x256xf32>
      %c136 = arith.constant 136 : index
      %63 = memref.load %arg2[%c136] : memref<162xf32, #tpu.memory_space<smem>>
      %64 = vector.broadcast %63 : f32 to vector<16x256xf32>
      %65 = arith.mulf %64, %42 : vector<16x256xf32>
      %66 = arith.addf %41, %65 : vector<16x256xf32>
      %c254_i32 = arith.constant 254 : i32
      %67 = tpu.dynamic_rotate %17 by %c254_i32 dim 1 : vector<16x256xf32>, i32 -> vector<16x256xf32>
      %c2_6 = arith.constant 2 : index
      %68 = memref.load %arg2[%c2_6] : memref<162xf32, #tpu.memory_space<smem>>
      %69 = vector.broadcast %68 : f32 to vector<16x256xf32>
      %70 = arith.mulf %69, %67 : vector<16x256xf32>
      %71 = arith.addf %46, %70 : vector<16x256xf32>
      %c29 = arith.constant 29 : index
      %72 = memref.load %arg2[%c29] : memref<162xf32, #tpu.memory_space<smem>>
      %73 = vector.broadcast %72 : f32 to vector<16x256xf32>
      %74 = arith.mulf %73, %67 : vector<16x256xf32>
      %75 = arith.addf %50, %74 : vector<16x256xf32>
      %c56 = arith.constant 56 : index
      %76 = memref.load %arg2[%c56] : memref<162xf32, #tpu.memory_space<smem>>
      %77 = vector.broadcast %76 : f32 to vector<16x256xf32>
      %78 = arith.mulf %77, %67 : vector<16x256xf32>
      %79 = arith.addf %54, %78 : vector<16x256xf32>
      %c83 = arith.constant 83 : index
      %80 = memref.load %arg2[%c83] : memref<162xf32, #tpu.memory_space<smem>>
      %81 = vector.broadcast %80 : f32 to vector<16x256xf32>
      %82 = arith.mulf %81, %67 : vector<16x256xf32>
      %83 = arith.addf %58, %82 : vector<16x256xf32>
      %c110 = arith.constant 110 : index
      %84 = memref.load %arg2[%c110] : memref<162xf32, #tpu.memory_space<smem>>
      %85 = vector.broadcast %84 : f32 to vector<16x256xf32>
      %86 = arith.mulf %85, %67 : vector<16x256xf32>
      %87 = arith.addf %62, %86 : vector<16x256xf32>
      %c137 = arith.constant 137 : index
      %88 = memref.load %arg2[%c137] : memref<162xf32, #tpu.memory_space<smem>>
      %89 = vector.broadcast %88 : f32 to vector<16x256xf32>
      %90 = arith.mulf %89, %67 : vector<16x256xf32>
      %91 = arith.addf %66, %90 : vector<16x256xf32>
      %c15_i32 = arith.constant 15 : i32
      %92 = tpu.dynamic_rotate %17 by %c15_i32 dim 0 : vector<16x256xf32>, i32 -> vector<16x256xf32>
      %c3_7 = arith.constant 3 : index
      %93 = memref.load %arg2[%c3_7] : memref<162xf32, #tpu.memory_space<smem>>
      %94 = vector.broadcast %93 : f32 to vector<16x256xf32>
      %95 = arith.mulf %94, %92 : vector<16x256xf32>
      %96 = arith.addf %71, %95 : vector<16x256xf32>
      %c30 = arith.constant 30 : index
      %97 = memref.load %arg2[%c30] : memref<162xf32, #tpu.memory_space<smem>>
      %98 = vector.broadcast %97 : f32 to vector<16x256xf32>
      %99 = arith.mulf %98, %92 : vector<16x256xf32>
      %100 = arith.addf %75, %99 : vector<16x256xf32>
      %c57 = arith.constant 57 : index
      %101 = memref.load %arg2[%c57] : memref<162xf32, #tpu.memory_space<smem>>
      %102 = vector.broadcast %101 : f32 to vector<16x256xf32>
      %103 = arith.mulf %102, %92 : vector<16x256xf32>
      %104 = arith.addf %79, %103 : vector<16x256xf32>
      %c84 = arith.constant 84 : index
      %105 = memref.load %arg2[%c84] : memref<162xf32, #tpu.memory_space<smem>>
      %106 = vector.broadcast %105 : f32 to vector<16x256xf32>
      %107 = arith.mulf %106, %92 : vector<16x256xf32>
      %108 = arith.addf %83, %107 : vector<16x256xf32>
      %c111 = arith.constant 111 : index
      %109 = memref.load %arg2[%c111] : memref<162xf32, #tpu.memory_space<smem>>
      %110 = vector.broadcast %109 : f32 to vector<16x256xf32>
      %111 = arith.mulf %110, %92 : vector<16x256xf32>
      %112 = arith.addf %87, %111 : vector<16x256xf32>
      %c138 = arith.constant 138 : index
      %113 = memref.load %arg2[%c138] : memref<162xf32, #tpu.memory_space<smem>>
      %114 = vector.broadcast %113 : f32 to vector<16x256xf32>
      %115 = arith.mulf %114, %92 : vector<16x256xf32>
      %116 = arith.addf %91, %115 : vector<16x256xf32>
      %c255_i32_8 = arith.constant 255 : i32
      %117 = tpu.dynamic_rotate %92 by %c255_i32_8 dim 1 : vector<16x256xf32>, i32 -> vector<16x256xf32>
      %c4_9 = arith.constant 4 : index
      %118 = memref.load %arg2[%c4_9] : memref<162xf32, #tpu.memory_space<smem>>
      %119 = vector.broadcast %118 : f32 to vector<16x256xf32>
      %120 = arith.mulf %119, %117 : vector<16x256xf32>
      %121 = arith.addf %96, %120 : vector<16x256xf32>
      %c31 = arith.constant 31 : index
      %122 = memref.load %arg2[%c31] : memref<162xf32, #tpu.memory_space<smem>>
      %123 = vector.broadcast %122 : f32 to vector<16x256xf32>
      %124 = arith.mulf %123, %117 : vector<16x256xf32>
      %125 = arith.addf %100, %124 : vector<16x256xf32>
      %c58 = arith.constant 58 : index
      %126 = memref.load %arg2[%c58] : memref<162xf32, #tpu.memory_space<smem>>
      %127 = vector.broadcast %126 : f32 to vector<16x256xf32>
      %128 = arith.mulf %127, %117 : vector<16x256xf32>
      %129 = arith.addf %104, %128 : vector<16x256xf32>
      %c85 = arith.constant 85 : index
      %130 = memref.load %arg2[%c85] : memref<162xf32, #tpu.memory_space<smem>>
      %131 = vector.broadcast %130 : f32 to vector<16x256xf32>
      %132 = arith.mulf %131, %117 : vector<16x256xf32>
      %133 = arith.addf %108, %132 : vector<16x256xf32>
      %c112 = arith.constant 112 : index
      %134 = memref.load %arg2[%c112] : memref<162xf32, #tpu.memory_space<smem>>
      %135 = vector.broadcast %134 : f32 to vector<16x256xf32>
      %136 = arith.mulf %135, %117 : vector<16x256xf32>
      %137 = arith.addf %112, %136 : vector<16x256xf32>
      %c139 = arith.constant 139 : index
      %138 = memref.load %arg2[%c139] : memref<162xf32, #tpu.memory_space<smem>>
      %139 = vector.broadcast %138 : f32 to vector<16x256xf32>
      %140 = arith.mulf %139, %117 : vector<16x256xf32>
      %141 = arith.addf %116, %140 : vector<16x256xf32>
      %c254_i32_10 = arith.constant 254 : i32
      %142 = tpu.dynamic_rotate %92 by %c254_i32_10 dim 1 : vector<16x256xf32>, i32 -> vector<16x256xf32>
      %c5_11 = arith.constant 5 : index
      %143 = memref.load %arg2[%c5_11] : memref<162xf32, #tpu.memory_space<smem>>
      %144 = vector.broadcast %143 : f32 to vector<16x256xf32>
      %145 = arith.mulf %144, %142 : vector<16x256xf32>
      %146 = arith.addf %121, %145 : vector<16x256xf32>
      %c32 = arith.constant 32 : index
      %147 = memref.load %arg2[%c32] : memref<162xf32, #tpu.memory_space<smem>>
      %148 = vector.broadcast %147 : f32 to vector<16x256xf32>
      %149 = arith.mulf %148, %142 : vector<16x256xf32>
      %150 = arith.addf %125, %149 : vector<16x256xf32>
      %c59 = arith.constant 59 : index
      %151 = memref.load %arg2[%c59] : memref<162xf32, #tpu.memory_space<smem>>
      %152 = vector.broadcast %151 : f32 to vector<16x256xf32>
      %153 = arith.mulf %152, %142 : vector<16x256xf32>
      %154 = arith.addf %129, %153 : vector<16x256xf32>
      %c86 = arith.constant 86 : index
      %155 = memref.load %arg2[%c86] : memref<162xf32, #tpu.memory_space<smem>>
      %156 = vector.broadcast %155 : f32 to vector<16x256xf32>
      %157 = arith.mulf %156, %142 : vector<16x256xf32>
      %158 = arith.addf %133, %157 : vector<16x256xf32>
      %c113 = arith.constant 113 : index
      %159 = memref.load %arg2[%c113] : memref<162xf32, #tpu.memory_space<smem>>
      %160 = vector.broadcast %159 : f32 to vector<16x256xf32>
      %161 = arith.mulf %160, %142 : vector<16x256xf32>
      %162 = arith.addf %137, %161 : vector<16x256xf32>
      %c140 = arith.constant 140 : index
      %163 = memref.load %arg2[%c140] : memref<162xf32, #tpu.memory_space<smem>>
      %164 = vector.broadcast %163 : f32 to vector<16x256xf32>
      %165 = arith.mulf %164, %142 : vector<16x256xf32>
      %166 = arith.addf %141, %165 : vector<16x256xf32>
      %c14_i32 = arith.constant 14 : i32
      %167 = tpu.dynamic_rotate %17 by %c14_i32 dim 0 : vector<16x256xf32>, i32 -> vector<16x256xf32>
      %c6 = arith.constant 6 : index
      %168 = memref.load %arg2[%c6] : memref<162xf32, #tpu.memory_space<smem>>
      %169 = vector.broadcast %168 : f32 to vector<16x256xf32>
      %170 = arith.mulf %169, %167 : vector<16x256xf32>
      %171 = arith.addf %146, %170 : vector<16x256xf32>
      %c33 = arith.constant 33 : index
      %172 = memref.load %arg2[%c33] : memref<162xf32, #tpu.memory_space<smem>>
      %173 = vector.broadcast %172 : f32 to vector<16x256xf32>
      %174 = arith.mulf %173, %167 : vector<16x256xf32>
      %175 = arith.addf %150, %174 : vector<16x256xf32>
      %c60 = arith.constant 60 : index
      %176 = memref.load %arg2[%c60] : memref<162xf32, #tpu.memory_space<smem>>
      %177 = vector.broadcast %176 : f32 to vector<16x256xf32>
      %178 = arith.mulf %177, %167 : vector<16x256xf32>
      %179 = arith.addf %154, %178 : vector<16x256xf32>
      %c87 = arith.constant 87 : index
      %180 = memref.load %arg2[%c87] : memref<162xf32, #tpu.memory_space<smem>>
      %181 = vector.broadcast %180 : f32 to vector<16x256xf32>
      %182 = arith.mulf %181, %167 : vector<16x256xf32>
      %183 = arith.addf %158, %182 : vector<16x256xf32>
      %c114 = arith.constant 114 : index
      %184 = memref.load %arg2[%c114] : memref<162xf32, #tpu.memory_space<smem>>
      %185 = vector.broadcast %184 : f32 to vector<16x256xf32>
      %186 = arith.mulf %185, %167 : vector<16x256xf32>
      %187 = arith.addf %162, %186 : vector<16x256xf32>
      %c141 = arith.constant 141 : index
      %188 = memref.load %arg2[%c141] : memref<162xf32, #tpu.memory_space<smem>>
      %189 = vector.broadcast %188 : f32 to vector<16x256xf32>
      %190 = arith.mulf %189, %167 : vector<16x256xf32>
      %191 = arith.addf %166, %190 : vector<16x256xf32>
      %c255_i32_12 = arith.constant 255 : i32
      %192 = tpu.dynamic_rotate %167 by %c255_i32_12 dim 1 : vector<16x256xf32>, i32 -> vector<16x256xf32>
      %c7 = arith.constant 7 : index
      %193 = memref.load %arg2[%c7] : memref<162xf32, #tpu.memory_space<smem>>
      %194 = vector.broadcast %193 : f32 to vector<16x256xf32>
      %195 = arith.mulf %194, %192 : vector<16x256xf32>
      %196 = arith.addf %171, %195 : vector<16x256xf32>
      %c34 = arith.constant 34 : index
      %197 = memref.load %arg2[%c34] : memref<162xf32, #tpu.memory_space<smem>>
      %198 = vector.broadcast %197 : f32 to vector<16x256xf32>
      %199 = arith.mulf %198, %192 : vector<16x256xf32>
      %200 = arith.addf %175, %199 : vector<16x256xf32>
      %c61 = arith.constant 61 : index
      %201 = memref.load %arg2[%c61] : memref<162xf32, #tpu.memory_space<smem>>
      %202 = vector.broadcast %201 : f32 to vector<16x256xf32>
      %203 = arith.mulf %202, %192 : vector<16x256xf32>
      %204 = arith.addf %179, %203 : vector<16x256xf32>
      %c88 = arith.constant 88 : index
      %205 = memref.load %arg2[%c88] : memref<162xf32, #tpu.memory_space<smem>>
      %206 = vector.broadcast %205 : f32 to vector<16x256xf32>
      %207 = arith.mulf %206, %192 : vector<16x256xf32>
      %208 = arith.addf %183, %207 : vector<16x256xf32>
      %c115 = arith.constant 115 : index
      %209 = memref.load %arg2[%c115] : memref<162xf32, #tpu.memory_space<smem>>
      %210 = vector.broadcast %209 : f32 to vector<16x256xf32>
      %211 = arith.mulf %210, %192 : vector<16x256xf32>
      %212 = arith.addf %187, %211 : vector<16x256xf32>
      %c142 = arith.constant 142 : index
      %213 = memref.load %arg2[%c142] : memref<162xf32, #tpu.memory_space<smem>>
      %214 = vector.broadcast %213 : f32 to vector<16x256xf32>
      %215 = arith.mulf %214, %192 : vector<16x256xf32>
      %216 = arith.addf %191, %215 : vector<16x256xf32>
      %c254_i32_13 = arith.constant 254 : i32
      %217 = tpu.dynamic_rotate %167 by %c254_i32_13 dim 1 : vector<16x256xf32>, i32 -> vector<16x256xf32>
      %c8 = arith.constant 8 : index
      %218 = memref.load %arg2[%c8] : memref<162xf32, #tpu.memory_space<smem>>
      %219 = vector.broadcast %218 : f32 to vector<16x256xf32>
      %220 = arith.mulf %219, %217 : vector<16x256xf32>
      %221 = arith.addf %196, %220 : vector<16x256xf32>
      %c35 = arith.constant 35 : index
      %222 = memref.load %arg2[%c35] : memref<162xf32, #tpu.memory_space<smem>>
      %223 = vector.broadcast %222 : f32 to vector<16x256xf32>
      %224 = arith.mulf %223, %217 : vector<16x256xf32>
      %225 = arith.addf %200, %224 : vector<16x256xf32>
      %c62 = arith.constant 62 : index
      %226 = memref.load %arg2[%c62] : memref<162xf32, #tpu.memory_space<smem>>
      %227 = vector.broadcast %226 : f32 to vector<16x256xf32>
      %228 = arith.mulf %227, %217 : vector<16x256xf32>
      %229 = arith.addf %204, %228 : vector<16x256xf32>
      %c89 = arith.constant 89 : index
      %230 = memref.load %arg2[%c89] : memref<162xf32, #tpu.memory_space<smem>>
      %231 = vector.broadcast %230 : f32 to vector<16x256xf32>
      %232 = arith.mulf %231, %217 : vector<16x256xf32>
      %233 = arith.addf %208, %232 : vector<16x256xf32>
      %c116 = arith.constant 116 : index
      %234 = memref.load %arg2[%c116] : memref<162xf32, #tpu.memory_space<smem>>
      %235 = vector.broadcast %234 : f32 to vector<16x256xf32>
      %236 = arith.mulf %235, %217 : vector<16x256xf32>
      %237 = arith.addf %212, %236 : vector<16x256xf32>
      %c143 = arith.constant 143 : index
      %238 = memref.load %arg2[%c143] : memref<162xf32, #tpu.memory_space<smem>>
      %239 = vector.broadcast %238 : f32 to vector<16x256xf32>
      %240 = arith.mulf %239, %217 : vector<16x256xf32>
      %241 = arith.addf %216, %240 : vector<16x256xf32>
      %c0_14 = arith.constant 0 : index
      %c1_15 = arith.constant 1 : index
      %c0_16 = arith.constant 0 : index
      %242 = arith.index_cast %2 : i32 to index
      %243 = vector.load %arg1[%c0_14, %c1_15, %c0_16, %242] : memref<1x3x16x512xf32, #tpu.memory_space<vmem>>, vector<1x1x16x256xf32>
      %244 = vector.shape_cast %243 : vector<1x1x16x256xf32> to vector<16x256xf32>
      %c9 = arith.constant 9 : index
      %245 = memref.load %arg2[%c9] : memref<162xf32, #tpu.memory_space<smem>>
      %246 = vector.broadcast %245 : f32 to vector<16x256xf32>
      %247 = arith.mulf %246, %244 : vector<16x256xf32>
      %248 = arith.addf %221, %247 : vector<16x256xf32>
      %c36 = arith.constant 36 : index
      %249 = memref.load %arg2[%c36] : memref<162xf32, #tpu.memory_space<smem>>
      %250 = vector.broadcast %249 : f32 to vector<16x256xf32>
      %251 = arith.mulf %250, %244 : vector<16x256xf32>
      %252 = arith.addf %225, %251 : vector<16x256xf32>
      %c63 = arith.constant 63 : index
      %253 = memref.load %arg2[%c63] : memref<162xf32, #tpu.memory_space<smem>>
      %254 = vector.broadcast %253 : f32 to vector<16x256xf32>
      %255 = arith.mulf %254, %244 : vector<16x256xf32>
      %256 = arith.addf %229, %255 : vector<16x256xf32>
      %c90 = arith.constant 90 : index
      %257 = memref.load %arg2[%c90] : memref<162xf32, #tpu.memory_space<smem>>
      %258 = vector.broadcast %257 : f32 to vector<16x256xf32>
      %259 = arith.mulf %258, %244 : vector<16x256xf32>
      %260 = arith.addf %233, %259 : vector<16x256xf32>
      %c117 = arith.constant 117 : index
      %261 = memref.load %arg2[%c117] : memref<162xf32, #tpu.memory_space<smem>>
      %262 = vector.broadcast %261 : f32 to vector<16x256xf32>
      %263 = arith.mulf %262, %244 : vector<16x256xf32>
      %264 = arith.addf %237, %263 : vector<16x256xf32>
      %c144 = arith.constant 144 : index
      %265 = memref.load %arg2[%c144] : memref<162xf32, #tpu.memory_space<smem>>
      %266 = vector.broadcast %265 : f32 to vector<16x256xf32>
      %267 = arith.mulf %266, %244 : vector<16x256xf32>
      %268 = arith.addf %241, %267 : vector<16x256xf32>
      %c255_i32_17 = arith.constant 255 : i32
      %269 = tpu.dynamic_rotate %244 by %c255_i32_17 dim 1 : vector<16x256xf32>, i32 -> vector<16x256xf32>
      %c10 = arith.constant 10 : index
      %270 = memref.load %arg2[%c10] : memref<162xf32, #tpu.memory_space<smem>>
      %271 = vector.broadcast %270 : f32 to vector<16x256xf32>
      %272 = arith.mulf %271, %269 : vector<16x256xf32>
      %273 = arith.addf %248, %272 : vector<16x256xf32>
      %c37 = arith.constant 37 : index
      %274 = memref.load %arg2[%c37] : memref<162xf32, #tpu.memory_space<smem>>
      %275 = vector.broadcast %274 : f32 to vector<16x256xf32>
      %276 = arith.mulf %275, %269 : vector<16x256xf32>
      %277 = arith.addf %252, %276 : vector<16x256xf32>
      %c64 = arith.constant 64 : index
      %278 = memref.load %arg2[%c64] : memref<162xf32, #tpu.memory_space<smem>>
      %279 = vector.broadcast %278 : f32 to vector<16x256xf32>
      %280 = arith.mulf %279, %269 : vector<16x256xf32>
      %281 = arith.addf %256, %280 : vector<16x256xf32>
      %c91 = arith.constant 91 : index
      %282 = memref.load %arg2[%c91] : memref<162xf32, #tpu.memory_space<smem>>
      %283 = vector.broadcast %282 : f32 to vector<16x256xf32>
      %284 = arith.mulf %283, %269 : vector<16x256xf32>
      %285 = arith.addf %260, %284 : vector<16x256xf32>
      %c118 = arith.constant 118 : index
      %286 = memref.load %arg2[%c118] : memref<162xf32, #tpu.memory_space<smem>>
      %287 = vector.broadcast %286 : f32 to vector<16x256xf32>
      %288 = arith.mulf %287, %269 : vector<16x256xf32>
      %289 = arith.addf %264, %288 : vector<16x256xf32>
      %c145 = arith.constant 145 : index
      %290 = memref.load %arg2[%c145] : memref<162xf32, #tpu.memory_space<smem>>
      %291 = vector.broadcast %290 : f32 to vector<16x256xf32>
      %292 = arith.mulf %291, %269 : vector<16x256xf32>
      %293 = arith.addf %268, %292 : vector<16x256xf32>
      %c254_i32_18 = arith.constant 254 : i32
      %294 = tpu.dynamic_rotate %244 by %c254_i32_18 dim 1 : vector<16x256xf32>, i32 -> vector<16x256xf32>
      %c11 = arith.constant 11 : index
      %295 = memref.load %arg2[%c11] : memref<162xf32, #tpu.memory_space<smem>>
      %296 = vector.broadcast %295 : f32 to vector<16x256xf32>
      %297 = arith.mulf %296, %294 : vector<16x256xf32>
      %298 = arith.addf %273, %297 : vector<16x256xf32>
      %c38 = arith.constant 38 : index
      %299 = memref.load %arg2[%c38] : memref<162xf32, #tpu.memory_space<smem>>
      %300 = vector.broadcast %299 : f32 to vector<16x256xf32>
      %301 = arith.mulf %300, %294 : vector<16x256xf32>
      %302 = arith.addf %277, %301 : vector<16x256xf32>
      %c65 = arith.constant 65 : index
      %303 = memref.load %arg2[%c65] : memref<162xf32, #tpu.memory_space<smem>>
      %304 = vector.broadcast %303 : f32 to vector<16x256xf32>
      %305 = arith.mulf %304, %294 : vector<16x256xf32>
      %306 = arith.addf %281, %305 : vector<16x256xf32>
      %c92 = arith.constant 92 : index
      %307 = memref.load %arg2[%c92] : memref<162xf32, #tpu.memory_space<smem>>
      %308 = vector.broadcast %307 : f32 to vector<16x256xf32>
      %309 = arith.mulf %308, %294 : vector<16x256xf32>
      %310 = arith.addf %285, %309 : vector<16x256xf32>
      %c119 = arith.constant 119 : index
      %311 = memref.load %arg2[%c119] : memref<162xf32, #tpu.memory_space<smem>>
      %312 = vector.broadcast %311 : f32 to vector<16x256xf32>
      %313 = arith.mulf %312, %294 : vector<16x256xf32>
      %314 = arith.addf %289, %313 : vector<16x256xf32>
      %c146 = arith.constant 146 : index
      %315 = memref.load %arg2[%c146] : memref<162xf32, #tpu.memory_space<smem>>
      %316 = vector.broadcast %315 : f32 to vector<16x256xf32>
      %317 = arith.mulf %316, %294 : vector<16x256xf32>
      %318 = arith.addf %293, %317 : vector<16x256xf32>
      %c15_i32_19 = arith.constant 15 : i32
      %319 = tpu.dynamic_rotate %244 by %c15_i32_19 dim 0 : vector<16x256xf32>, i32 -> vector<16x256xf32>
      %c12 = arith.constant 12 : index
      %320 = memref.load %arg2[%c12] : memref<162xf32, #tpu.memory_space<smem>>
      %321 = vector.broadcast %320 : f32 to vector<16x256xf32>
      %322 = arith.mulf %321, %319 : vector<16x256xf32>
      %323 = arith.addf %298, %322 : vector<16x256xf32>
      %c39 = arith.constant 39 : index
      %324 = memref.load %arg2[%c39] : memref<162xf32, #tpu.memory_space<smem>>
      %325 = vector.broadcast %324 : f32 to vector<16x256xf32>
      %326 = arith.mulf %325, %319 : vector<16x256xf32>
      %327 = arith.addf %302, %326 : vector<16x256xf32>
      %c66 = arith.constant 66 : index
      %328 = memref.load %arg2[%c66] : memref<162xf32, #tpu.memory_space<smem>>
      %329 = vector.broadcast %328 : f32 to vector<16x256xf32>
      %330 = arith.mulf %329, %319 : vector<16x256xf32>
      %331 = arith.addf %306, %330 : vector<16x256xf32>
      %c93 = arith.constant 93 : index
      %332 = memref.load %arg2[%c93] : memref<162xf32, #tpu.memory_space<smem>>
      %333 = vector.broadcast %332 : f32 to vector<16x256xf32>
      %334 = arith.mulf %333, %319 : vector<16x256xf32>
      %335 = arith.addf %310, %334 : vector<16x256xf32>
      %c120 = arith.constant 120 : index
      %336 = memref.load %arg2[%c120] : memref<162xf32, #tpu.memory_space<smem>>
      %337 = vector.broadcast %336 : f32 to vector<16x256xf32>
      %338 = arith.mulf %337, %319 : vector<16x256xf32>
      %339 = arith.addf %314, %338 : vector<16x256xf32>
      %c147 = arith.constant 147 : index
      %340 = memref.load %arg2[%c147] : memref<162xf32, #tpu.memory_space<smem>>
      %341 = vector.broadcast %340 : f32 to vector<16x256xf32>
      %342 = arith.mulf %341, %319 : vector<16x256xf32>
      %343 = arith.addf %318, %342 : vector<16x256xf32>
      %c255_i32_20 = arith.constant 255 : i32
      %344 = tpu.dynamic_rotate %319 by %c255_i32_20 dim 1 : vector<16x256xf32>, i32 -> vector<16x256xf32>
      %c13 = arith.constant 13 : index
      %345 = memref.load %arg2[%c13] : memref<162xf32, #tpu.memory_space<smem>>
      %346 = vector.broadcast %345 : f32 to vector<16x256xf32>
      %347 = arith.mulf %346, %344 : vector<16x256xf32>
      %348 = arith.addf %323, %347 : vector<16x256xf32>
      %c40 = arith.constant 40 : index
      %349 = memref.load %arg2[%c40] : memref<162xf32, #tpu.memory_space<smem>>
      %350 = vector.broadcast %349 : f32 to vector<16x256xf32>
      %351 = arith.mulf %350, %344 : vector<16x256xf32>
      %352 = arith.addf %327, %351 : vector<16x256xf32>
      %c67 = arith.constant 67 : index
      %353 = memref.load %arg2[%c67] : memref<162xf32, #tpu.memory_space<smem>>
      %354 = vector.broadcast %353 : f32 to vector<16x256xf32>
      %355 = arith.mulf %354, %344 : vector<16x256xf32>
      %356 = arith.addf %331, %355 : vector<16x256xf32>
      %c94 = arith.constant 94 : index
      %357 = memref.load %arg2[%c94] : memref<162xf32, #tpu.memory_space<smem>>
      %358 = vector.broadcast %357 : f32 to vector<16x256xf32>
      %359 = arith.mulf %358, %344 : vector<16x256xf32>
      %360 = arith.addf %335, %359 : vector<16x256xf32>
      %c121 = arith.constant 121 : index
      %361 = memref.load %arg2[%c121] : memref<162xf32, #tpu.memory_space<smem>>
      %362 = vector.broadcast %361 : f32 to vector<16x256xf32>
      %363 = arith.mulf %362, %344 : vector<16x256xf32>
      %364 = arith.addf %339, %363 : vector<16x256xf32>
      %c148 = arith.constant 148 : index
      %365 = memref.load %arg2[%c148] : memref<162xf32, #tpu.memory_space<smem>>
      %366 = vector.broadcast %365 : f32 to vector<16x256xf32>
      %367 = arith.mulf %366, %344 : vector<16x256xf32>
      %368 = arith.addf %343, %367 : vector<16x256xf32>
      %c254_i32_21 = arith.constant 254 : i32
      %369 = tpu.dynamic_rotate %319 by %c254_i32_21 dim 1 : vector<16x256xf32>, i32 -> vector<16x256xf32>
      %c14 = arith.constant 14 : index
      %370 = memref.load %arg2[%c14] : memref<162xf32, #tpu.memory_space<smem>>
      %371 = vector.broadcast %370 : f32 to vector<16x256xf32>
      %372 = arith.mulf %371, %369 : vector<16x256xf32>
      %373 = arith.addf %348, %372 : vector<16x256xf32>
      %c41 = arith.constant 41 : index
      %374 = memref.load %arg2[%c41] : memref<162xf32, #tpu.memory_space<smem>>
      %375 = vector.broadcast %374 : f32 to vector<16x256xf32>
      %376 = arith.mulf %375, %369 : vector<16x256xf32>
      %377 = arith.addf %352, %376 : vector<16x256xf32>
      %c68 = arith.constant 68 : index
      %378 = memref.load %arg2[%c68] : memref<162xf32, #tpu.memory_space<smem>>
      %379 = vector.broadcast %378 : f32 to vector<16x256xf32>
      %380 = arith.mulf %379, %369 : vector<16x256xf32>
      %381 = arith.addf %356, %380 : vector<16x256xf32>
      %c95 = arith.constant 95 : index
      %382 = memref.load %arg2[%c95] : memref<162xf32, #tpu.memory_space<smem>>
      %383 = vector.broadcast %382 : f32 to vector<16x256xf32>
      %384 = arith.mulf %383, %369 : vector<16x256xf32>
      %385 = arith.addf %360, %384 : vector<16x256xf32>
      %c122 = arith.constant 122 : index
      %386 = memref.load %arg2[%c122] : memref<162xf32, #tpu.memory_space<smem>>
      %387 = vector.broadcast %386 : f32 to vector<16x256xf32>
      %388 = arith.mulf %387, %369 : vector<16x256xf32>
      %389 = arith.addf %364, %388 : vector<16x256xf32>
      %c149 = arith.constant 149 : index
      %390 = memref.load %arg2[%c149] : memref<162xf32, #tpu.memory_space<smem>>
      %391 = vector.broadcast %390 : f32 to vector<16x256xf32>
      %392 = arith.mulf %391, %369 : vector<16x256xf32>
      %393 = arith.addf %368, %392 : vector<16x256xf32>
      %c14_i32_22 = arith.constant 14 : i32
      %394 = tpu.dynamic_rotate %244 by %c14_i32_22 dim 0 : vector<16x256xf32>, i32 -> vector<16x256xf32>
      %c15 = arith.constant 15 : index
      %395 = memref.load %arg2[%c15] : memref<162xf32, #tpu.memory_space<smem>>
      %396 = vector.broadcast %395 : f32 to vector<16x256xf32>
      %397 = arith.mulf %396, %394 : vector<16x256xf32>
      %398 = arith.addf %373, %397 : vector<16x256xf32>
      %c42 = arith.constant 42 : index
      %399 = memref.load %arg2[%c42] : memref<162xf32, #tpu.memory_space<smem>>
      %400 = vector.broadcast %399 : f32 to vector<16x256xf32>
      %401 = arith.mulf %400, %394 : vector<16x256xf32>
      %402 = arith.addf %377, %401 : vector<16x256xf32>
      %c69 = arith.constant 69 : index
      %403 = memref.load %arg2[%c69] : memref<162xf32, #tpu.memory_space<smem>>
      %404 = vector.broadcast %403 : f32 to vector<16x256xf32>
      %405 = arith.mulf %404, %394 : vector<16x256xf32>
      %406 = arith.addf %381, %405 : vector<16x256xf32>
      %c96 = arith.constant 96 : index
      %407 = memref.load %arg2[%c96] : memref<162xf32, #tpu.memory_space<smem>>
      %408 = vector.broadcast %407 : f32 to vector<16x256xf32>
      %409 = arith.mulf %408, %394 : vector<16x256xf32>
      %410 = arith.addf %385, %409 : vector<16x256xf32>
      %c123 = arith.constant 123 : index
      %411 = memref.load %arg2[%c123] : memref<162xf32, #tpu.memory_space<smem>>
      %412 = vector.broadcast %411 : f32 to vector<16x256xf32>
      %413 = arith.mulf %412, %394 : vector<16x256xf32>
      %414 = arith.addf %389, %413 : vector<16x256xf32>
      %c150 = arith.constant 150 : index
      %415 = memref.load %arg2[%c150] : memref<162xf32, #tpu.memory_space<smem>>
      %416 = vector.broadcast %415 : f32 to vector<16x256xf32>
      %417 = arith.mulf %416, %394 : vector<16x256xf32>
      %418 = arith.addf %393, %417 : vector<16x256xf32>
      %c255_i32_23 = arith.constant 255 : i32
      %419 = tpu.dynamic_rotate %394 by %c255_i32_23 dim 1 : vector<16x256xf32>, i32 -> vector<16x256xf32>
      %c16 = arith.constant 16 : index
      %420 = memref.load %arg2[%c16] : memref<162xf32, #tpu.memory_space<smem>>
      %421 = vector.broadcast %420 : f32 to vector<16x256xf32>
      %422 = arith.mulf %421, %419 : vector<16x256xf32>
      %423 = arith.addf %398, %422 : vector<16x256xf32>
      %c43 = arith.constant 43 : index
      %424 = memref.load %arg2[%c43] : memref<162xf32, #tpu.memory_space<smem>>
      %425 = vector.broadcast %424 : f32 to vector<16x256xf32>
      %426 = arith.mulf %425, %419 : vector<16x256xf32>
      %427 = arith.addf %402, %426 : vector<16x256xf32>
      %c70 = arith.constant 70 : index
      %428 = memref.load %arg2[%c70] : memref<162xf32, #tpu.memory_space<smem>>
      %429 = vector.broadcast %428 : f32 to vector<16x256xf32>
      %430 = arith.mulf %429, %419 : vector<16x256xf32>
      %431 = arith.addf %406, %430 : vector<16x256xf32>
      %c97 = arith.constant 97 : index
      %432 = memref.load %arg2[%c97] : memref<162xf32, #tpu.memory_space<smem>>
      %433 = vector.broadcast %432 : f32 to vector<16x256xf32>
      %434 = arith.mulf %433, %419 : vector<16x256xf32>
      %435 = arith.addf %410, %434 : vector<16x256xf32>
      %c124 = arith.constant 124 : index
      %436 = memref.load %arg2[%c124] : memref<162xf32, #tpu.memory_space<smem>>
      %437 = vector.broadcast %436 : f32 to vector<16x256xf32>
      %438 = arith.mulf %437, %419 : vector<16x256xf32>
      %439 = arith.addf %414, %438 : vector<16x256xf32>
      %c151 = arith.constant 151 : index
      %440 = memref.load %arg2[%c151] : memref<162xf32, #tpu.memory_space<smem>>
      %441 = vector.broadcast %440 : f32 to vector<16x256xf32>
      %442 = arith.mulf %441, %419 : vector<16x256xf32>
      %443 = arith.addf %418, %442 : vector<16x256xf32>
      %c254_i32_24 = arith.constant 254 : i32
      %444 = tpu.dynamic_rotate %394 by %c254_i32_24 dim 1 : vector<16x256xf32>, i32 -> vector<16x256xf32>
      %c17 = arith.constant 17 : index
      %445 = memref.load %arg2[%c17] : memref<162xf32, #tpu.memory_space<smem>>
      %446 = vector.broadcast %445 : f32 to vector<16x256xf32>
      %447 = arith.mulf %446, %444 : vector<16x256xf32>
      %448 = arith.addf %423, %447 : vector<16x256xf32>
      %c44 = arith.constant 44 : index
      %449 = memref.load %arg2[%c44] : memref<162xf32, #tpu.memory_space<smem>>
      %450 = vector.broadcast %449 : f32 to vector<16x256xf32>
      %451 = arith.mulf %450, %444 : vector<16x256xf32>
      %452 = arith.addf %427, %451 : vector<16x256xf32>
      %c71 = arith.constant 71 : index
      %453 = memref.load %arg2[%c71] : memref<162xf32, #tpu.memory_space<smem>>
      %454 = vector.broadcast %453 : f32 to vector<16x256xf32>
      %455 = arith.mulf %454, %444 : vector<16x256xf32>
      %456 = arith.addf %431, %455 : vector<16x256xf32>
      %c98 = arith.constant 98 : index
      %457 = memref.load %arg2[%c98] : memref<162xf32, #tpu.memory_space<smem>>
      %458 = vector.broadcast %457 : f32 to vector<16x256xf32>
      %459 = arith.mulf %458, %444 : vector<16x256xf32>
      %460 = arith.addf %435, %459 : vector<16x256xf32>
      %c125 = arith.constant 125 : index
      %461 = memref.load %arg2[%c125] : memref<162xf32, #tpu.memory_space<smem>>
      %462 = vector.broadcast %461 : f32 to vector<16x256xf32>
      %463 = arith.mulf %462, %444 : vector<16x256xf32>
      %464 = arith.addf %439, %463 : vector<16x256xf32>
      %c152 = arith.constant 152 : index
      %465 = memref.load %arg2[%c152] : memref<162xf32, #tpu.memory_space<smem>>
      %466 = vector.broadcast %465 : f32 to vector<16x256xf32>
      %467 = arith.mulf %466, %444 : vector<16x256xf32>
      %468 = arith.addf %443, %467 : vector<16x256xf32>
      %c0_25 = arith.constant 0 : index
      %c2_26 = arith.constant 2 : index
      %c0_27 = arith.constant 0 : index
      %469 = arith.index_cast %2 : i32 to index
      %470 = vector.load %arg1[%c0_25, %c2_26, %c0_27, %469] : memref<1x3x16x512xf32, #tpu.memory_space<vmem>>, vector<1x1x16x256xf32>
      %471 = vector.shape_cast %470 : vector<1x1x16x256xf32> to vector<16x256xf32>
      %c18 = arith.constant 18 : index
      %472 = memref.load %arg2[%c18] : memref<162xf32, #tpu.memory_space<smem>>
      %473 = vector.broadcast %472 : f32 to vector<16x256xf32>
      %474 = arith.mulf %473, %471 : vector<16x256xf32>
      %475 = arith.addf %448, %474 : vector<16x256xf32>
      %c45 = arith.constant 45 : index
      %476 = memref.load %arg2[%c45] : memref<162xf32, #tpu.memory_space<smem>>
      %477 = vector.broadcast %476 : f32 to vector<16x256xf32>
      %478 = arith.mulf %477, %471 : vector<16x256xf32>
      %479 = arith.addf %452, %478 : vector<16x256xf32>
      %c72 = arith.constant 72 : index
      %480 = memref.load %arg2[%c72] : memref<162xf32, #tpu.memory_space<smem>>
      %481 = vector.broadcast %480 : f32 to vector<16x256xf32>
      %482 = arith.mulf %481, %471 : vector<16x256xf32>
      %483 = arith.addf %456, %482 : vector<16x256xf32>
      %c99 = arith.constant 99 : index
      %484 = memref.load %arg2[%c99] : memref<162xf32, #tpu.memory_space<smem>>
      %485 = vector.broadcast %484 : f32 to vector<16x256xf32>
      %486 = arith.mulf %485, %471 : vector<16x256xf32>
      %487 = arith.addf %460, %486 : vector<16x256xf32>
      %c126 = arith.constant 126 : index
      %488 = memref.load %arg2[%c126] : memref<162xf32, #tpu.memory_space<smem>>
      %489 = vector.broadcast %488 : f32 to vector<16x256xf32>
      %490 = arith.mulf %489, %471 : vector<16x256xf32>
      %491 = arith.addf %464, %490 : vector<16x256xf32>
      %c153 = arith.constant 153 : index
      %492 = memref.load %arg2[%c153] : memref<162xf32, #tpu.memory_space<smem>>
      %493 = vector.broadcast %492 : f32 to vector<16x256xf32>
      %494 = arith.mulf %493, %471 : vector<16x256xf32>
      %495 = arith.addf %468, %494 : vector<16x256xf32>
      %c255_i32_28 = arith.constant 255 : i32
      %496 = tpu.dynamic_rotate %471 by %c255_i32_28 dim 1 : vector<16x256xf32>, i32 -> vector<16x256xf32>
      %c19 = arith.constant 19 : index
      %497 = memref.load %arg2[%c19] : memref<162xf32, #tpu.memory_space<smem>>
      %498 = vector.broadcast %497 : f32 to vector<16x256xf32>
      %499 = arith.mulf %498, %496 : vector<16x256xf32>
      %500 = arith.addf %475, %499 : vector<16x256xf32>
      %c46 = arith.constant 46 : index
      %501 = memref.load %arg2[%c46] : memref<162xf32, #tpu.memory_space<smem>>
      %502 = vector.broadcast %501 : f32 to vector<16x256xf32>
      %503 = arith.mulf %502, %496 : vector<16x256xf32>
      %504 = arith.addf %479, %503 : vector<16x256xf32>
      %c73 = arith.constant 73 : index
      %505 = memref.load %arg2[%c73] : memref<162xf32, #tpu.memory_space<smem>>
      %506 = vector.broadcast %505 : f32 to vector<16x256xf32>
      %507 = arith.mulf %506, %496 : vector<16x256xf32>
      %508 = arith.addf %483, %507 : vector<16x256xf32>
      %c100 = arith.constant 100 : index
      %509 = memref.load %arg2[%c100] : memref<162xf32, #tpu.memory_space<smem>>
      %510 = vector.broadcast %509 : f32 to vector<16x256xf32>
      %511 = arith.mulf %510, %496 : vector<16x256xf32>
      %512 = arith.addf %487, %511 : vector<16x256xf32>
      %c127 = arith.constant 127 : index
      %513 = memref.load %arg2[%c127] : memref<162xf32, #tpu.memory_space<smem>>
      %514 = vector.broadcast %513 : f32 to vector<16x256xf32>
      %515 = arith.mulf %514, %496 : vector<16x256xf32>
      %516 = arith.addf %491, %515 : vector<16x256xf32>
      %c154 = arith.constant 154 : index
      %517 = memref.load %arg2[%c154] : memref<162xf32, #tpu.memory_space<smem>>
      %518 = vector.broadcast %517 : f32 to vector<16x256xf32>
      %519 = arith.mulf %518, %496 : vector<16x256xf32>
      %520 = arith.addf %495, %519 : vector<16x256xf32>
      %c254_i32_29 = arith.constant 254 : i32
      %521 = tpu.dynamic_rotate %471 by %c254_i32_29 dim 1 : vector<16x256xf32>, i32 -> vector<16x256xf32>
      %c20 = arith.constant 20 : index
      %522 = memref.load %arg2[%c20] : memref<162xf32, #tpu.memory_space<smem>>
      %523 = vector.broadcast %522 : f32 to vector<16x256xf32>
      %524 = arith.mulf %523, %521 : vector<16x256xf32>
      %525 = arith.addf %500, %524 : vector<16x256xf32>
      %c47 = arith.constant 47 : index
      %526 = memref.load %arg2[%c47] : memref<162xf32, #tpu.memory_space<smem>>
      %527 = vector.broadcast %526 : f32 to vector<16x256xf32>
      %528 = arith.mulf %527, %521 : vector<16x256xf32>
      %529 = arith.addf %504, %528 : vector<16x256xf32>
      %c74 = arith.constant 74 : index
      %530 = memref.load %arg2[%c74] : memref<162xf32, #tpu.memory_space<smem>>
      %531 = vector.broadcast %530 : f32 to vector<16x256xf32>
      %532 = arith.mulf %531, %521 : vector<16x256xf32>
      %533 = arith.addf %508, %532 : vector<16x256xf32>
      %c101 = arith.constant 101 : index
      %534 = memref.load %arg2[%c101] : memref<162xf32, #tpu.memory_space<smem>>
      %535 = vector.broadcast %534 : f32 to vector<16x256xf32>
      %536 = arith.mulf %535, %521 : vector<16x256xf32>
      %537 = arith.addf %512, %536 : vector<16x256xf32>
      %c128 = arith.constant 128 : index
      %538 = memref.load %arg2[%c128] : memref<162xf32, #tpu.memory_space<smem>>
      %539 = vector.broadcast %538 : f32 to vector<16x256xf32>
      %540 = arith.mulf %539, %521 : vector<16x256xf32>
      %541 = arith.addf %516, %540 : vector<16x256xf32>
      %c155 = arith.constant 155 : index
      %542 = memref.load %arg2[%c155] : memref<162xf32, #tpu.memory_space<smem>>
      %543 = vector.broadcast %542 : f32 to vector<16x256xf32>
      %544 = arith.mulf %543, %521 : vector<16x256xf32>
      %545 = arith.addf %520, %544 : vector<16x256xf32>
      %c15_i32_30 = arith.constant 15 : i32
      %546 = tpu.dynamic_rotate %471 by %c15_i32_30 dim 0 : vector<16x256xf32>, i32 -> vector<16x256xf32>
      %c21 = arith.constant 21 : index
      %547 = memref.load %arg2[%c21] : memref<162xf32, #tpu.memory_space<smem>>
      %548 = vector.broadcast %547 : f32 to vector<16x256xf32>
      %549 = arith.mulf %548, %546 : vector<16x256xf32>
      %550 = arith.addf %525, %549 : vector<16x256xf32>
      %c48 = arith.constant 48 : index
      %551 = memref.load %arg2[%c48] : memref<162xf32, #tpu.memory_space<smem>>
      %552 = vector.broadcast %551 : f32 to vector<16x256xf32>
      %553 = arith.mulf %552, %546 : vector<16x256xf32>
      %554 = arith.addf %529, %553 : vector<16x256xf32>
      %c75 = arith.constant 75 : index
      %555 = memref.load %arg2[%c75] : memref<162xf32, #tpu.memory_space<smem>>
      %556 = vector.broadcast %555 : f32 to vector<16x256xf32>
      %557 = arith.mulf %556, %546 : vector<16x256xf32>
      %558 = arith.addf %533, %557 : vector<16x256xf32>
      %c102 = arith.constant 102 : index
      %559 = memref.load %arg2[%c102] : memref<162xf32, #tpu.memory_space<smem>>
      %560 = vector.broadcast %559 : f32 to vector<16x256xf32>
      %561 = arith.mulf %560, %546 : vector<16x256xf32>
      %562 = arith.addf %537, %561 : vector<16x256xf32>
      %c129 = arith.constant 129 : index
      %563 = memref.load %arg2[%c129] : memref<162xf32, #tpu.memory_space<smem>>
      %564 = vector.broadcast %563 : f32 to vector<16x256xf32>
      %565 = arith.mulf %564, %546 : vector<16x256xf32>
      %566 = arith.addf %541, %565 : vector<16x256xf32>
      %c156 = arith.constant 156 : index
      %567 = memref.load %arg2[%c156] : memref<162xf32, #tpu.memory_space<smem>>
      %568 = vector.broadcast %567 : f32 to vector<16x256xf32>
      %569 = arith.mulf %568, %546 : vector<16x256xf32>
      %570 = arith.addf %545, %569 : vector<16x256xf32>
      %c255_i32_31 = arith.constant 255 : i32
      %571 = tpu.dynamic_rotate %546 by %c255_i32_31 dim 1 : vector<16x256xf32>, i32 -> vector<16x256xf32>
      %c22 = arith.constant 22 : index
      %572 = memref.load %arg2[%c22] : memref<162xf32, #tpu.memory_space<smem>>
      %573 = vector.broadcast %572 : f32 to vector<16x256xf32>
      %574 = arith.mulf %573, %571 : vector<16x256xf32>
      %575 = arith.addf %550, %574 : vector<16x256xf32>
      %c49 = arith.constant 49 : index
      %576 = memref.load %arg2[%c49] : memref<162xf32, #tpu.memory_space<smem>>
      %577 = vector.broadcast %576 : f32 to vector<16x256xf32>
      %578 = arith.mulf %577, %571 : vector<16x256xf32>
      %579 = arith.addf %554, %578 : vector<16x256xf32>
      %c76 = arith.constant 76 : index
      %580 = memref.load %arg2[%c76] : memref<162xf32, #tpu.memory_space<smem>>
      %581 = vector.broadcast %580 : f32 to vector<16x256xf32>
      %582 = arith.mulf %581, %571 : vector<16x256xf32>
      %583 = arith.addf %558, %582 : vector<16x256xf32>
      %c103 = arith.constant 103 : index
      %584 = memref.load %arg2[%c103] : memref<162xf32, #tpu.memory_space<smem>>
      %585 = vector.broadcast %584 : f32 to vector<16x256xf32>
      %586 = arith.mulf %585, %571 : vector<16x256xf32>
      %587 = arith.addf %562, %586 : vector<16x256xf32>
      %c130 = arith.constant 130 : index
      %588 = memref.load %arg2[%c130] : memref<162xf32, #tpu.memory_space<smem>>
      %589 = vector.broadcast %588 : f32 to vector<16x256xf32>
      %590 = arith.mulf %589, %571 : vector<16x256xf32>
      %591 = arith.addf %566, %590 : vector<16x256xf32>
      %c157 = arith.constant 157 : index
      %592 = memref.load %arg2[%c157] : memref<162xf32, #tpu.memory_space<smem>>
      %593 = vector.broadcast %592 : f32 to vector<16x256xf32>
      %594 = arith.mulf %593, %571 : vector<16x256xf32>
      %595 = arith.addf %570, %594 : vector<16x256xf32>
      %c254_i32_32 = arith.constant 254 : i32
      %596 = tpu.dynamic_rotate %546 by %c254_i32_32 dim 1 : vector<16x256xf32>, i32 -> vector<16x256xf32>
      %c23 = arith.constant 23 : index
      %597 = memref.load %arg2[%c23] : memref<162xf32, #tpu.memory_space<smem>>
      %598 = vector.broadcast %597 : f32 to vector<16x256xf32>
      %599 = arith.mulf %598, %596 : vector<16x256xf32>
      %600 = arith.addf %575, %599 : vector<16x256xf32>
      %c50 = arith.constant 50 : index
      %601 = memref.load %arg2[%c50] : memref<162xf32, #tpu.memory_space<smem>>
      %602 = vector.broadcast %601 : f32 to vector<16x256xf32>
      %603 = arith.mulf %602, %596 : vector<16x256xf32>
      %604 = arith.addf %579, %603 : vector<16x256xf32>
      %c77 = arith.constant 77 : index
      %605 = memref.load %arg2[%c77] : memref<162xf32, #tpu.memory_space<smem>>
      %606 = vector.broadcast %605 : f32 to vector<16x256xf32>
      %607 = arith.mulf %606, %596 : vector<16x256xf32>
      %608 = arith.addf %583, %607 : vector<16x256xf32>
      %c104 = arith.constant 104 : index
      %609 = memref.load %arg2[%c104] : memref<162xf32, #tpu.memory_space<smem>>
      %610 = vector.broadcast %609 : f32 to vector<16x256xf32>
      %611 = arith.mulf %610, %596 : vector<16x256xf32>
      %612 = arith.addf %587, %611 : vector<16x256xf32>
      %c131 = arith.constant 131 : index
      %613 = memref.load %arg2[%c131] : memref<162xf32, #tpu.memory_space<smem>>
      %614 = vector.broadcast %613 : f32 to vector<16x256xf32>
      %615 = arith.mulf %614, %596 : vector<16x256xf32>
      %616 = arith.addf %591, %615 : vector<16x256xf32>
      %c158 = arith.constant 158 : index
      %617 = memref.load %arg2[%c158] : memref<162xf32, #tpu.memory_space<smem>>
      %618 = vector.broadcast %617 : f32 to vector<16x256xf32>
      %619 = arith.mulf %618, %596 : vector<16x256xf32>
      %620 = arith.addf %595, %619 : vector<16x256xf32>
      %c14_i32_33 = arith.constant 14 : i32
      %621 = tpu.dynamic_rotate %471 by %c14_i32_33 dim 0 : vector<16x256xf32>, i32 -> vector<16x256xf32>
      %c24 = arith.constant 24 : index
      %622 = memref.load %arg2[%c24] : memref<162xf32, #tpu.memory_space<smem>>
      %623 = vector.broadcast %622 : f32 to vector<16x256xf32>
      %624 = arith.mulf %623, %621 : vector<16x256xf32>
      %625 = arith.addf %600, %624 : vector<16x256xf32>
      %c51 = arith.constant 51 : index
      %626 = memref.load %arg2[%c51] : memref<162xf32, #tpu.memory_space<smem>>
      %627 = vector.broadcast %626 : f32 to vector<16x256xf32>
      %628 = arith.mulf %627, %621 : vector<16x256xf32>
      %629 = arith.addf %604, %628 : vector<16x256xf32>
      %c78 = arith.constant 78 : index
      %630 = memref.load %arg2[%c78] : memref<162xf32, #tpu.memory_space<smem>>
      %631 = vector.broadcast %630 : f32 to vector<16x256xf32>
      %632 = arith.mulf %631, %621 : vector<16x256xf32>
      %633 = arith.addf %608, %632 : vector<16x256xf32>
      %c105 = arith.constant 105 : index
      %634 = memref.load %arg2[%c105] : memref<162xf32, #tpu.memory_space<smem>>
      %635 = vector.broadcast %634 : f32 to vector<16x256xf32>
      %636 = arith.mulf %635, %621 : vector<16x256xf32>
      %637 = arith.addf %612, %636 : vector<16x256xf32>
      %c132 = arith.constant 132 : index
      %638 = memref.load %arg2[%c132] : memref<162xf32, #tpu.memory_space<smem>>
      %639 = vector.broadcast %638 : f32 to vector<16x256xf32>
      %640 = arith.mulf %639, %621 : vector<16x256xf32>
      %641 = arith.addf %616, %640 : vector<16x256xf32>
      %c159 = arith.constant 159 : index
      %642 = memref.load %arg2[%c159] : memref<162xf32, #tpu.memory_space<smem>>
      %643 = vector.broadcast %642 : f32 to vector<16x256xf32>
      %644 = arith.mulf %643, %621 : vector<16x256xf32>
      %645 = arith.addf %620, %644 : vector<16x256xf32>
      %c255_i32_34 = arith.constant 255 : i32
      %646 = tpu.dynamic_rotate %621 by %c255_i32_34 dim 1 : vector<16x256xf32>, i32 -> vector<16x256xf32>
      %c25 = arith.constant 25 : index
      %647 = memref.load %arg2[%c25] : memref<162xf32, #tpu.memory_space<smem>>
      %648 = vector.broadcast %647 : f32 to vector<16x256xf32>
      %649 = arith.mulf %648, %646 : vector<16x256xf32>
      %650 = arith.addf %625, %649 : vector<16x256xf32>
      %c52 = arith.constant 52 : index
      %651 = memref.load %arg2[%c52] : memref<162xf32, #tpu.memory_space<smem>>
      %652 = vector.broadcast %651 : f32 to vector<16x256xf32>
      %653 = arith.mulf %652, %646 : vector<16x256xf32>
      %654 = arith.addf %629, %653 : vector<16x256xf32>
      %c79 = arith.constant 79 : index
      %655 = memref.load %arg2[%c79] : memref<162xf32, #tpu.memory_space<smem>>
      %656 = vector.broadcast %655 : f32 to vector<16x256xf32>
      %657 = arith.mulf %656, %646 : vector<16x256xf32>
      %658 = arith.addf %633, %657 : vector<16x256xf32>
      %c106 = arith.constant 106 : index
      %659 = memref.load %arg2[%c106] : memref<162xf32, #tpu.memory_space<smem>>
      %660 = vector.broadcast %659 : f32 to vector<16x256xf32>
      %661 = arith.mulf %660, %646 : vector<16x256xf32>
      %662 = arith.addf %637, %661 : vector<16x256xf32>
      %c133 = arith.constant 133 : index
      %663 = memref.load %arg2[%c133] : memref<162xf32, #tpu.memory_space<smem>>
      %664 = vector.broadcast %663 : f32 to vector<16x256xf32>
      %665 = arith.mulf %664, %646 : vector<16x256xf32>
      %666 = arith.addf %641, %665 : vector<16x256xf32>
      %c160 = arith.constant 160 : index
      %667 = memref.load %arg2[%c160] : memref<162xf32, #tpu.memory_space<smem>>
      %668 = vector.broadcast %667 : f32 to vector<16x256xf32>
      %669 = arith.mulf %668, %646 : vector<16x256xf32>
      %670 = arith.addf %645, %669 : vector<16x256xf32>
      %c254_i32_35 = arith.constant 254 : i32
      %671 = tpu.dynamic_rotate %621 by %c254_i32_35 dim 1 : vector<16x256xf32>, i32 -> vector<16x256xf32>
      %c26 = arith.constant 26 : index
      %672 = memref.load %arg2[%c26] : memref<162xf32, #tpu.memory_space<smem>>
      %673 = vector.broadcast %672 : f32 to vector<16x256xf32>
      %674 = arith.mulf %673, %671 : vector<16x256xf32>
      %675 = arith.addf %650, %674 : vector<16x256xf32>
      %c53 = arith.constant 53 : index
      %676 = memref.load %arg2[%c53] : memref<162xf32, #tpu.memory_space<smem>>
      %677 = vector.broadcast %676 : f32 to vector<16x256xf32>
      %678 = arith.mulf %677, %671 : vector<16x256xf32>
      %679 = arith.addf %654, %678 : vector<16x256xf32>
      %c80 = arith.constant 80 : index
      %680 = memref.load %arg2[%c80] : memref<162xf32, #tpu.memory_space<smem>>
      %681 = vector.broadcast %680 : f32 to vector<16x256xf32>
      %682 = arith.mulf %681, %671 : vector<16x256xf32>
      %683 = arith.addf %658, %682 : vector<16x256xf32>
      %c107 = arith.constant 107 : index
      %684 = memref.load %arg2[%c107] : memref<162xf32, #tpu.memory_space<smem>>
      %685 = vector.broadcast %684 : f32 to vector<16x256xf32>
      %686 = arith.mulf %685, %671 : vector<16x256xf32>
      %687 = arith.addf %662, %686 : vector<16x256xf32>
      %c134 = arith.constant 134 : index
      %688 = memref.load %arg2[%c134] : memref<162xf32, #tpu.memory_space<smem>>
      %689 = vector.broadcast %688 : f32 to vector<16x256xf32>
      %690 = arith.mulf %689, %671 : vector<16x256xf32>
      %691 = arith.addf %666, %690 : vector<16x256xf32>
      %c161 = arith.constant 161 : index
      %692 = memref.load %arg2[%c161] : memref<162xf32, #tpu.memory_space<smem>>
      %693 = vector.broadcast %692 : f32 to vector<16x256xf32>
      %694 = arith.mulf %693, %671 : vector<16x256xf32>
      %695 = arith.addf %670, %694 : vector<16x256xf32>
      %c0_36 = arith.constant 0 : index
      %c0_37 = arith.constant 0 : index
      %c0_38 = arith.constant 0 : index
      %696 = arith.index_cast %2 : i32 to index
      %697 = vector.load %arg4[%c0_36, %c0_37, %c0_38, %696] : memref<1x6x16x512xf32, #tpu.memory_space<vmem>>, vector<1x1x16x256xf32>
      %698 = vector.shape_cast %697 : vector<1x1x16x256xf32> to vector<16x256xf32>
      %699 = vector.shape_cast %675 : vector<16x256xf32> to vector<1x1x16x256xf32>
      tpu.vector_store %arg4[%c0_36, %c0_37, %c0_38, %696], %699 {strides = array<i32>} : memref<1x6x16x512xf32, #tpu.memory_space<vmem>>, vector<1x1x16x256xf32>,
      %c0_39 = arith.constant 0 : index
      %c1_40 = arith.constant 1 : index
      %c0_41 = arith.constant 0 : index
      %700 = arith.index_cast %2 : i32 to index
      %701 = vector.load %arg4[%c0_39, %c1_40, %c0_41, %700] : memref<1x6x16x512xf32, #tpu.memory_space<vmem>>, vector<1x1x16x256xf32>
      %702 = vector.shape_cast %701 : vector<1x1x16x256xf32> to vector<16x256xf32>
      %703 = vector.shape_cast %679 : vector<16x256xf32> to vector<1x1x16x256xf32>
      tpu.vector_store %arg4[%c0_39, %c1_40, %c0_41, %700], %703 {strides = array<i32>} : memref<1x6x16x512xf32, #tpu.memory_space<vmem>>, vector<1x1x16x256xf32>,
      %c0_42 = arith.constant 0 : index
      %c2_43 = arith.constant 2 : index
      %c0_44 = arith.constant 0 : index
      %704 = arith.index_cast %2 : i32 to index
      %705 = vector.load %arg4[%c0_42, %c2_43, %c0_44, %704] : memref<1x6x16x512xf32, #tpu.memory_space<vmem>>, vector<1x1x16x256xf32>
      %706 = vector.shape_cast %705 : vector<1x1x16x256xf32> to vector<16x256xf32>
      %707 = vector.shape_cast %683 : vector<16x256xf32> to vector<1x1x16x256xf32>
      tpu.vector_store %arg4[%c0_42, %c2_43, %c0_44, %704], %707 {strides = array<i32>} : memref<1x6x16x512xf32, #tpu.memory_space<vmem>>, vector<1x1x16x256xf32>,
      %c0_45 = arith.constant 0 : index
      %c3_46 = arith.constant 3 : index
      %c0_47 = arith.constant 0 : index
      %708 = arith.index_cast %2 : i32 to index
      %709 = vector.load %arg4[%c0_45, %c3_46, %c0_47, %708] : memref<1x6x16x512xf32, #tpu.memory_space<vmem>>, vector<1x1x16x256xf32>
      %710 = vector.shape_cast %709 : vector<1x1x16x256xf32> to vector<16x256xf32>
      %711 = vector.shape_cast %687 : vector<16x256xf32> to vector<1x1x16x256xf32>
      tpu.vector_store %arg4[%c0_45, %c3_46, %c0_47, %708], %711 {strides = array<i32>} : memref<1x6x16x512xf32, #tpu.memory_space<vmem>>, vector<1x1x16x256xf32>,
      %c0_48 = arith.constant 0 : index
      %c4_49 = arith.constant 4 : index
      %c0_50 = arith.constant 0 : index
      %712 = arith.index_cast %2 : i32 to index
      %713 = vector.load %arg4[%c0_48, %c4_49, %c0_50, %712] : memref<1x6x16x512xf32, #tpu.memory_space<vmem>>, vector<1x1x16x256xf32>
      %714 = vector.shape_cast %713 : vector<1x1x16x256xf32> to vector<16x256xf32>
      %715 = vector.shape_cast %691 : vector<16x256xf32> to vector<1x1x16x256xf32>
      tpu.vector_store %arg4[%c0_48, %c4_49, %c0_50, %712], %715 {strides = array<i32>} : memref<1x6x16x512xf32, #tpu.memory_space<vmem>>, vector<1x1x16x256xf32>,
      %c0_51 = arith.constant 0 : index
      %c5_52 = arith.constant 5 : index
      %c0_53 = arith.constant 0 : index
      %716 = arith.index_cast %2 : i32 to index
      %717 = vector.load %arg4[%c0_51, %c5_52, %c0_53, %716] : memref<1x6x16x512xf32, #tpu.memory_space<vmem>>, vector<1x1x16x256xf32>
      %718 = vector.shape_cast %717 : vector<1x1x16x256xf32> to vector<16x256xf32>
      %719 = vector.shape_cast %695 : vector<16x256xf32> to vector<1x1x16x256xf32>
      tpu.vector_store %arg4[%c0_51, %c5_52, %c0_53, %716], %719 {strides = array<i32>} : memref<1x6x16x512xf32, #tpu.memory_space<vmem>>, vector<1x1x16x256xf32>,
    }
    %c2_i32_0 = arith.constant 2 : i32
    return
  }
  func.func @transform_0(%arg0: i32) -> (i32, i32, i32, i32) {
    %c0_i32 = arith.constant 0 : i32
    %c0_i32_0 = arith.constant 0 : i32
    %c0_i32_1 = arith.constant 0 : i32
    %c0_i32_2 = arith.constant 0 : i32
    return %arg0, %c0_i32, %c0_i32_0, %c0_i32_1 : i32, i32, i32, i32
  }
  func.func @transform_1(%arg0: i32) -> i32 {
    %c0_i32 = arith.constant 0 : i32
    %c0_i32_0 = arith.constant 0 : i32
    return %c0_i32 : i32
  }
  func.func @transform_2(%arg0: i32) -> i32 {
    %c0_i32 = arith.constant 0 : i32
    %c0_i32_0 = arith.constant 0 : i32
    return %c0_i32 : i32
  }
  func.func @transform_3(%arg0: i32) -> (i32, i32, i32, i32) {
    %c0_i32 = arith.constant 0 : i32
    %c0_i32_0 = arith.constant 0 : i32
    %c0_i32_1 = arith.constant 0 : i32
    %c0_i32_2 = arith.constant 0 : i32
    return %arg0, %c0_i32, %c0_i32_0, %c0_i32_1 : i32, i32, i32, i32
  }
}

</mosaic_0001>

<bundles_post_ra>
// kernel: renshen_forward.1
= control target key start
LH: loop header
LB: loop body
LE: loop exit
PB: predicated region body
PF: predicated region fallthrough
CT: control target
= control target key end

     0   :  { %s5478_s0 = inlined_call_operand.vmem [shape: f32[2,3,16,512], index: 0, kind: input, shape index: {}]   ;;  %s5479_s1 = inlined_call_operand.vmem [shape: f32[162], index: 1, kind: input, shape index: {}]   ;;  %s5480_s2 = inlined_call_operand.vmem [shape: f32[6], index: 2, kind: input, shape index: {}]   ;;  %s5481_s3 = inlined_call_operand.vmem [shape: f32[2,6,16,512], index: 3, kind: output, shape index: {}]  }
   0x1   :  { %5559 = sst [smem:[#allocation48_spill]] %s5478_s0 }
   0x2   :  { %5560 = sst [smem:[#allocation49_spill]] %s5479_s1 }
   0x3   :  { %8 = vsyncpa [#allocation3], 0 }
   0x4   :  { %9 = vsyncpa [#allocation5], 0  ;;  %s2621_s12 = smov 0  }
   0x5 LB: > { %s2277_s13 = sadd.s32 4294967295, %s2591_s12   ;;  %p2279_p0 = scmp.ge.s32.totalorder %s2591_s12, 1  ;;  %s2591_s12 = sphi %s2621_s12, %s15_s12  }
   0x6   : > { %p114_p1 = scmp.lt.s32.totalorder %s2591_s12, 3  ;;  %s5561_s1 = sld [smem:[#allocation49_spill]] }
   0x7   : > { %p2511_p3 = scmp.eq.s32.totalorder %s2277_s13, 0  ;;  %s136_s19 = sshll.u32 %s5480_s2, 4  ;;  %s137_s19 = int_to_ptr.vmem [resolvable:$true] %s136_s19 }
   0x8   : > { %p115_p2 = pnand %p2279_p0, %p114_p1  ;;  %s2597_s20 = smov [#allocation2]  }
   0x9   : > { %s2598_s21 = smov [#allocation4]  }
   0xa   : > { %p2504_p4 = pneg %p115_p2 }
   0xb   : > { %157 = sbr.rel (%p115_p2) target bundleno = 531 (0x213), region = 32 }
   0xc   : > { %s126_s16 = sshll.u32 %s5561_s1, 4  ;;  %p2505_p5 = pnand %p2511_p3, %p2504_p4  ;;  %s127_s16 = int_to_ptr.vmem [resolvable:$true] %s126_s16 }
   0xe   : > { %2507 = dma.vmem_to_smem (!%p2505_p5), %s127_s16, 32, %s2597_s20, [#allocation3]  }
   0xf   : > { %2510 = dma.vmem_to_smem (!%p2505_p5), %s137_s19, 16, %s2598_s21, [#allocation5]  }
  0x10   : > { %2582 = dma.done.wait (%p2511_p3), [#allocation3], 32  }
  0x11   : > { %2584 = vsyncadd (%p2511_p3), [#allocation3], 4294967264 }
  0x12   : > { %2586 = dma.done.wait (%p2511_p3), [#allocation5], 16  }
  0x13   : > { %2588 = vsyncadd (%p2511_p3), [#allocation5], 4294967280 }
  0x14   : > { %169 = sfence }
  0x15   : > { %p188_p6 = scmp.lt.s32.totalorder %s2277_s13, 1  ;;  %s5562_s0 = sld [smem:[#allocation48_spill]] }
  0x16   : > { %s2650_s30 = smov 0  }
  0x17   : > { %s5692_s13 = smov (!%p188_p6, %s2277_s13), 1 }
  0x18   : > { %s2494_s22 = smul.u32 192, %s5692_s13 }
  0x19   : > { %s2495_s23 = smul.u32 384, %s5692_s13 }
  0x1b   : > { %s2643_s26 = scalar_lea.vmem %s5562_s0, %s2494_s22  ;;  %s2648_s29 = scalar_lea.vmem %s5481_s3, %s2495_s23 }
  0x1c LB: >> { %s2288_s4 = sshll.u32 %s2595_s30, 8  ;;  %s2599_s8 = smov 127   ;;  %v293_v4 = vlaneseq  ;;  %s2595_s30 = sphi %s2650_s30, %s203_s30  }
  0x1d   : >> { %s2656_s5 = sshra.s32 %s2288_s4, 7  ;;  %s5483_s9 = smov 126  }
  0x1e   : >> { %s5482_s6 = sshll.u32 %s2656_s5, 3  ;;  %v2689_v5 = vshrl.u32 %v293_v4, 7  ;;  %s2787_s10 = sld [smem:[#allocation4]]  ;;  %v2869_v43 = vand.u32 127, %v293_v4 }
  0x1f   : >> { %s2662_s7 = scalar_lea.vmem %s2643_s26, %s5482_s6  ;;  %s2789_s11 = sld [smem:[#allocation4 + $0x1]] }
  0x20   : >> { %v2665_v0 = vld [vmem:[%s2662_s7 + $0x8] sm:$0xff]  ;;  %v2668_v1 = vld [vmem:[%s2662_s7] sm:$0xff]  ;;  %5563 = vst [vmem:[#allocation8_spill] sm:$0xff] %v2689_v5  ;;  %vm439_vm0 = vcmp.lt.s32.totalorder %v2689_v5, 7  ;;  %vm652_vm1 = vcmp.lt.s32.totalorder %v2689_v5, 6  ;;  %s2795_s13 = sld [smem:[#allocation4 + $0x2]] }
  0x21   : >> { %289 = vrot.lane.b32.xlu1 %v2665_v0, %s2599_s8  ;;  %285 = vrot.lane.b32.xlu0 %v2668_v1, %s2599_s8  ;;  %v2677_v2 = vld [vmem:[%s2662_s7 + $0x28] sm:$0xff]  ;;  %v2680_v3 = vld [vmem:[%s2662_s7 + $0x20] sm:$0xff]  ;;  %v433_v6 = vrot.slane %v2668_v1, 1  ;;  %v434_v9 = vrot.slane %v2665_v0, 1  ;;  %v648_v14 = vrot.slane %v2668_v1, 2  ;;  %v649_v18 = vrot.slane %v2665_v0, 2 }
  0x22   : >> { %360 = vrot.lane.b32.xlu2 %v2668_v1, %s5483_s9  ;;  %v435_v7 = vrot.slane %v2680_v3, 1  ;;  %v436_v10 = vrot.slane %v2677_v2, 1  ;;  %v650_v15 = vrot.slane %v2680_v3, 2  ;;  %v651_v19 = vrot.slane %v2677_v2, 2  ;;  %v2770_v22 = vld [vmem:[%s2662_s7 + $0x60] sm:$0xff]  ;;  %v2780_v24 = vld [vmem:[%s2662_s7 + $0x48] sm:$0xff] }
  0x23   : >> { %v2773_v23 = vld [vmem:[%s2662_s7 + $0x40] sm:$0xff]  ;;  %v2785_v25 = vld [vmem:[%s2662_s7 + $0x68] sm:$0xff]  ;;  %s2799_s14 = sld [smem:[#allocation4 + $0x3]]  ;;  %v1074_v27 = vrot.slane %v2770_v22, 1  ;;  %v1073_v29 = vrot.slane %v2780_v24, 1  ;;  %v1286_v35 = vrot.slane %v2770_v22, 2 }
  0x24   : >> { %v2700_v8 = vsel %vm439_vm0, %v433_v6, %v435_v7  ;;  %v2708_v11 = vsel %vm439_vm0, %v434_v9, %v436_v10  ;;  %v2712_v12 = vsel %vm439_vm0, %v435_v7, %v433_v6  ;;  %v2720_v13 = vsel %vm439_vm0, %v436_v10, %v434_v9  ;;  %s2801_s15 = sld [smem:[#allocation4 + $0x4]]  ;;  %s203_s30 = sadd.s32 1, %s2595_s30  }
  0x25   : >> { %5564 = vst [vmem:[#allocation9_spill] sm:$0xff] %v2712_v12  ;;  %v2735_v16 = vsel %vm652_vm1, %v648_v14, %v650_v15  ;;  %v2743_v17 = vsel %vm652_vm1, %v650_v15, %v648_v14  ;;  %v2751_v20 = vsel %vm652_vm1, %v651_v19, %v649_v18  ;;  %v2755_v21 = vsel %vm652_vm1, %v649_v18, %v651_v19  ;;  %s2803_s16 = sld [smem:[#allocation4 + $0x5]]  ;;  %p200_p7 = scmp.ge.s32.totalorder %s203_s30, 2  }
  0x26   : >> { %5565 = vst [vmem:[#allocation10_spill] sm:$0xff] %v2720_v13  ;;  %s225_s17 = sld [smem:[#allocation2]]  ;;  %v1072_v26 = vrot.slane %v2773_v23, 1  ;;  %v1075_v30 = vrot.slane %v2785_v25, 1  ;;  %v1284_v34 = vrot.slane %v2773_v23, 2  ;;  %v1285_v38 = vrot.slane %v2780_v24, 2 }
  0x27   : >> { %5566 = vst [vmem:[#allocation11_spill] sm:$0xff] %v2735_v16  ;;  %s2295_s18 = sld [smem:[#allocation2 + $0x1b]]  ;;  %v1287_v39 = vrot.slane %v2785_v25, 2  ;;  %v2883_v48 = vstv %s2787_s10  ;;  %v2886_v49 = vstv %s2789_s11  ;;  %v2896_v52 = vstv %s2795_s13  ;;  %s5577_s13 = smov 126  }
  0x28   : >> { %5567 = vst [vmem:[#allocation12_spill] sm:$0xff] %v2743_v17  ;;  %s2296_s19 = sld [smem:[#allocation2 + $0x36]]  ;;  %v2815_v28 = vsel %vm439_vm0, %v1072_v26, %v1074_v27  ;;  %v2829_v31 = vsel %vm439_vm0, %v1073_v29, %v1075_v30  ;;  %v2833_v32 = vsel %vm439_vm0, %v1074_v27, %v1072_v26  ;;  %v2847_v33 = vsel %vm439_vm0, %v1075_v30, %v1073_v29 }
  0x29   : >> { %291 = vrot.lane.b32.xlu1 %v2677_v2, %s2599_s8  ;;  %287 = vrot.lane.b32.xlu0 %v2680_v3, %s2599_s8  ;;  %5568 = vst [vmem:[#allocation13_spill] sm:$0xff] %v2751_v20  ;;  %s2807_s20 = sld [smem:[#allocation2 + $0x51]]  ;;  %v2880_v47 = vsel %vm652_vm1, %v1284_v34, %v1286_v35  ;;  %v2893_v51 = vsel %vm652_vm1, %v1287_v39, %v1285_v38  ;;  %v2908_v56 = vstv %s2799_s14  ;;  %vm295_vm2 = vcmp.lt.s32.totalorder %v2869_v43, 127 }
  0x2a   : >> { %362 = vrot.lane.b32.xlu2 %v2680_v3, %s5483_s9  ;;  %5569 = vst [vmem:[#allocation14_spill] sm:$0xff] %v2755_v21  ;;  %s2298_s21 = sld [smem:[#allocation2 + $0x6c]]  ;;  %v2905_v55 = vsel %vm652_vm1, %v1285_v38, %v1287_v39  ;;  %v2911_v57 = vstv %s2801_s15  ;;  %v2981_v26 = vsel %vm652_vm1, %v1286_v35, %v1284_v34  ;;  %vm368_vm3 = vcmp.lt.s32.totalorder %v2869_v43, 126 }
  0x2b   : >> { %5570 = vst [vmem:[#allocation15_spill] sm:$0xff] %v2815_v28  ;;  %s2299_s22 = sld [smem:[#allocation2 + $0x87]]  ;;  %v2922_v59 = vstv %s2803_s16 }
  0x2c   : >> { %s2821_s23 = sld [smem:[#allocation2 + $0x1]]  ;;  %5571 = vst [vmem:[#allocation16_spill] sm:$0xff] %v2829_v31  ;;  %v226_v36 = vstv %s225_s17 }
  0x2d   : >> { %s2823_s24 = sld [smem:[#allocation2 + $0x1c]]  ;;  %5572 = vst [vmem:[#allocation17_spill] sm:$0xff] %v2833_v32  ;;  %v2855_v37 = vstv %s2295_s18  ;;  %v228_v44 = vmul.f32 %v226_v36, %v2665_v0  ;;  %v227_v62 = vmul.f32 %v226_v36, %v2668_v1  ;;  %v229_v30 = vmul.f32 %v226_v36, %v2680_v3 }
  0x2e   : >> { %s2825_s25 = sld [smem:[#allocation2 + $0x37]]  ;;  %5573 = vst [vmem:[#allocation18_spill] sm:$0xff] %v2847_v33  ;;  %v246_v40 = vstv %s2296_s19  ;;  %v238_v45 = vmul.f32 %v2855_v37, %v2665_v0  ;;  %v237_v4 = vmul.f32 %v2855_v37, %v2668_v1  ;;  %v230_v38 = vmul.f32 %v226_v36, %v2677_v2 }
  0x2f   : >> { %s2835_s27 = sld [smem:[#allocation2 + $0x52]]  ;;  %v256_v41 = vstv %s2807_s20  ;;  %5574 = vst [vmem:[#allocation19_spill] sm:$0xff] %v2880_v47  ;;  %v248_v50 = vmul.f32 %v246_v40, %v2665_v0  ;;  %v2925_v60 = vadd.f32 %v228_v44, %v2883_v48  ;;  %v247_v6 = vmul.f32 %v246_v40, %v2668_v1 }
  0x30   : >> { %s2837_s28 = sld [smem:[#allocation2 + $0x6d]]  ;;  %v2864_v42 = vstv %s2298_s21  ;;  %5575 = vst [vmem:[#allocation20_spill] sm:$0xff] %v2893_v51  ;;  %v258_v53 = vmul.f32 %v256_v41, %v2665_v0  ;;  %v2928_v61 = vadd.f32 %v238_v45, %v2886_v49  ;;  %v2986_v27 = vadd.f32 %v237_v4, %v2886_v49 }
  0x31   : >> { %366 = vrot.lane.b32.xlu1 %v2677_v2, %s5483_s9  ;;  %364 = vrot.lane.b32.xlu0 %v2665_v0, %s5483_s9  ;;  %s2839_s4 = sld [smem:[#allocation2 + $0x88]]  ;;  %v2874_v46 = vstv %s2299_s22  ;;  %v268_v54 = vmul.f32 %v2864_v42, %v2665_v0  ;;  %5576 = vst [vmem:[#allocation21_spill] sm:$0xff] %v2905_v55  ;;  %v2934_v63 = vadd.f32 %v248_v50, %v2896_v52 }
  0x32   : >> { %504 = vrot.lane.b32.xlu2 %v2700_v8, %s2599_s8  ;;  %s2849_s6 = sld [smem:[#allocation2 + $0x2]]  ;;  %v278_v58 = vmul.f32 %v2874_v46, %v2665_v0  ;;  %v2937_v0 = vstv %s2821_s23  ;;  %v2947_v7 = vadd.f32 %v258_v53, %v2908_v56  ;;  %5578 = vst [vmem:[#allocation22_spill] sm:$0xff] %v2981_v26  ;;  %v2989_v29 = vadd.f32 %v247_v6, %v2896_v52 }
  0x33   : >> { %s2861_s0 = sld [smem:[#allocation2 + $0x38]]  ;;  %v2950_v9 = vadd.f32 %v268_v54, %v2911_v57  ;;  %v2953_v10 = vstv %s2823_s24  ;;  %v240_v34 = vmul.f32 %v2855_v37, %v2677_v2  ;;  %v249_v35 = vmul.f32 %v246_v40, %v2680_v3 }
  0x34   : >> { %s2866_s1 = sld [smem:[#allocation2 + $0x53]]  ;;  %v2956_v14 = vstv %s2825_s25  ;;  %v2961_v15 = vadd.f32 %v278_v58, %v2922_v59  ;;  %v250_v39 = vmul.f32 %v246_v40, %v2677_v2  ;;  %v259_v44 = vmul.f32 %v256_v41, %v2680_v3 }
  0x35   : >> { %s2876_s17 = sld [smem:[#allocation2 + $0x6e]]  ;;  %v2964_v18 = vstv %s2835_s27  ;;  %v260_v45 = vmul.f32 %v256_v41, %v2677_v2  ;;  %v269_v36 = vmul.f32 %v2864_v42, %v2680_v3  ;;  %v270_v50 = vmul.f32 %v2864_v42, %v2677_v2 }
  0x36   : >> { %s2889_s18 = sld [smem:[#allocation2 + $0x89]]  ;;  %v2967_v19 = vstv %s2837_s28  ;;  %v3035_v58 = vadd.f32 %v229_v30, %v2883_v48  ;;  %v3057_v4 = vadd.f32 %v259_v44, %v2908_v56 }
  0x37   : >> { %s2901_s10 = sld [smem:[#allocation2 + $0x3]]  ;;  %v3060_v6 = vadd.f32 %v260_v45, %v2908_v56 }
  0x38   : >> { %s2915_s11 = sld [smem:[#allocation2 + $0x1e]] }
  0x39   : >> { %508 = vrot.lane.b32.xlu1 %v2708_v11, %s2599_s8  ;;  %506 = vrot.lane.b32.xlu0 %v2712_v12, %s2599_s8  ;;  %s2931_s14 = sld [smem:[#allocation2 + $0x39]] }
  0x3a   : >> { %510 = vrot.lane.b32.xlu2 %v2720_v13, %s2599_s8  ;;  %s2944_s15 = sld [smem:[#allocation2 + $0x54]] }
  0x3b   : >> { %s2958_s16 = sld [smem:[#allocation2 + $0x6f]] }
  0x3c   : >> { %s2970_s19 = sld [smem:[#allocation2 + $0x8a]] }
  0x3d   : >> { %s2983_s20 = sld [smem:[#allocation2 + $0x4]] }
  0x3e   : >> { %s2993_s21 = sld [smem:[#allocation2 + $0x1f]] }
  0x3f   : >> { %s3001_s22 = sld [smem:[#allocation2 + $0x3a]] }
  0x40   : >> { %s3009_s23 = sld [smem:[#allocation2 + $0x55]] }
  0x41   : >> { %578 = vrot.lane.b32.xlu1 %v2712_v12, %s5483_s9  ;;  %576 = vrot.lane.b32.xlu0 %v2700_v8, %s5483_s9  ;;  %s3026_s24 = sld [smem:[#allocation2 + $0x70]]  ;;  %v3103_v44 = vstv %s2958_s16 }
  0x42   : >> { %580 = vrot.lane.b32.xlu2 %v2708_v11, %s5483_s9  ;;  %s3042_s25 = sld [smem:[#allocation2 + $0x8b]]  ;;  %5581 = vst [vmem:[#allocation25_spill] sm:$0xff] %v3103_v44  ;;  %v3106_v45 = vstv %s2970_s19 }
  0x43   : >> { %5582 = vst [vmem:[#allocation26_spill] sm:$0xff] %v3106_v45  ;;  %s3480_s27 = sld [smem:[#allocation2 + $0x71]] }
  0x44   : >> { %s3486_s28 = sld [smem:[#allocation2 + $0x8c]] }
  0x45   : >> { %s3619_s16 = sld [smem:[#allocation2 + $0x22]] }
  0x46   : >> { %s3621_s19 = sld [smem:[#allocation2 + $0x3d]] }
  0x49   : >> { %717 = vrot.lane.b32.xlu1 %v2735_v16, %s2599_s8  ;;  %582 = vrot.lane.b32.xlu0 %v2720_v13, %s5483_s9 }
  0x4a   : >> { %719 = vrot.lane.b32.xlu2 %v2743_v17, %s2599_s8 }
  0x51   : >> { %723 = vrot.lane.b32.xlu1 %v2751_v20, %s2599_s8  ;;  %721 = vrot.lane.b32.xlu0 %v2755_v21, %s2599_s8 }
  0x52   : >> { %789 = vrot.lane.b32.xlu2 %v2735_v16, %s5483_s9 }
  0x59   : >> { %793 = vrot.lane.b32.xlu1 %v2755_v21, %s5483_s9  ;;  %791 = vrot.lane.b32.xlu0 %v2743_v17, %s5483_s9  ;;  %v3140_v21 = vstv %s3042_s25  ;;  %s3775_s25 = sld [smem:[#allocation2 + $0x3e]] }
  0x5a   : >> { %795 = vrot.lane.b32.xlu2 %v2751_v20, %s5483_s9  ;;  %5591 = vst [vmem:[#allocation35_spill] sm:$0xff] %v3140_v21 }
  0x61   : >> { %930 = vrot.lane.b32.xlu1 %v2770_v22, %s2599_s8  ;;  %928 = vrot.lane.b32.xlu0 %v2773_v23, %s2599_s8 }
  0x62   : >> { %932 = vrot.lane.b32.xlu2 %v2780_v24, %s2599_s8 }
  0x69   : >> { %1000 = vrot.lane.b32.xlu1 %v2773_v23, %s5483_s9  ;;  %934 = vrot.lane.b32.xlu0 %v2785_v25, %s2599_s8  ;;  %v2973_v23 = vadd.f32 %v227_v62, %v2883_v48  ;;  %v3038_v62 = vadd.f32 %v230_v38, %v2883_v48  ;;  %v3054_v48 = vadd.f32 %v250_v39, %v2896_v52  ;;  %v3084_v38 = vstv %s2866_s1  ;;  %s3450_s1 = sld [smem:[#allocation2 + $0x20]] }
  0x6a   : >> { %1002 = vrot.lane.b32.xlu2 %v2770_v22, %s5483_s9  ;;  %v257_v22 = vmul.f32 %v256_v41, %v2668_v1  ;;  %v279_v41 = vmul.f32 %v2874_v46, %v2680_v3  ;;  %v3100_v39 = vstv %s2944_s15  ;;  %s3610_s15 = sld [smem:[#allocation2 + $0x7]] }
  0x6b   : >> { %v3160_v21 = vmul.f32 %v3100_v39, %v2708_v11 }
  0x6c   : >> { %v3020_v40 = vadd.f32 %v257_v22, %v2908_v56  ;;  %v3066_v22 = vadd.f32 %v270_v50, %v2911_v57  ;;  %v3081_v56 = vstv %s2861_s0  ;;  %s3440_s0 = sld [smem:[#allocation2 + $0x5]] }
  0x6d   : >> { %5596 = vst [vmem:[#allocation40_spill] sm:$0xff] %v3160_v21 }
  0x71   : >> { %1006 = vrot.lane.b32.xlu1 %v2785_v25, %s5483_s9  ;;  %1004 = vrot.lane.b32.xlu0 %v2780_v24, %s5483_s9  ;;  %s2857_s9 = sld [smem:[#allocation2 + $0x1d]]  ;;  %v267_v24 = vmul.f32 %v2864_v42, %v2668_v1  ;;  %v277_v25 = vmul.f32 %v2874_v46, %v2668_v1  ;;  %v239_v1 = vmul.f32 %v2855_v37, %v2680_v3  ;;  %v3017_v37 = vstv %s2839_s4 }
  0x72   : >> { %1140 = vrot.lane.b32.xlu2 %v2815_v28, %s2599_s8  ;;  %v280_v42 = vmul.f32 %v2874_v46, %v2677_v2  ;;  %v3048_v3 = vadd.f32 %v240_v34, %v2886_v49  ;;  %v3051_v46 = vadd.f32 %v249_v35, %v2896_v52  ;;  %v445_v34 = vstv %s2901_s10  ;;  %s3538_s4 = sld [smem:[#allocation2 + $0x6]] }
  0x73   : >> { %v3029_v53 = vadd.f32 %v267_v24, %v2911_v57  ;;  %v3032_v54 = vadd.f32 %v277_v25, %v2922_v59  ;;  %v3045_v2 = vadd.f32 %v239_v1, %v2886_v49  ;;  %v3063_v49 = vadd.f32 %v269_v36, %v2911_v57  ;;  %s3572_s10 = sld [smem:[#allocation2 + $0x57]] }
  0x74   : >> { %v3069_v24 = vadd.f32 %v279_v41, %v2922_v59  ;;  %v3072_v52 = vadd.f32 %v280_v42, %v2922_v59  ;;  %v3075_v25 = vstv %s2849_s6  ;;  %v3087_v1 = vstv %s2876_s17  ;;  %s3460_s6 = sld [smem:[#allocation2 + $0x3b]] }
  0x75   : >> { %5579 = vst [vmem:[#allocation23_spill] sm:$0xff] %v3087_v1  ;;  %v3090_v57 = vstv %s2889_s18  ;;  %v3094_v35 = vstv %s2915_s11  ;;  %v3097_v59 = vstv %s2931_s14  ;;  %v3109_v36 = vstv %s2983_s20  ;;  %s3552_s17 = sld [smem:[#allocation2 + $0x21]] }
  0x76   : >> { %5580 = vst [vmem:[#allocation24_spill] sm:$0xff] %v3090_v57  ;;  %v3112_v50 = vmul.f32 %v445_v34, %v2700_v8  ;;  %v3119_v41 = vstv %s2993_s21  ;;  %v3122_v42 = vstv %s3001_s22  ;;  %v3144_v16 = vmul.f32 %v3094_v35, %v2708_v11  ;;  %s3566_s18 = sld [smem:[#allocation2 + $0x3c]] }
  0x77   : >> { %v3078_v30 = vstv %s2857_s9  ;;  %5583 = vst [vmem:[#allocation27_spill] sm:$0xff] %v3109_v36  ;;  %v3148_v5 = vmul.f32 %v3097_v59, %v2700_v8  ;;  %v3172_v36 = vmul.f32 %v3103_v44, %v2708_v11  ;;  %s3470_s9 = sld [smem:[#allocation2 + $0x56]] }
  0x78   : >> { %5584 = vst [vmem:[#allocation28_spill] sm:$0xff] %v3112_v50  ;;  %s3578_s11 = sld [smem:[#allocation2 + $0x72]] }
  0x79   : >> { %1144 = vrot.lane.b32.xlu1 %v2829_v31, %s2599_s8  ;;  %1142 = vrot.lane.b32.xlu0 %v2833_v32, %s2599_s8  ;;  %5585 = vst [vmem:[#allocation29_spill] sm:$0xff] %v3119_v41  ;;  %v3168_v41 = vmul.f32 %v3103_v44, %v2700_v8  ;;  %s3592_s14 = sld [smem:[#allocation2 + $0x8d]] }
  0x7a   : >> { %1146 = vrot.lane.b32.xlu2 %v2847_v33, %s2599_s8  ;;  %5586 = vst [vmem:[#allocation30_spill] sm:$0xff] %v3122_v42  ;;  %v3152_v42 = vmul.f32 %v3097_v59, %v2708_v11  ;;  %s3628_s20 = sld [smem:[#allocation2 + $0x58]] }
  0x7b   : >> { %5592 = vst [vmem:[#allocation36_spill] sm:$0xff] %v3144_v16  ;;  %s3634_s21 = sld [smem:[#allocation2 + $0x73]] }
  0x7c   : >> { %5593 = vst [vmem:[#allocation37_spill] sm:$0xff] %v3148_v5  ;;  %v3194_v50 = vpop.permute.xlu2 %360  ;;  %s3640_s22 = sld [smem:[#allocation2 + $0x8e]] }
  0x7d   : >> { %5594 = vst [vmem:[#allocation38_spill] sm:$0xff] %v3152_v42 }
  0x7e   : >> { %5597 = vst [vmem:[#allocation41_spill] sm:$0xff] %v3168_v41 }
  0x7f   : >> { %5598 = vst [vmem:[#allocation42_spill] sm:$0xff] %v3172_v36 }
  0x81   : >> { %1214 = vrot.lane.b32.xlu1 %v2833_v32, %s5577_s13  ;;  %1212 = vrot.lane.b32.xlu0 %v2815_v28, %s5577_s13  ;;  %v3129_v32 = vmul.f32 %v3094_v35, %v2700_v8  ;;  %v3137_v28 = vstv %s3026_s24  ;;  %s3769_s24 = sld [smem:[#allocation2 + $0x23]] }
  0x82   : >> { %1216 = vrot.lane.b32.xlu2 %v2829_v31, %s5577_s13  ;;  %v3134_v31 = vstv %s3009_s23  ;;  %5590 = vst [vmem:[#allocation34_spill] sm:$0xff] %v3137_v28  ;;  %s3762_s23 = sld [smem:[#allocation2 + $0x8]] }
  0x83   : >> { %5588 = vst [vmem:[#allocation32_spill] sm:$0xff] %v3129_v32 }
  0x84   : >> { %5589 = vst [vmem:[#allocation33_spill] sm:$0xff] %v3134_v31 }
  0x89   : >> { %1352 = vrot.lane.b32.xlu1 %v2880_v47, %s2599_s8  ;;  %1218 = vrot.lane.b32.xlu0 %v2847_v33, %s5577_s13  ;;  %v3125_v33 = vmul.f32 %v445_v34, %v2708_v11 }
  0x8a   : >> { %1354 = vrot.lane.b32.xlu2 %v2981_v26, %s2599_s8 }
  0x8b   : >> { %5587 = vst [vmem:[#allocation31_spill] sm:$0xff] %v3125_v33 }
  0x91   : >> { %1358 = vrot.lane.b32.xlu1 %v2893_v51, %s2599_s8  ;;  %1356 = vrot.lane.b32.xlu0 %v2905_v55, %s2599_s8 }
  0x92   : >> { %1424 = vrot.lane.b32.xlu2 %v2880_v47, %s5577_s13  ;;  %v3156_v47 = vmul.f32 %v3100_v39, %v2700_v8 }
  0x93   : >> { %v290_v20 = vpop.permute.xlu1 %289  ;;  %v286_v17 = vpop.permute.xlu0 %285 }
  0x94   : >> { %5595 = vst [vmem:[#allocation39_spill] sm:$0xff] %v3156_v47  ;;  %v296_v28 = vsel %vm295_vm2, %v286_v17, %v290_v20  ;;  %v298_v31 = vsel %vm295_vm2, %v290_v20, %v286_v17 }
  0x95   : >> { %v302_v47 = vmul.f32 %v2937_v0, %v296_v28  ;;  %v303_v42 = vmul.f32 %v2937_v0, %v298_v31  ;;  %v312_v21 = vmul.f32 %v2953_v10, %v296_v28  ;;  %v313_v5 = vmul.f32 %v2953_v10, %v298_v31 }
  0x96   : >> { %v322_v16 = vmul.f32 %v2956_v14, %v296_v28  ;;  %v323_v17 = vmul.f32 %v2956_v14, %v298_v31  ;;  %v332_v20 = vmul.f32 %v2964_v18, %v296_v28  ;;  %v333_v41 = vmul.f32 %v2964_v18, %v298_v31 }
  0x97   : >> { %v3183_v32 = vadd.f32 %v302_v47, %v2973_v23  ;;  %v3186_v44 = vadd.f32 %v303_v42, %v2925_v60  ;;  %v3189_v36 = vadd.f32 %v312_v21, %v2986_v27  ;;  %v3192_v33 = vadd.f32 %v313_v5, %v2928_v61 }
  0x98   : >> { %v3197_v57 = vadd.f32 %v322_v16, %v2989_v29  ;;  %v3200_v1 = vadd.f32 %v323_v17, %v2934_v63  ;;  %v3203_v47 = vadd.f32 %v332_v20, %v3020_v40  ;;  %v3206_v60 = vadd.f32 %v333_v41, %v2947_v7 }
  0x99   : >> { %v342_v21 = vmul.f32 %v2967_v19, %v296_v28  ;;  %v343_v5 = vmul.f32 %v2967_v19, %v298_v31  ;;  %v352_v61 = vmul.f32 %v3017_v37, %v296_v28  ;;  %v353_v16 = vmul.f32 %v3017_v37, %v298_v31  ;;  %1428 = vrot.lane.b32.xlu1 %v2905_v55, %s5577_s13  ;;  %v3273_v55 = vld [vmem:[%s2662_s7 + $0x80] sm:$0xff] }
  0x9a   : >> { %1426 = vrot.lane.b32.xlu0 %v2981_v26, %s5577_s13  ;;  %v3219_v63 = vmul.f32 %v3106_v45, %v2700_v8  ;;  %v3223_v7 = vmul.f32 %v3106_v45, %v2708_v11  ;;  %v3226_v23 = vmul.f32 %v445_v34, %v2712_v12  ;;  %v3229_v28 = vmul.f32 %v445_v34, %v2720_v13 }
  0x9b   : >> { %v3232_v31 = vadd.f32 %v342_v21, %v3029_v53  ;;  %v3235_v27 = vadd.f32 %v343_v5, %v2950_v9  ;;  %v3238_v29 = vadd.f32 %v352_v61, %v3032_v54  ;;  %v3241_v8 = vadd.f32 %v353_v16, %v2961_v15  ;;  %v292_v11 = vpop.permute.xlu1 %291  ;;  %v288_v40 = vpop.permute.xlu0 %287  ;;  %1430 = vrot.lane.b32.xlu2 %v2893_v51, %s5577_s13  ;;  %v3266_v16 = vld [vmem:[%s2662_s7 + $0xa0] sm:$0xff] }
  0x9c   : >> { %v297_v34 = vsel %vm295_vm2, %v288_v40, %v292_v11  ;;  %v299_v53 = vsel %vm295_vm2, %v292_v11, %v288_v40  ;;  %v3251_v9 = vmul.f32 %v3094_v35, %v2712_v12  ;;  %v3255_v15 = vmul.f32 %v3094_v35, %v2720_v13  ;;  %5599 = vst [vmem:[#allocation43_spill] sm:$0xff] %v3266_v16 }
  0x9d   : >> { %v304_v54 = vmul.f32 %v2937_v0, %v297_v34  ;;  %v305_v41 = vmul.f32 %v2937_v0, %v299_v53  ;;  %v314_v42 = vmul.f32 %v2953_v10, %v297_v34  ;;  %v315_v17 = vmul.f32 %v2953_v10, %v299_v53  ;;  %5600 = vst [vmem:[#allocation44_spill] sm:$0xff] %v3273_v55 }
  0x9e   : >> { %v324_v20 = vmul.f32 %v2956_v14, %v297_v34  ;;  %v325_v21 = vmul.f32 %v2956_v14, %v299_v53  ;;  %v334_v5 = vmul.f32 %v2964_v18, %v297_v34  ;;  %v335_v61 = vmul.f32 %v2964_v18, %v299_v53 }
  0x9f   : >> { %v308_v35 = vadd.f32 %v304_v54, %v3035_v58  ;;  %v309_v11 = vadd.f32 %v305_v41, %v3038_v62  ;;  %v318_v0 = vadd.f32 %v314_v42, %v3045_v2  ;;  %v319_v40 = vadd.f32 %v315_v17, %v3048_v3  ;;  %v363_v3 = vpop.permute.xlu2 %362  ;;  %v3322_v17 = vld [vmem:[%s2662_s7 + $0x88] sm:$0xff] }
  0xa0   : >> { %v328_v10 = vadd.f32 %v324_v20, %v3051_v46  ;;  %v329_v14 = vadd.f32 %v325_v21, %v3054_v48  ;;  %v338_v51 = vadd.f32 %v334_v5, %v3057_v4  ;;  %v339_v18 = vadd.f32 %v335_v61, %v3060_v6  ;;  %5602 = vst [vmem:[#allocation46_spill] sm:$0xff] %v3322_v17 }
  0xa1   : >> { %v344_v26 = vmul.f32 %v2967_v19, %v297_v34  ;;  %v345_v58 = vmul.f32 %v2967_v19, %v299_v53  ;;  %v354_v62 = vmul.f32 %v3017_v37, %v297_v34  ;;  %v355_v2 = vmul.f32 %v3017_v37, %v299_v53  ;;  %1565 = vrot.lane.b32.xlu1 %v3266_v16, %s2599_s8 }
  0xa2   : >> { %1563 = vrot.lane.b32.xlu0 %v3273_v55, %s2599_s8  ;;  %v3289_v46 = vmul.f32 %v3097_v59, %v2712_v12  ;;  %v3293_v48 = vmul.f32 %v3097_v59, %v2720_v13  ;;  %v3297_v19 = vmul.f32 %v3100_v39, %v2712_v12  ;;  %v3301_v37 = vmul.f32 %v3100_v39, %v2720_v13  ;;  %v5604_v12 = vld [vmem:[#allocation23_spill] sm:$0xff] }
  0xa3   : >> { %v348_v4 = vadd.f32 %v344_v26, %v3063_v49  ;;  %v349_v6 = vadd.f32 %v345_v58, %v3066_v22  ;;  %v358_v34 = vadd.f32 %v354_v62, %v3069_v24  ;;  %v359_v53 = vadd.f32 %v355_v2, %v3072_v52  ;;  %v367_v54 = vpop.permute.xlu1 %366  ;;  %v365_v59 = vpop.permute.xlu0 %364  ;;  %1567 = vrot.lane.b32.xlu2 %v3322_v17, %s2599_s8 }
  0xa4   : >> { %5601 = vst [vmem:[#allocation45_spill] sm:$0xff] %v3301_v37  ;;  %v370_v41 = vsel %vm368_vm3, %v363_v3, %v367_v54  ;;  %v372_v42 = vsel %vm368_vm3, %v367_v54, %v363_v3  ;;  %v369_v39 = vsel %vm368_vm3, %v3194_v50, %v365_v59  ;;  %v371_v26 = vsel %vm368_vm3, %v365_v59, %v3194_v50  ;;  %v3337_v3 = vld [vmem:[%s2662_s7 + $0xa8] sm:$0xff] }
  0xa5   : >> { %v377_v49 = vmul.f32 %v3075_v25, %v370_v41  ;;  %v378_v22 = vmul.f32 %v3075_v25, %v372_v42  ;;  %v387_v24 = vmul.f32 %v3078_v30, %v370_v41  ;;  %v388_v52 = vmul.f32 %v3078_v30, %v372_v42  ;;  %5603 = vst [vmem:[#allocation47_spill] sm:$0xff] %v3337_v3 }
  0xa6   : >> { %v397_v20 = vmul.f32 %v3081_v56, %v370_v41  ;;  %v398_v21 = vmul.f32 %v3081_v56, %v372_v42  ;;  %v407_v5 = vmul.f32 %v3084_v38, %v370_v41  ;;  %v408_v61 = vmul.f32 %v3084_v38, %v372_v42 }
  0xa7   : >> { %v3330_v50 = vadd.f32 %v377_v49, %v308_v35  ;;  %v382_v58 = vadd.f32 %v378_v22, %v309_v11  ;;  %v3332_v62 = vadd.f32 %v387_v24, %v318_v0  ;;  %v3334_v2 = vadd.f32 %v388_v52, %v319_v40  ;;  %v5605_v49 = vld [vmem:[#allocation24_spill] sm:$0xff] }
  0xa8   : >> { %v3339_v54 = vadd.f32 %v397_v20, %v328_v10  ;;  %v3341_v59 = vadd.f32 %v398_v21, %v329_v14  ;;  %v3343_v45 = vadd.f32 %v407_v5, %v338_v51  ;;  %v3345_v13 = vadd.f32 %v408_v61, %v339_v18 }
  0xa9   : >> { %v417_v37 = vmul.f32 %v5604_v12, %v370_v41  ;;  %v418_v35 = vmul.f32 %v5604_v12, %v372_v42  ;;  %v427_v11 = vmul.f32 %v5605_v49, %v370_v41  ;;  %v428_v0 = vmul.f32 %v5605_v49, %v372_v42  ;;  %1635 = vrot.lane.b32.xlu1 %v3273_v55, %s5577_s13 }
  0xaa   : >> { %v375_v40 = vmul.f32 %v3075_v25, %v369_v39  ;;  %v376_v10 = vmul.f32 %v3075_v25, %v371_v26  ;;  %v385_v51 = vmul.f32 %v3078_v30, %v369_v39  ;;  %v386_v14 = vmul.f32 %v3078_v30, %v371_v26  ;;  %1569 = vrot.lane.b32.xlu0 %v3337_v3, %s2599_s8 }
  0xab   : >> { %v3359_v18 = vadd.f32 %v417_v37, %v348_v4  ;;  %v3361_v22 = vadd.f32 %v418_v35, %v349_v6  ;;  %v3363_v41 = vadd.f32 %v427_v11, %v358_v34  ;;  %v3365_v42 = vadd.f32 %v428_v0, %v359_v53  ;;  %1637 = vrot.lane.b32.xlu2 %v3266_v16, %s5577_s13  ;;  %v509_v61 = vpop.permute.xlu1 %508  ;;  %v5606_v35 = vld [vmem:[#allocation28_spill] sm:$0xff]  ;;  %v5607_v11 = vld [vmem:[#allocation31_spill] sm:$0xff] }
  0xac   : >> { %v379_v24 = vadd.f32 %v375_v40, %v3183_v32  ;;  %v380_v52 = vadd.f32 %v376_v10, %v3186_v44  ;;  %v389_v25 = vadd.f32 %v385_v51, %v3189_v36  ;;  %v390_v20 = vadd.f32 %v386_v14, %v3192_v33  ;;  %v5608_v0 = vld [vmem:[#allocation32_spill] sm:$0xff]  ;;  %v5611_v10 = vld [vmem:[#allocation38_spill] sm:$0xff]  ;;  %v5612_v51 = vld [vmem:[#allocation39_spill] sm:$0xff] }
  0xad   : >> { %v395_v30 = vmul.f32 %v3081_v56, %v369_v39  ;;  %v396_v21 = vmul.f32 %v3081_v56, %v371_v26  ;;  %v405_v37 = vmul.f32 %v3084_v38, %v369_v39  ;;  %v406_v4 = vmul.f32 %v3084_v38, %v371_v26  ;;  %v505_v38 = vpop.permute.xlu2 %504  ;;  %v5609_v40 = vld [vmem:[#allocation36_spill] sm:$0xff] }
  0xae   : >> { %v415_v6 = vmul.f32 %v5604_v12, %v369_v39  ;;  %v416_v34 = vmul.f32 %v5604_v12, %v371_v26  ;;  %v425_v32 = vmul.f32 %v5605_v49, %v369_v39  ;;  %v426_v44 = vmul.f32 %v5605_v49, %v371_v26  ;;  %v5613_v14 = vld [vmem:[#allocation40_spill] sm:$0xff] }
  0xaf   : >> { %v399_v33 = vadd.f32 %v395_v30, %v3197_v57  ;;  %v400_v36 = vadd.f32 %v396_v21, %v3200_v1  ;;  %v409_v56 = vadd.f32 %v405_v37, %v3203_v47  ;;  %v410_v53 = vadd.f32 %v406_v4, %v3206_v60  ;;  %v5610_v60 = vld [vmem:[#allocation37_spill] sm:$0xff]  ;;  %v5615_v30 = vld [vmem:[#allocation42_spill] sm:$0xff] }
  0xb0   : >> { %v419_v5 = vadd.f32 %v415_v6, %v3232_v31  ;;  %v420_v12 = vadd.f32 %v416_v34, %v3235_v27  ;;  %v429_v39 = vadd.f32 %v425_v32, %v3238_v29  ;;  %v430_v26 = vadd.f32 %v426_v44, %v3241_v8  ;;  %v5616_v32 = vld [vmem:[#allocation27_spill] sm:$0xff] }
  0xb1   : >> { %v450_v49 = vadd.f32 %v5606_v35, %v379_v24  ;;  %v451_v57 = vadd.f32 %v5607_v11, %v380_v52  ;;  %v460_v1 = vadd.f32 %v5608_v0, %v389_v25  ;;  %v461_v47 = vadd.f32 %v5609_v40, %v390_v20  ;;  %1641 = vrot.lane.b32.xlu1 %v3337_v3, %s5577_s13  ;;  %v5614_v24 = vld [vmem:[#allocation41_spill] sm:$0xff]  ;;  %v5620_v40 = vld [vmem:[#allocation34_spill] sm:$0xff] }
  0xb2   : >> { %v470_v31 = vadd.f32 %v5610_v60, %v399_v33  ;;  %v471_v27 = vadd.f32 %v5611_v10, %v400_v36  ;;  %v480_v29 = vadd.f32 %v5612_v51, %v409_v56  ;;  %v481_v8 = vadd.f32 %v5613_v14, %v410_v53  ;;  %1639 = vrot.lane.b32.xlu0 %v3322_v17, %s5577_s13  ;;  %v5617_v36 = vld [vmem:[#allocation29_spill] sm:$0xff]  ;;  %v5621_v10 = vld [vmem:[#allocation35_spill] sm:$0xff] }
  0xb3   : >> { %v490_v52 = vadd.f32 %v5614_v24, %v419_v5  ;;  %v491_v25 = vadd.f32 %v5615_v30, %v420_v12  ;;  %v500_v20 = vadd.f32 %v3219_v63, %v429_v39  ;;  %v501_v21 = vadd.f32 %v3223_v7, %v430_v26  ;;  %v5618_v7 = vld [vmem:[#allocation30_spill] sm:$0xff]  ;;  %v5619_v12 = vld [vmem:[#allocation33_spill] sm:$0xff] }
  0xb4   : >> { %v512_v37 = vsel %vm295_vm2, %v505_v38, %v509_v61  ;;  %v514_v4 = vsel %vm295_vm2, %v509_v61, %v505_v38  ;;  %v452_v6 = vadd.f32 %v3226_v23, %v3330_v50  ;;  %v453_v34 = vadd.f32 %v3229_v28, %v382_v58  ;;  %v507_v58 = vpop.permute.xlu0 %506 }
  0xb5   : >> { %v518_v44 = vmul.f32 %v5616_v32, %v512_v37  ;;  %v519_v33 = vmul.f32 %v5616_v32, %v514_v4  ;;  %v528_v56 = vmul.f32 %v5617_v36, %v512_v37  ;;  %v529_v63 = vmul.f32 %v5617_v36, %v514_v4  ;;  %v511_v51 = vpop.permute.xlu2 %510 }
  0xb6   : >> { %v538_v53 = vmul.f32 %v5618_v7, %v512_v37  ;;  %v539_v5 = vmul.f32 %v5618_v7, %v514_v4  ;;  %v548_v39 = vmul.f32 %v5619_v12, %v512_v37  ;;  %v549_v38 = vmul.f32 %v5619_v12, %v514_v4 }
  0xb7   : >> { %v3420_v26 = vadd.f32 %v518_v44, %v450_v49  ;;  %v3422_v23 = vadd.f32 %v519_v33, %v451_v57  ;;  %v3424_v28 = vadd.f32 %v528_v56, %v460_v1  ;;  %v3426_v50 = vadd.f32 %v529_v63, %v461_v47 }
  0xb8   : >> { %v3428_v61 = vadd.f32 %v538_v53, %v470_v31  ;;  %v3430_v35 = vadd.f32 %v539_v5, %v471_v27  ;;  %v3432_v11 = vadd.f32 %v548_v39, %v480_v29  ;;  %v3434_v0 = vadd.f32 %v549_v38, %v481_v8 }
  0xb9   : >> { %v558_v60 = vmul.f32 %v5620_v40, %v512_v37  ;;  %v559_v49 = vmul.f32 %v5620_v40, %v514_v4  ;;  %v568_v57 = vmul.f32 %v5621_v10, %v512_v37  ;;  %v569_v1 = vmul.f32 %v5621_v10, %v514_v4 }
  0xba   : >> { %v462_v47 = vadd.f32 %v3251_v9, %v3332_v62  ;;  %v463_v31 = vadd.f32 %v3255_v15, %v3334_v2  ;;  %v472_v27 = vadd.f32 %v3289_v46, %v3339_v54  ;;  %v473_v29 = vadd.f32 %v3293_v48, %v3341_v59  ;;  %v5622_v15 = vld [vmem:[#allocation45_spill] sm:$0xff]  ;;  %v5625_v54 = vld [vmem:[#allocation10_spill] sm:$0xff] }
  0xbb   : >> { %v3452_v14 = vadd.f32 %v558_v60, %v490_v52  ;;  %v3454_v8 = vadd.f32 %v559_v49, %v491_v25  ;;  %v3456_v24 = vadd.f32 %v568_v57, %v500_v20  ;;  %v3458_v30 = vadd.f32 %v569_v1, %v501_v21  ;;  %v5623_v62 = vld [vmem:[#allocation9_spill] sm:$0xff]  ;;  %v5626_v52 = vld [vmem:[#allocation26_spill] sm:$0xff] }
  0xbc   : >> { %v482_v9 = vadd.f32 %v3297_v19, %v3343_v45  ;;  %v483_v46 = vadd.f32 %v5622_v15, %v3345_v13  ;;  %v5624_v48 = vld [vmem:[#allocation25_spill] sm:$0xff]  ;;  %v498_v25 = vmul.f32 %v5626_v52, %v5623_v62  ;;  %v499_v20 = vmul.f32 %v5626_v52, %v5625_v54  ;;  %v577_v38 = vpop.permute.xlu0 %576 }
  0xbd   : >> { %v488_v2 = vmul.f32 %v5624_v48, %v5623_v62  ;;  %v489_v59 = vmul.f32 %v5624_v48, %v5625_v54  ;;  %v513_v45 = vsel %vm295_vm2, %v507_v58, %v511_v51  ;;  %v515_v13 = vsel %vm295_vm2, %v511_v51, %v507_v58  ;;  %v581_v57 = vpop.permute.xlu2 %580  ;;  %v579_v48 = vpop.permute.xlu1 %578 }
  0xbe   : >> { %v520_v37 = vmul.f32 %v5616_v32, %v513_v45  ;;  %v521_v4 = vmul.f32 %v5616_v32, %v515_v13  ;;  %v502_v44 = vadd.f32 %v498_v25, %v3363_v41  ;;  %v503_v33 = vadd.f32 %v499_v20, %v3365_v42 }
  0xbf   : >> { %v492_v19 = vadd.f32 %v488_v2, %v3359_v18  ;;  %v493_v21 = vadd.f32 %v489_v59, %v3361_v22  ;;  %v530_v56 = vmul.f32 %v5617_v36, %v513_v45  ;;  %v531_v63 = vmul.f32 %v5617_v36, %v515_v13 }
  0xc0   : >> { %v3492_v53 = vadd.f32 %v520_v37, %v452_v6  ;;  %v3494_v5 = vadd.f32 %v521_v4, %v453_v34  ;;  %v540_v18 = vmul.f32 %v5618_v7, %v513_v45  ;;  %v541_v22 = vmul.f32 %v5618_v7, %v515_v13 }
  0xc1   : >> { %v3498_v39 = vadd.f32 %v530_v56, %v462_v47  ;;  %v3500_v32 = vadd.f32 %v531_v63, %v463_v31  ;;  %v550_v41 = vmul.f32 %v5619_v12, %v513_v45  ;;  %v551_v42 = vmul.f32 %v5619_v12, %v515_v13 }
  0xc2   : >> { %v3504_v6 = vadd.f32 %v540_v18, %v472_v27  ;;  %v3506_v34 = vadd.f32 %v541_v22, %v473_v29  ;;  %v560_v36 = vmul.f32 %v5620_v40, %v513_v45  ;;  %v561_v7 = vmul.f32 %v5620_v40, %v515_v13 }
  0xc3   : >> { %v3510_v58 = vadd.f32 %v550_v41, %v482_v9  ;;  %v3512_v60 = vadd.f32 %v551_v42, %v483_v46  ;;  %v570_v49 = vmul.f32 %v5621_v10, %v513_v45  ;;  %v571_v12 = vmul.f32 %v5621_v10, %v515_v13 }
  0xc4   : >> { %v3516_v1 = vadd.f32 %v560_v36, %v492_v19  ;;  %v3518_v51 = vadd.f32 %v561_v7, %v493_v21  ;;  %v589_v47 = vstv %s3440_s0  ;;  %v599_v31 = vstv %s3450_s1  ;;  %v583_v63 = vpop.permute.xlu0 %582  ;;  %s3781_s0 = sld [smem:[#allocation2 + $0x59]] }
  0xc5   : >> { %v3522_v27 = vadd.f32 %v570_v49, %v502_v44  ;;  %v3524_v29 = vadd.f32 %v571_v12, %v503_v33  ;;  %v609_v40 = vstv %s3460_s6  ;;  %v619_v9 = vstv %s3470_s9  ;;  %s3789_s1 = sld [smem:[#allocation2 + $0x74]] }
  0xc6   : >> { %v3529_v15 = vstv %s3480_s27  ;;  %v3532_v46 = vstv %s3486_s28  ;;  %v584_v10 = vsel %vm368_vm3, %v577_v38, %v581_v57  ;;  %v586_v62 = vsel %vm368_vm3, %v581_v57, %v577_v38  ;;  %s3797_s6 = sld [smem:[#allocation2 + $0x8f]] }
  0xc7   : >> { %v590_v2 = vmul.f32 %v589_v47, %v584_v10  ;;  %v591_v54 = vmul.f32 %v589_v47, %v586_v62  ;;  %v600_v59 = vmul.f32 %v599_v31, %v584_v10  ;;  %v601_v52 = vmul.f32 %v599_v31, %v586_v62  ;;  %s3848_s9 = sld [smem:[#allocation2 + $0x9]] }
  0xc8   : >> { %v610_v25 = vmul.f32 %v609_v40, %v584_v10  ;;  %v611_v20 = vmul.f32 %v609_v40, %v586_v62  ;;  %v620_v45 = vmul.f32 %v619_v9, %v584_v10  ;;  %v621_v13 = vmul.f32 %v619_v9, %v586_v62  ;;  %s3858_s27 = sld [smem:[#allocation2 + $0x24]] }
  0xc9   : >> { %v3541_v19 = vadd.f32 %v590_v2, %v3420_v26  ;;  %v3544_v21 = vadd.f32 %v591_v54, %v3422_v23  ;;  %v3547_v37 = vadd.f32 %v600_v59, %v3424_v28  ;;  %v3550_v4 = vadd.f32 %v601_v52, %v3426_v50  ;;  %s3862_s28 = sld [smem:[#allocation2 + $0x3f]] }
  0xca   : >> { %v3555_v44 = vadd.f32 %v610_v25, %v3428_v61  ;;  %v3558_v33 = vadd.f32 %v611_v20, %v3430_v35  ;;  %v3561_v26 = vadd.f32 %v620_v45, %v3432_v11  ;;  %v3564_v23 = vadd.f32 %v621_v13, %v3434_v0 }
  0xcb   : >> { %v630_v28 = vmul.f32 %v3529_v15, %v584_v10  ;;  %v631_v50 = vmul.f32 %v3529_v15, %v586_v62  ;;  %v640_v56 = vmul.f32 %v3532_v46, %v584_v10  ;;  %v641_v61 = vmul.f32 %v3532_v46, %v586_v62 }
  0xcc   : >> { %v5528_v35 = vrot.slane %v3322_v17, 1  ;;  %v5527_v11 = vrot.slane %v3337_v3, 1  ;;  %v1707_v0 = vrot.slane %v3273_v55, 1  ;;  %v1709_v18 = vrot.slane %v3266_v16, 1  ;;  %v720_v3 = vpop.permute.xlu2 %719 }
  0xcd   : >> { %v3581_v22 = vadd.f32 %v630_v28, %v3452_v14  ;;  %v3584_v41 = vadd.f32 %v631_v50, %v3454_v8  ;;  %v3587_v42 = vadd.f32 %v640_v56, %v3456_v24  ;;  %v3590_v38 = vadd.f32 %v641_v61, %v3458_v30 }
  0xce   : >> { %v3600_v7 = vsel %vm439_vm0, %v5528_v35, %v5527_v11  ;;  %v3604_v14 = vsel %vm439_vm0, %v1709_v18, %v1707_v0  ;;  %v585_v8 = vsel %vm368_vm3, %v579_v48, %v583_v63  ;;  %v587_v24 = vsel %vm368_vm3, %v583_v63, %v579_v48  ;;  %v3623_v48 = vpop.permute.xlu1 %717 }
  0xcf   : >> { %5627 = vst [vmem:[#allocation23_spill] sm:$0xff] %v3587_v42  ;;  %1779 = vrot.lane.b32.xlu1 %v3600_v7, %s2599_s8  ;;  %1777 = vrot.lane.b32.xlu0 %v3604_v14, %s2599_s8  ;;  %v592_v30 = vmul.f32 %v589_v47, %v585_v8  ;;  %v593_v49 = vmul.f32 %v589_v47, %v587_v24  ;;  %v3617_v57 = vstv %s3538_s4  ;;  %v3655_v56 = vstv %s3552_s17  ;;  %v5636_v42 = vld [vmem:[#allocation11_spill] sm:$0xff]  ;;  %s3869_s4 = sld [smem:[#allocation2 + $0x5a]] }
  0xd0   : >> { %5628 = vst [vmem:[#allocation24_spill] sm:$0xff] %v3590_v38  ;;  %v602_v12 = vmul.f32 %v599_v31, %v585_v8  ;;  %v603_v10 = vmul.f32 %v599_v31, %v587_v24  ;;  %v612_v62 = vmul.f32 %v609_v40, %v585_v8  ;;  %v613_v2 = vmul.f32 %v609_v40, %v587_v24  ;;  %s3879_s17 = sld [smem:[#allocation2 + $0x75]] }
  0xd1   : >> { %5630 = vst [vmem:[#allocation28_spill] sm:$0xff] %v3600_v7  ;;  %v622_v54 = vmul.f32 %v619_v9, %v585_v8  ;;  %v596_v59 = vadd.f32 %v592_v30, %v3492_v53  ;;  %v597_v52 = vadd.f32 %v593_v49, %v3494_v5  ;;  %v623_v47 = vmul.f32 %v619_v9, %v587_v24 }
  0xd2   : >> { %5631 = vst [vmem:[#allocation31_spill] sm:$0xff] %v3604_v14  ;;  %v606_v25 = vadd.f32 %v602_v12, %v3498_v39  ;;  %v607_v20 = vadd.f32 %v603_v10, %v3500_v32  ;;  %v616_v31 = vadd.f32 %v612_v62, %v3504_v6  ;;  %v617_v40 = vadd.f32 %v613_v2, %v3506_v34  ;;  %v5634_v34 = vld [vmem:[#allocation12_spill] sm:$0xff] }
  0xd3   : >> { %5632 = vst [vmem:[#allocation32_spill] sm:$0xff] %v3623_v48  ;;  %v626_v45 = vadd.f32 %v622_v54, %v3510_v58  ;;  %v627_v53 = vadd.f32 %v623_v47, %v3512_v60  ;;  %v632_v5 = vmul.f32 %v3529_v15, %v585_v8  ;;  %v633_v39 = vmul.f32 %v3529_v15, %v587_v24  ;;  %v5635_v60 = vld [vmem:[#allocation13_spill] sm:$0xff] }
  0xd4   : >> { %v642_v9 = vmul.f32 %v3532_v46, %v585_v8  ;;  %v643_v32 = vmul.f32 %v3532_v46, %v587_v24  ;;  %v3645_v6 = vsel %vm439_vm0, %v1707_v0, %v1709_v18  ;;  %v661_v58 = vmul.f32 %v3617_v57, %v5634_v34 }
  0xd5   : >> { %5633 = vst [vmem:[#allocation36_spill] sm:$0xff] %v3645_v6  ;;  %v662_v13 = vmul.f32 %v3617_v57, %v5635_v60  ;;  %v636_v15 = vadd.f32 %v632_v5, %v3516_v1  ;;  %v637_v28 = vadd.f32 %v633_v39, %v3518_v51  ;;  %1775 = vrot.lane.b32.xlu2 %v3645_v6, %s2599_s8  ;;  %v3665_v51 = vstv %s3566_s18  ;;  %s3883_s18 = sld [smem:[#allocation2 + $0x90]] }
  0xd6   : >> { %v646_v50 = vadd.f32 %v642_v9, %v3522_v27  ;;  %v647_v46 = vadd.f32 %v643_v32, %v3524_v29  ;;  %v671_v61 = vmul.f32 %v3655_v56, %v5634_v34  ;;  %v672_v1 = vmul.f32 %v3655_v56, %v5635_v60  ;;  %v724_v9 = vpop.permute.xlu1 %723 }
  0xd7   : >> { %1849 = vrot.lane.b32.xlu1 %v3604_v14, %s5577_s13  ;;  %1847 = vrot.lane.b32.xlu0 %v3645_v6, %s5577_s13  ;;  %v681_v27 = vmul.f32 %v3665_v51, %v5634_v34  ;;  %v682_v29 = vmul.f32 %v3665_v51, %v5635_v60  ;;  %v688_v63 = vstv %s3572_s10  ;;  %v3677_v0 = vstv %s3578_s11  ;;  %s3888_s10 = sld [smem:[#allocation2 + $0xa]] }
  0xd8   : >> { %v691_v18 = vmul.f32 %v688_v63, %v5634_v34  ;;  %v692_v8 = vmul.f32 %v688_v63, %v5635_v60  ;;  %v701_v24 = vmul.f32 %v3677_v0, %v5634_v34  ;;  %v702_v30 = vmul.f32 %v3677_v0, %v5635_v60  ;;  %s3899_s11 = sld [smem:[#allocation2 + $0x25]] }
  0xd9   : >> { %v708_v49 = vstv %s3592_s14  ;;  %v3687_v12 = vstv %s3610_s15  ;;  %v3690_v10 = vstv %s3619_s16  ;;  %v3693_v62 = vstv %s3621_s19  ;;  %s3910_s14 = sld [smem:[#allocation2 + $0x40]] }
  0xda   : >> { %v711_v2 = vmul.f32 %v708_v49, %v5634_v34  ;;  %v712_v54 = vmul.f32 %v708_v49, %v5635_v60  ;;  %v3698_v47 = vstv %s3628_s20  ;;  %v3701_v5 = vstv %s3634_s21  ;;  %s3915_s15 = sld [smem:[#allocation2 + $0x5b]] }
  0xdb   : >> { %v3704_v39 = vstv %s3640_s22  ;;  %v665_v32 = vadd.f32 %v661_v58, %v596_v59  ;;  %v666_v11 = vadd.f32 %v662_v13, %v597_v52  ;;  %v675_v35 = vadd.f32 %v671_v61, %v606_v25  ;;  %s3927_s16 = sld [smem:[#allocation2 + $0x76]] }
  0xdc   : >> { %v676_v14 = vadd.f32 %v672_v1, %v607_v20  ;;  %v685_v6 = vadd.f32 %v681_v27, %v616_v31  ;;  %v686_v7 = vadd.f32 %v682_v29, %v617_v40  ;;  %v695_v36 = vadd.f32 %v691_v18, %v626_v45  ;;  %s3940_s19 = sld [smem:[#allocation2 + $0x91]] }
  0xdd   : >> { %v696_v17 = vadd.f32 %v692_v8, %v627_v53  ;;  %v705_v16 = vadd.f32 %v701_v24, %v636_v15  ;;  %v706_v34 = vadd.f32 %v702_v30, %v637_v28  ;;  %v715_v55 = vadd.f32 %v711_v2, %v646_v50  ;;  %s4074_s20 = sld [smem:[#allocation2 + $0xb]] }
  0xde   : >> { %v716_v60 = vadd.f32 %v712_v54, %v647_v46  ;;  %v726_v48 = vsel %vm295_vm2, %v720_v3, %v724_v9  ;;  %v728_v38 = vsel %vm295_vm2, %v724_v9, %v720_v3  ;;  %v659_v59 = vmul.f32 %v3617_v57, %v5636_v42  ;;  %v722_v54 = vpop.permute.xlu0 %721  ;;  %s4080_s21 = sld [smem:[#allocation2 + $0x26]] }
  0xdf   : >> { %v733_v52 = vmul.f32 %v3687_v12, %v726_v48  ;;  %v734_v25 = vmul.f32 %v3687_v12, %v728_v38  ;;  %v743_v20 = vmul.f32 %v3690_v10, %v726_v48  ;;  %v744_v31 = vmul.f32 %v3690_v10, %v728_v38  ;;  %s4092_s22 = sld [smem:[#allocation2 + $0x5c]] }
  0xe0   : >> { %v753_v40 = vmul.f32 %v3693_v62, %v726_v48  ;;  %v754_v45 = vmul.f32 %v3693_v62, %v728_v38  ;;  %v763_v53 = vmul.f32 %v3698_v47, %v726_v48  ;;  %v764_v58 = vmul.f32 %v3698_v47, %v728_v38 }
  0xe1   : >> { %v3720_v3 = vadd.f32 %v733_v52, %v665_v32  ;;  %v3722_v13 = vadd.f32 %v734_v25, %v666_v11  ;;  %v3724_v15 = vadd.f32 %v743_v20, %v675_v35  ;;  %v3726_v28 = vadd.f32 %v744_v31, %v676_v14  ;;  %v5637_v35 = vld [vmem:[#allocation14_spill] sm:$0xff]  ;;  %v5640_v52 = vld [vmem:[#allocation32_spill] sm:$0xff] }
  0xe2   : >> { %v3728_v50 = vadd.f32 %v753_v40, %v685_v6  ;;  %v3730_v46 = vadd.f32 %v754_v45, %v686_v7  ;;  %v3732_v61 = vadd.f32 %v763_v53, %v695_v36  ;;  %v3734_v1 = vadd.f32 %v764_v58, %v696_v17  ;;  %v790_v40 = vpop.permute.xlu2 %789 }
  0xe3   : >> { %v773_v27 = vmul.f32 %v3701_v5, %v726_v48  ;;  %v774_v29 = vmul.f32 %v3701_v5, %v728_v38  ;;  %v783_v18 = vmul.f32 %v3704_v39, %v726_v48  ;;  %v784_v11 = vmul.f32 %v3704_v39, %v728_v38 }
  0xe4   : >> { %v660_v14 = vmul.f32 %v3617_v57, %v5637_v35  ;;  %v669_v6 = vmul.f32 %v3655_v56, %v5636_v42  ;;  %v670_v36 = vmul.f32 %v3655_v56, %v5637_v35  ;;  %v679_v17 = vmul.f32 %v3665_v51, %v5636_v42 }
  0xe5   : >> { %v3748_v7 = vadd.f32 %v773_v27, %v705_v16  ;;  %v3750_v8 = vadd.f32 %v774_v29, %v706_v34  ;;  %v3752_v24 = vadd.f32 %v783_v18, %v715_v55  ;;  %v3754_v48 = vadd.f32 %v784_v11, %v716_v60  ;;  %v5638_v60 = vld [vmem:[#allocation23_spill] sm:$0xff] }
  0xe6   : >> { %v680_v38 = vmul.f32 %v3665_v51, %v5637_v35  ;;  %v689_v57 = vmul.f32 %v688_v63, %v5636_v42  ;;  %v690_v30 = vmul.f32 %v688_v63, %v5637_v35  ;;  %v699_v56 = vmul.f32 %v3677_v0, %v5636_v42 }
  0xe7   : >> { %v700_v16 = vmul.f32 %v3677_v0, %v5637_v35  ;;  %v709_v55 = vmul.f32 %v708_v49, %v5636_v42  ;;  %v710_v2 = vmul.f32 %v708_v49, %v5637_v35  ;;  %v663_v9 = vadd.f32 %v659_v59, %v3541_v19  ;;  %v5639_v59 = vld [vmem:[#allocation24_spill] sm:$0xff] }
  0xe8   : >> { %v664_v51 = vadd.f32 %v660_v14, %v3544_v21  ;;  %v673_v63 = vadd.f32 %v669_v6, %v3547_v37  ;;  %v674_v32 = vadd.f32 %v670_v36, %v3550_v4  ;;  %v683_v34 = vadd.f32 %v679_v17, %v3555_v44  ;;  %v5641_v36 = vld [vmem:[#allocation44_spill] sm:$0xff] }
  0xe9   : >> { %v684_v0 = vadd.f32 %v680_v38, %v3558_v33  ;;  %v693_v42 = vadd.f32 %v689_v57, %v3561_v26  ;;  %v694_v49 = vadd.f32 %v690_v30, %v3564_v23  ;;  %v703_v19 = vadd.f32 %v699_v56, %v3581_v22  ;;  %v5643_v57 = vld [vmem:[#allocation46_spill] sm:$0xff]  ;;  %v5645_v56 = vld [vmem:[#allocation47_spill] sm:$0xff] }
  0xea   : >> { %v704_v21 = vadd.f32 %v700_v16, %v3584_v41  ;;  %v713_v37 = vadd.f32 %v709_v55, %v5638_v60  ;;  %v714_v4 = vadd.f32 %v710_v2, %v5639_v59  ;;  %v725_v44 = vsel %vm295_vm2, %v5640_v52, %v722_v54 }
  0xeb   : >> { %v727_v33 = vsel %vm295_vm2, %v722_v54, %v5640_v52  ;;  %v731_v26 = vmul.f32 %v3687_v12, %v725_v44  ;;  %v741_v23 = vmul.f32 %v3690_v10, %v725_v44  ;;  %v751_v22 = vmul.f32 %v3693_v62, %v725_v44 }
  0xec   : >> { %v732_v41 = vmul.f32 %v3687_v12, %v727_v33  ;;  %v742_v25 = vmul.f32 %v3690_v10, %v727_v33  ;;  %v752_v20 = vmul.f32 %v3693_v62, %v727_v33  ;;  %v761_v31 = vmul.f32 %v3698_v47, %v725_v44 }
  0xed   : >> { %v735_v45 = vadd.f32 %v731_v26, %v663_v9  ;;  %v745_v53 = vadd.f32 %v741_v23, %v673_v63  ;;  %v755_v58 = vadd.f32 %v751_v22, %v683_v34  ;;  %v762_v27 = vmul.f32 %v3698_v47, %v727_v33  ;;  %v5642_v47 = vld [vmem:[#allocation43_spill] sm:$0xff] }
  0xee   : >> { %v736_v29 = vadd.f32 %v732_v41, %v664_v51  ;;  %v746_v18 = vadd.f32 %v742_v25, %v674_v32  ;;  %v756_v11 = vadd.f32 %v752_v20, %v684_v0  ;;  %v765_v35 = vadd.f32 %v761_v31, %v693_v42  ;;  %v792_v20 = vpop.permute.xlu0 %791  ;;  %v796_v31 = vpop.permute.xlu2 %795 }
  0xef   : >> { %v766_v14 = vadd.f32 %v762_v27, %v694_v49  ;;  %v771_v12 = vmul.f32 %v3701_v5, %v725_v44  ;;  %v772_v10 = vmul.f32 %v3701_v5, %v727_v33  ;;  %v781_v62 = vmul.f32 %v3704_v39, %v725_v44  ;;  %v794_v5 = vpop.permute.xlu1 %793 }
  0xf0   : >> { %v782_v6 = vmul.f32 %v3704_v39, %v727_v33  ;;  %v5546_v17 = vrot.slane %v5641_v36, 2  ;;  %v5545_v38 = vrot.slane %v5642_v47, 2  ;;  %v5644_v30 = vrot.slane %v5643_v57, 1 }
  0xf1   : >> { %v5646_v16 = vrot.slane %v5645_v56, 1  ;;  %v775_v54 = vadd.f32 %v771_v12, %v703_v19  ;;  %v776_v9 = vadd.f32 %v772_v10, %v704_v21  ;;  %v785_v51 = vadd.f32 %v781_v62, %v713_v37 }
  0xf2   : >> { %v802_v39 = vstv %s3762_s23  ;;  %v786_v63 = vadd.f32 %v782_v6, %v714_v4  ;;  %v3829_v32 = vsel %vm652_vm1, %v5546_v17, %v5545_v38  ;;  %v812_v34 = vstv %s3769_s24  ;;  %s4098_s23 = sld [smem:[#allocation2 + $0x77]] }
  0xf3   : >> { %v3816_v2 = vsel %vm439_vm0, %v5646_v16, %v5644_v30  ;;  %5649 = vst [vmem:[#allocation38_spill] sm:$0xff] %v3829_v32  ;;  %v822_v0 = vstv %s3775_s25  ;;  %1987 = vrot.lane.b32.xlu1 %v3829_v32, %s2599_s8  ;;  %v832_v42 = vstv %s3781_s0  ;;  %v842_v49 = vstv %s3789_s1  ;;  %s4108_s24 = sld [smem:[#allocation2 + $0x92]] }
  0xf4   : >> { %5648 = vst [vmem:[#allocation37_spill] sm:$0xff] %v3816_v2  ;;  %1853 = vrot.lane.b32.xlu0 %v3816_v2, %s5577_s13  ;;  %1781 = vrot.lane.b32.xlu2 %v3816_v2, %s2599_s8  ;;  %v852_v19 = vstv %s3797_s6  ;;  %v797_v21 = vsel %vm368_vm3, %v790_v40, %v794_v5  ;;  %v799_v60 = vsel %vm368_vm3, %v794_v5, %v790_v40  ;;  %s4124_s25 = sld [smem:[#allocation2 + $0xc]] }
  0xf5   : >> { %v803_v37 = vmul.f32 %v802_v39, %v797_v21  ;;  %v813_v59 = vmul.f32 %v812_v34, %v797_v21  ;;  %v823_v4 = vmul.f32 %v822_v0, %v797_v21  ;;  %v804_v52 = vmul.f32 %v802_v39, %v799_v60  ;;  %s4130_s0 = sld [smem:[#allocation2 + $0x27]] }
  0xf6   : >> { %v814_v44 = vmul.f32 %v812_v34, %v799_v60  ;;  %v824_v33 = vmul.f32 %v822_v0, %v799_v60  ;;  %v833_v26 = vmul.f32 %v832_v42, %v797_v21  ;;  %v834_v25 = vmul.f32 %v832_v42, %v799_v60  ;;  %s4138_s1 = sld [smem:[#allocation2 + $0x42]] }
  0xf7   : >> { %v3842_v23 = vadd.f32 %v803_v37, %v735_v45  ;;  %v3844_v22 = vadd.f32 %v813_v59, %v745_v53  ;;  %v3846_v41 = vadd.f32 %v823_v4, %v755_v58  ;;  %v3850_v27 = vadd.f32 %v804_v52, %v736_v29  ;;  %s4148_s6 = sld [smem:[#allocation2 + $0x5d]] }
  0xf8   : >> { %v3852_v40 = vadd.f32 %v814_v44, %v746_v18  ;;  %v3854_v12 = vadd.f32 %v824_v33, %v756_v11  ;;  %v3856_v10 = vadd.f32 %v833_v26, %v765_v35  ;;  %v3860_v45 = vadd.f32 %v834_v25, %v766_v14  ;;  %v5650_v35 = vld [vmem:[#allocation28_spill] sm:$0xff] }
  0xf9   : >> { %v843_v53 = vmul.f32 %v842_v49, %v797_v21  ;;  %v844_v58 = vmul.f32 %v842_v49, %v799_v60  ;;  %v853_v62 = vmul.f32 %v852_v19, %v797_v21  ;;  %v854_v6 = vmul.f32 %v852_v19, %v799_v60 }
  0xfa   : >> { %v798_v29 = vsel %vm368_vm3, %v792_v20, %v796_v31  ;;  %v800_v18 = vsel %vm368_vm3, %v796_v31, %v792_v20  ;;  %v1920_v11 = vrot.slane %v5643_v57, 2  ;;  %v3925_v33 = vstv %s3858_s27  ;;  %s4162_s27 = sld [smem:[#allocation2 + $0x93]] }
  0xfb   : >> { %v3873_v14 = vadd.f32 %v843_v53, %v775_v54  ;;  %v3875_v30 = vadd.f32 %v844_v58, %v776_v9  ;;  %v3877_v16 = vadd.f32 %v853_v62, %v785_v51  ;;  %v805_v5 = vmul.f32 %v802_v39, %v798_v29 }
  0xfc   : >> { %1851 = vrot.lane.b32.xlu2 %v5650_v35, %s5577_s13  ;;  %v3881_v21 = vadd.f32 %v854_v6, %v786_v63  ;;  %v806_v60 = vmul.f32 %v802_v39, %v800_v18  ;;  %v815_v37 = vmul.f32 %v812_v34, %v798_v29  ;;  %v816_v59 = vmul.f32 %v812_v34, %v800_v18 }
  0xfd   : >> { %v3886_v57 = vadd.f32 %v805_v5, %v3720_v3  ;;  %v825_v4 = vmul.f32 %v822_v0, %v798_v29  ;;  %v826_v54 = vmul.f32 %v822_v0, %v800_v18  ;;  %v835_v52 = vmul.f32 %v832_v42, %v798_v29 }
  0xfe   : >> { %v3891_v9 = vadd.f32 %v806_v60, %v3722_v13  ;;  %v3894_v51 = vadd.f32 %v815_v37, %v3724_v15  ;;  %v3897_v39 = vadd.f32 %v816_v59, %v3726_v28  ;;  %v836_v63 = vmul.f32 %v832_v42, %v800_v18 }
  0xff   : >> { %v3902_v3 = vadd.f32 %v825_v4, %v3728_v50  ;;  %v3905_v34 = vadd.f32 %v826_v54, %v3730_v46  ;;  %v3908_v13 = vadd.f32 %v835_v52, %v3732_v61  ;;  %v845_v15 = vmul.f32 %v842_v49, %v798_v29  ;;  %v929_v54 = vpop.permute.xlu0 %928 }
 0x100   : >> { %v3913_v28 = vadd.f32 %v836_v63, %v3734_v1  ;;  %v846_v0 = vmul.f32 %v842_v49, %v800_v18  ;;  %v855_v42 = vmul.f32 %v852_v19, %v798_v29  ;;  %v856_v44 = vmul.f32 %v852_v19, %v800_v18 }
 0x101   : >> { %v3918_v50 = vadd.f32 %v845_v15, %v3748_v7  ;;  %v1922_v46 = vrot.slane %v5645_v56, 2  ;;  %v3922_v61 = vstv %s3848_s9  ;;  %v2535_v7 = vld [vmem:[%s2662_s7 + $0x40] sm:$0xff]  ;;  %v3959_v31 = vstv %s3862_s28  ;;  %s4160_s9 = sld [smem:[#allocation2 + $0x78]] }
 0x102   : >> { %v3930_v1 = vadd.f32 %v846_v0, %v3750_v8  ;;  %v3933_v49 = vadd.f32 %v855_v42, %v3752_v24  ;;  %v3936_v19 = vadd.f32 %v856_v44, %v3754_v48  ;;  %v870_v56 = vmul.f32 %v2535_v7, %v3922_v61  ;;  %v2536_v8 = vld [vmem:[%s2662_s7 + $0x48] sm:$0xff]  ;;  %v933_v0 = vpop.permute.xlu2 %932  ;;  %v3989_v42 = vpop.permute.xlu1 %930  ;;  %s4186_s28 = sld [smem:[#allocation2 + $0x28]] }
 0x103   : >> { %v3944_v26 = vsel %vm652_vm1, %v1922_v46, %v1920_v11  ;;  %v3948_v25 = vsel %vm652_vm1, %v1920_v11, %v1922_v46  ;;  %v871_v24 = vmul.f32 %v2536_v8, %v3922_v61  ;;  %v880_v48 = vmul.f32 %v2535_v7, %v3925_v33 }
 0x104   : >> { %5651 = vst [vmem:[#allocation39_spill] sm:$0xff] %v3944_v26  ;;  %1993 = vrot.lane.b32.xlu1 %v3944_v26, %s2599_s8  ;;  %1991 = vrot.lane.b32.xlu0 %v3948_v25, %s2599_s8  ;;  %v881_v20 = vmul.f32 %v2536_v8, %v3925_v33  ;;  %v3962_v53 = vstv %s3869_s4  ;;  %v874_v58 = vadd.f32 %v870_v56, %v3842_v23  ;;  %v3972_v60 = vstv %s3879_s17  ;;  %s4188_s4 = sld [smem:[#allocation2 + $0x43]] }
 0x105   : >> { %5652 = vst [vmem:[#allocation40_spill] sm:$0xff] %v3948_v25  ;;  %v875_v62 = vadd.f32 %v871_v24, %v3850_v27  ;;  %v890_v6 = vmul.f32 %v2535_v7, %v3959_v31  ;;  %v891_v29 = vmul.f32 %v2536_v8, %v3959_v31  ;;  %v900_v18 = vmul.f32 %v2535_v7, %v3962_v53  ;;  %s4190_s17 = sld [smem:[#allocation2 + $0x5e]] }
 0x106   : >> { %v885_v11 = vadd.f32 %v881_v20, %v3852_v40  ;;  %v901_v5 = vmul.f32 %v2536_v8, %v3962_v53  ;;  %v3975_v23 = vstv %s3883_s18  ;;  %v910_v37 = vmul.f32 %v2535_v7, %v3972_v60  ;;  %s4196_s18 = sld [smem:[#allocation2 + $0x79]] }
 0x107   : >> { %v895_v27 = vadd.f32 %v891_v29, %v3854_v12  ;;  %v911_v59 = vmul.f32 %v2536_v8, %v3972_v60  ;;  %v920_v4 = vmul.f32 %v2535_v7, %v3975_v23  ;;  %v921_v52 = vmul.f32 %v2536_v8, %v3975_v23 }
 0x108   : >> { %v905_v40 = vadd.f32 %v901_v5, %v3860_v45  ;;  %v3984_v63 = vstv %s3888_s10  ;;  %v3987_v15 = vstv %s3899_s11  ;;  %v3993_v44 = vstv %s3910_s14  ;;  %s4202_s10 = sld [smem:[#allocation2 + $0x94]] }
 0x109   : >> { %v915_v12 = vadd.f32 %v911_v59, %v3875_v30  ;;  %v3996_v46 = vstv %s3915_s15  ;;  %v3999_v56 = vstv %s3927_s16  ;;  %v925_v7 = vadd.f32 %v921_v52, %v3881_v21  ;;  %s4292_s11 = sld [smem:[#allocation2 + $0xe]] }
 0x10a   : >> { %v4003_v45 = vstv %s3940_s19  ;;  %v884_v8 = vadd.f32 %v880_v48, %v3844_v22  ;;  %v894_v24 = vadd.f32 %v890_v6, %v3846_v41  ;;  %v904_v20 = vadd.f32 %v900_v18, %v3856_v10  ;;  %v4067_v55 = vpop.permute.xlu1 %1000  ;;  %s4298_s14 = sld [smem:[#allocation2 + $0x29]] }
 0x10b   : >> { %v914_v29 = vadd.f32 %v910_v37, %v3873_v14  ;;  %v924_v30 = vadd.f32 %v920_v4, %v3877_v16  ;;  %v936_v5 = vsel %vm295_vm2, %v929_v54, %v933_v0  ;;  %v938_v59 = vsel %vm295_vm2, %v933_v0, %v929_v54  ;;  %s4320_s15 = sld [smem:[#allocation2 + $0x44]] }
 0x10c   : >> { %v942_v21 = vmul.f32 %v3984_v63, %v936_v5  ;;  %v952_v52 = vmul.f32 %v3987_v15, %v936_v5  ;;  %v962_v22 = vmul.f32 %v3993_v44, %v936_v5  ;;  %2063 = vrot.lane.b32.xlu1 %v3948_v25, %s5577_s13  ;;  %v943_v41 = vmul.f32 %v3984_v63, %v938_v59  ;;  %s4330_s16 = sld [smem:[#allocation2 + $0x5f]] }
 0x10d   : >> { %v953_v10 = vmul.f32 %v3987_v15, %v938_v59  ;;  %v963_v14 = vmul.f32 %v3993_v44, %v938_v59  ;;  %v972_v16 = vmul.f32 %v3996_v46, %v936_v5  ;;  %v973_v37 = vmul.f32 %v3996_v46, %v938_v59  ;;  %s4340_s19 = sld [smem:[#allocation2 + $0x7a]] }
 0x10e   : >> { %v4023_v48 = vadd.f32 %v942_v21, %v874_v58  ;;  %v4025_v6 = vadd.f32 %v952_v52, %v884_v8  ;;  %v4027_v18 = vadd.f32 %v962_v22, %v894_v24  ;;  %v4030_v4 = vadd.f32 %v943_v41, %v875_v62 }
 0x10f   : >> { %v4032_v54 = vadd.f32 %v953_v10, %v885_v11  ;;  %v4034_v0 = vadd.f32 %v963_v14, %v895_v27  ;;  %v4036_v38 = vadd.f32 %v972_v16, %v904_v20  ;;  %v4038_v17 = vadd.f32 %v973_v37, %v905_v40  ;;  %v2537_v27 = vld [vmem:[%s2662_s7 + $0x60] sm:$0xff]  ;;  %v2538_v20 = vld [vmem:[%s2662_s7 + $0x68] sm:$0xff] }
 0x110   : >> { %v982_v58 = vmul.f32 %v3999_v56, %v936_v5  ;;  %v983_v21 = vmul.f32 %v3999_v56, %v938_v59  ;;  %v992_v8 = vmul.f32 %v4003_v45, %v936_v5  ;;  %v993_v24 = vmul.f32 %v4003_v45, %v938_v59 }
 0x111   : >> { %v5653_v52 = vrot.slane %v5641_v36, 2  ;;  %v5654_v62 = vrot.slane %v5642_v47, 2  ;;  %v872_v40 = vmul.f32 %v2537_v27, %v3922_v61  ;;  %v873_v22 = vmul.f32 %v2538_v20, %v3922_v61 }
 0x112   : >> { %v4056_v41 = vadd.f32 %v982_v58, %v914_v29  ;;  %v4058_v10 = vadd.f32 %v983_v21, %v915_v12  ;;  %v4060_v5 = vadd.f32 %v992_v8, %v924_v30  ;;  %v882_v36 = vmul.f32 %v2537_v27, %v3925_v33 }
 0x113   : >> { %v4050_v11 = vsel %vm652_vm1, %v5654_v62, %v5653_v52  ;;  %v4065_v47 = vadd.f32 %v993_v24, %v925_v7  ;;  %v883_v59 = vmul.f32 %v2538_v20, %v3925_v33  ;;  %v892_v14 = vmul.f32 %v2537_v27, %v3959_v31 }
 0x114   : >> { %5655 = vst [vmem:[#allocation41_spill] sm:$0xff] %v4050_v11  ;;  %2061 = vrot.lane.b32.xlu0 %v4050_v11, %s5577_s13  ;;  %v893_v61 = vmul.f32 %v2538_v20, %v3959_v31  ;;  %1989 = vrot.lane.b32.xlu2 %v4050_v11, %s2599_s8  ;;  %v902_v12 = vmul.f32 %v2537_v27, %v3962_v53  ;;  %v935_v31 = vpop.permute.xlu0 %934  ;;  %s4086_s8 = sld [smem:[#allocation2 + $0x41]] }
 0x115   : >> { %v903_v29 = vmul.f32 %v2538_v20, %v3962_v53  ;;  %v912_v7 = vmul.f32 %v2537_v27, %v3972_v60  ;;  %v913_v30 = vmul.f32 %v2538_v20, %v3972_v60  ;;  %v922_v33 = vmul.f32 %v2537_v27, %v3975_v23 }
 0x116   : >> { %v923_v16 = vmul.f32 %v2538_v20, %v3975_v23  ;;  %v876_v37 = vadd.f32 %v872_v40, %v3886_v57  ;;  %v877_v58 = vadd.f32 %v873_v22, %v3891_v9  ;;  %v886_v21 = vadd.f32 %v882_v36, %v3894_v51 }
 0x117   : >> { %v887_v53 = vadd.f32 %v883_v59, %v3897_v39  ;;  %v896_v8 = vadd.f32 %v892_v14, %v3902_v3  ;;  %v897_v60 = vadd.f32 %v893_v61, %v3905_v34  ;;  %v906_v24 = vadd.f32 %v902_v12, %v3908_v13  ;;  %v1007_v61 = vpop.permute.xlu1 %1006 }
 0x118   : >> { %v907_v23 = vadd.f32 %v903_v29, %v3913_v28  ;;  %v916_v57 = vadd.f32 %v912_v7, %v3918_v50  ;;  %v917_v9 = vadd.f32 %v913_v30, %v3930_v1  ;;  %v926_v51 = vadd.f32 %v922_v33, %v3933_v49 }
 0x119   : >> { %v927_v39 = vadd.f32 %v923_v16, %v3936_v19  ;;  %v937_v3 = vsel %vm295_vm2, %v3989_v42, %v935_v31  ;;  %v939_v34 = vsel %vm295_vm2, %v935_v31, %v3989_v42  ;;  %v1013_v12 = vstv %s4074_s20  ;;  %s4346_s20 = sld [smem:[#allocation2 + $0x95]] }
 0x11a   : >> { %v944_v13 = vmul.f32 %v3984_v63, %v937_v3  ;;  %v945_v28 = vmul.f32 %v3984_v63, %v939_v34  ;;  %v954_v50 = vmul.f32 %v3987_v15, %v937_v3  ;;  %v955_v1 = vmul.f32 %v3987_v15, %v939_v34 }
 0x11b   : >> { %v964_v49 = vmul.f32 %v3993_v44, %v937_v3  ;;  %v965_v19 = vmul.f32 %v3993_v44, %v939_v34  ;;  %v974_v52 = vmul.f32 %v3996_v46, %v937_v3  ;;  %v975_v62 = vmul.f32 %v3996_v46, %v939_v34 }
 0x11c   : >> { %v948_v42 = vadd.f32 %v944_v13, %v876_v37  ;;  %v949_v27 = vadd.f32 %v945_v28, %v877_v58  ;;  %v958_v40 = vadd.f32 %v954_v50, %v886_v21  ;;  %v959_v63 = vadd.f32 %v955_v1, %v887_v53  ;;  %2059 = vrot.lane.b32.xlu2 %v3829_v32, %s5577_s13  ;;  %v1003_v58 = vpop.permute.xlu2 %1002  ;;  %v1005_v50 = vpop.permute.xlu0 %1004 }
 0x11d   : >> { %v968_v15 = vadd.f32 %v964_v49, %v896_v8  ;;  %v969_v20 = vadd.f32 %v965_v19, %v897_v60  ;;  %v978_v22 = vadd.f32 %v974_v52, %v906_v24  ;;  %v979_v36 = vadd.f32 %v975_v62, %v907_v23 }
 0x11e   : >> { %v984_v44 = vmul.f32 %v3999_v56, %v937_v3  ;;  %v985_v46 = vmul.f32 %v3999_v56, %v939_v34  ;;  %v994_v59 = vmul.f32 %v4003_v45, %v937_v3  ;;  %v995_v14 = vmul.f32 %v4003_v45, %v939_v34 }
 0x11f   : >> { %v1023_v29 = vstv %s4080_s21  ;;  %v1033_v7 = vstv %s4086_s8  ;;  %v1043_v30 = vstv %s4092_s22  ;;  %v1053_v56 = vstv %s4098_s23  ;;  %s4404_s21 = sld [smem:[#allocation2 + $0xf]] }
 0x120   : >> { %v988_v33 = vadd.f32 %v984_v44, %v916_v57  ;;  %v989_v16 = vadd.f32 %v985_v46, %v917_v9  ;;  %v998_v31 = vadd.f32 %v994_v59, %v926_v51  ;;  %v999_v37 = vadd.f32 %v995_v14, %v927_v39  ;;  %s4414_s8 = sld [smem:[#allocation2 + $0x2a]] }
 0x121   : >> { %v1063_v21 = vstv %s4108_s24  ;;  %v1009_v53 = vsel %vm368_vm3, %v1003_v58, %v1007_v61  ;;  %v1011_v45 = vsel %vm368_vm3, %v1007_v61, %v1003_v58  ;;  %s4420_s22 = sld [smem:[#allocation2 + $0x45]] }
 0x122   : >> { %v1016_v8 = vmul.f32 %v1013_v12, %v1009_v53  ;;  %v1017_v60 = vmul.f32 %v1013_v12, %v1011_v45  ;;  %v1026_v24 = vmul.f32 %v1023_v29, %v1009_v53  ;;  %v1027_v23 = vmul.f32 %v1023_v29, %v1011_v45  ;;  %s4422_s23 = sld [smem:[#allocation2 + $0x60]] }
 0x123   : >> { %v1036_v3 = vmul.f32 %v1033_v7, %v1009_v53  ;;  %v1037_v34 = vmul.f32 %v1033_v7, %v1011_v45  ;;  %v1046_v13 = vmul.f32 %v1043_v30, %v1009_v53  ;;  %v1047_v57 = vmul.f32 %v1043_v30, %v1011_v45  ;;  %s4436_s24 = sld [smem:[#allocation2 + $0x7b]] }
 0x124   : >> { %v4140_v9 = vadd.f32 %v1016_v8, %v948_v42  ;;  %v4142_v51 = vadd.f32 %v1017_v60, %v949_v27  ;;  %v4144_v39 = vadd.f32 %v1026_v24, %v958_v40  ;;  %v4146_v28 = vadd.f32 %v1027_v23, %v959_v63  ;;  %2065 = vrot.lane.b32.xlu2 %v3944_v26, %s5577_s13  ;;  %s4176_s13 = sld [smem:[#allocation2 + $0xd]]  ;;  %v5657_v24 = vld [vmem:[#allocation15_spill] sm:$0xff] }
 0x125   : >> { %v4152_v1 = vadd.f32 %v1036_v3, %v968_v15  ;;  %v4154_v49 = vadd.f32 %v1037_v34, %v969_v20  ;;  %v4156_v19 = vadd.f32 %v1046_v13, %v978_v22  ;;  %v4158_v52 = vadd.f32 %v1047_v57, %v979_v36 }
 0x126   : >> { %v1056_v62 = vmul.f32 %v1053_v56, %v1009_v53  ;;  %v1057_v42 = vmul.f32 %v1053_v56, %v1011_v45  ;;  %v1066_v27 = vmul.f32 %v1063_v21, %v1009_v53  ;;  %v1067_v40 = vmul.f32 %v1063_v21, %v1011_v45 }
 0x127   : >> { %v1008_v63 = vsel %vm368_vm3, %v4067_v55, %v1005_v50  ;;  %v1010_v15 = vsel %vm368_vm3, %v1005_v50, %v4067_v55  ;;  %v4171_v20 = vstv %s4124_s25  ;;  %v4174_v22 = vstv %s4130_s0  ;;  %s4450_s25 = sld [smem:[#allocation2 + $0x96]] }
 0x128   : >> { %v4178_v36 = vadd.f32 %v1056_v62, %v988_v33  ;;  %v4180_v44 = vadd.f32 %v1057_v42, %v989_v16  ;;  %v4182_v46 = vadd.f32 %v1066_v27, %v998_v31  ;;  %v4184_v59 = vadd.f32 %v1067_v40, %v999_v37  ;;  %s4452_s0 = sld [smem:[#allocation2 + $0x10]] }
 0x129   : >> { %v1014_v14 = vmul.f32 %v1013_v12, %v1008_v63  ;;  %v1015_v61 = vmul.f32 %v1013_v12, %v1010_v15  ;;  %v1024_v58 = vmul.f32 %v1023_v29, %v1008_v63  ;;  %v1025_v55 = vmul.f32 %v1023_v29, %v1010_v15 }
 0x12a   : >> { %5656 = vst [vmem:[#allocation42_spill] sm:$0xff] %v4184_v59  ;;  %v1034_v53 = vmul.f32 %v1033_v7, %v1008_v63  ;;  %v1035_v45 = vmul.f32 %v1033_v7, %v1010_v15  ;;  %v1044_v8 = vmul.f32 %v1043_v30, %v1008_v63  ;;  %v1045_v60 = vmul.f32 %v1043_v30, %v1010_v15 }
 0x12b   : >> { %v1018_v33 = vadd.f32 %v1014_v14, %v4023_v48  ;;  %v1019_v16 = vadd.f32 %v1015_v61, %v4030_v4  ;;  %v1028_v31 = vadd.f32 %v1024_v58, %v4025_v6  ;;  %v1029_v37 = vadd.f32 %v1025_v55, %v4032_v54 }
 0x12c   : >> { %v1038_v12 = vadd.f32 %v1034_v53, %v4027_v18  ;;  %v1039_v29 = vadd.f32 %v1035_v45, %v4034_v0  ;;  %v1048_v7 = vadd.f32 %v1044_v8, %v4036_v38  ;;  %v1049_v30 = vadd.f32 %v1045_v60, %v4038_v17  ;;  %v5658_v18 = vld [vmem:[#allocation16_spill] sm:$0xff]  ;;  %v1145_v45 = vpop.permute.xlu1 %1144 }
 0x12d   : >> { %v1054_v48 = vmul.f32 %v1053_v56, %v1008_v63  ;;  %v1055_v6 = vmul.f32 %v1053_v56, %v1010_v15  ;;  %v1064_v4 = vmul.f32 %v1063_v21, %v1008_v63  ;;  %v1065_v54 = vmul.f32 %v1063_v21, %v1010_v15 }
 0x12e   : >> { %v1082_v23 = vmul.f32 %v4171_v20, %v5657_v24  ;;  %v1083_v0 = vmul.f32 %v4171_v20, %v5658_v18  ;;  %v1092_v38 = vmul.f32 %v4174_v22, %v5657_v24  ;;  %v1093_v17 = vmul.f32 %v4174_v22, %v5658_v18 }
 0x12f   : >> { %v1058_v3 = vadd.f32 %v1054_v48, %v4056_v41  ;;  %v1059_v34 = vadd.f32 %v1055_v6, %v4058_v10  ;;  %v1068_v56 = vadd.f32 %v1064_v4, %v4060_v5  ;;  %v1069_v21 = vadd.f32 %v1065_v54, %v4065_v47  ;;  %v1141_v48 = vpop.permute.xlu2 %1140 }
 0x130   : >> { %v4217_v13 = vstv %s4138_s1  ;;  %v4220_v57 = vstv %s4148_s6  ;;  %v4223_v50 = vstv %s4160_s9  ;;  %v4226_v62 = vstv %s4162_s27  ;;  %s4458_s1 = sld [smem:[#allocation2 + $0x2b]] }
 0x131   : >> { %v1102_v41 = vmul.f32 %v4217_v13, %v5657_v24  ;;  %v1103_v10 = vmul.f32 %v4217_v13, %v5658_v18  ;;  %v1112_v5 = vmul.f32 %v4220_v57, %v5657_v24  ;;  %v1113_v47 = vmul.f32 %v4220_v57, %v5658_v18  ;;  %s4472_s6 = sld [smem:[#allocation2 + $0x46]] }
 0x132   : >> { %v1122_v42 = vmul.f32 %v4223_v50, %v5657_v24  ;;  %v1123_v27 = vmul.f32 %v4223_v50, %v5658_v18  ;;  %v1132_v40 = vmul.f32 %v4226_v62, %v5657_v24  ;;  %v1133_v63 = vmul.f32 %v4226_v62, %v5658_v18  ;;  %v4262_v18 = vpop.permute.xlu0 %1142  ;;  %s4478_s9 = sld [smem:[#allocation2 + $0x61]] }
 0x133   : >> { %v4245_v15 = vstv %s4176_s13  ;;  %v4248_v14 = vstv %s4186_s28  ;;  %v4251_v61 = vstv %s4188_s4  ;;  %v4254_v58 = vstv %s4190_s17  ;;  %s4482_s27 = sld [smem:[#allocation2 + $0x7c]] }
 0x134   : >> { %v4257_v55 = vstv %s4196_s18  ;;  %v4260_v53 = vstv %s4202_s10  ;;  %v1086_v8 = vadd.f32 %v1082_v23, %v1018_v33  ;;  %v1087_v60 = vadd.f32 %v1083_v0, %v1019_v16  ;;  %s4484_s13 = sld [smem:[#allocation2 + $0x97]] }
 0x135   : >> { %v1096_v6 = vadd.f32 %v1092_v38, %v1028_v31  ;;  %v1097_v4 = vadd.f32 %v1093_v17, %v1029_v37  ;;  %v1106_v54 = vadd.f32 %v1102_v41, %v1038_v12  ;;  %v1107_v24 = vadd.f32 %v1103_v10, %v1039_v29  ;;  %s4590_s28 = sld [smem:[#allocation2 + $0x11]] }
 0x136   : >> { %v1116_v25 = vadd.f32 %v1112_v5, %v1048_v7  ;;  %v1117_v32 = vadd.f32 %v1113_v47, %v1049_v30  ;;  %v1126_v26 = vadd.f32 %v1122_v42, %v1058_v3  ;;  %v1127_v11 = vadd.f32 %v1123_v27, %v1059_v34  ;;  %v5659_v27 = vld [vmem:[#allocation17_spill] sm:$0xff]  ;;  %s4598_s4 = sld [smem:[#allocation2 + $0x2c]] }
 0x137   : >> { %v1136_v2 = vadd.f32 %v1132_v40, %v1068_v56  ;;  %v1137_v35 = vadd.f32 %v1133_v63, %v1069_v21  ;;  %v1148_v59 = vsel %vm295_vm2, %v1141_v48, %v1145_v45  ;;  %v1150_v33 = vsel %vm295_vm2, %v1145_v45, %v1141_v48  ;;  %v5660_v63 = vld [vmem:[#allocation18_spill] sm:$0xff]  ;;  %s4606_s17 = sld [smem:[#allocation2 + $0x47]] }
 0x138   : >> { %v1154_v16 = vmul.f32 %v4245_v15, %v1148_v59  ;;  %v1155_v31 = vmul.f32 %v4245_v15, %v1150_v33  ;;  %v1164_v37 = vmul.f32 %v4248_v14, %v1148_v59  ;;  %v1165_v12 = vmul.f32 %v4248_v14, %v1150_v33  ;;  %s4612_s18 = sld [smem:[#allocation2 + $0x62]] }
 0x139   : >> { %v1174_v29 = vmul.f32 %v4251_v61, %v1148_v59  ;;  %v1175_v7 = vmul.f32 %v4251_v61, %v1150_v33  ;;  %v1184_v30 = vmul.f32 %v4254_v58, %v1148_v59  ;;  %v1185_v23 = vmul.f32 %v4254_v58, %v1150_v33  ;;  %s4618_s10 = sld [smem:[#allocation2 + $0x7d]] }
 0x13a   : >> { %v4276_v0 = vadd.f32 %v1154_v16, %v1086_v8  ;;  %v4278_v38 = vadd.f32 %v1155_v31, %v1087_v60  ;;  %v4280_v17 = vadd.f32 %v1164_v37, %v1096_v6  ;;  %v4282_v3 = vadd.f32 %v1165_v12, %v1097_v4  ;;  %v5661_v12 = vld [vmem:[#allocation42_spill] sm:$0xff] }
 0x13b   : >> { %v4284_v34 = vadd.f32 %v1174_v29, %v1106_v54  ;;  %v4286_v56 = vadd.f32 %v1175_v7, %v1107_v24  ;;  %v4288_v21 = vadd.f32 %v1184_v30, %v1116_v25  ;;  %v4290_v41 = vadd.f32 %v1185_v23, %v1117_v32  ;;  %v1147_v24 = vpop.permute.xlu2 %1146 }
 0x13c   : >> { %v1194_v10 = vmul.f32 %v4257_v55, %v1148_v59  ;;  %v1195_v5 = vmul.f32 %v4257_v55, %v1150_v33  ;;  %v1204_v47 = vmul.f32 %v4260_v53, %v1148_v59  ;;  %v1205_v42 = vmul.f32 %v4260_v53, %v1150_v33  ;;  %v1213_v33 = vpop.permute.xlu0 %1212 }
 0x13d   : >> { %v1084_v40 = vmul.f32 %v4171_v20, %v5659_v27  ;;  %v1085_v25 = vmul.f32 %v4171_v20, %v5660_v63  ;;  %v1094_v32 = vmul.f32 %v4174_v22, %v5659_v27  ;;  %v1095_v45 = vmul.f32 %v4174_v22, %v5660_v63 }
 0x13e   : >> { %v4308_v8 = vadd.f32 %v1194_v10, %v1126_v26  ;;  %v4310_v60 = vadd.f32 %v1195_v5, %v1127_v11  ;;  %v4312_v59 = vadd.f32 %v1204_v47, %v1136_v2  ;;  %v4314_v48 = vadd.f32 %v1205_v42, %v1137_v35 }
 0x13f   : >> { %v1088_v6 = vadd.f32 %v1084_v40, %v4140_v9  ;;  %v1089_v4 = vadd.f32 %v1085_v25, %v4142_v51  ;;  %v1098_v20 = vadd.f32 %v1094_v32, %v4144_v39  ;;  %v1099_v54 = vadd.f32 %v1095_v45, %v4146_v28 }
 0x140   : >> { %v1104_v26 = vmul.f32 %v4217_v13, %v5659_v27  ;;  %v1105_v2 = vmul.f32 %v4217_v13, %v5660_v63  ;;  %v1114_v35 = vmul.f32 %v4220_v57, %v5659_v27  ;;  %v1115_v11 = vmul.f32 %v4220_v57, %v5660_v63 }
 0x141   : >> { %v1124_v9 = vmul.f32 %v4223_v50, %v5659_v27  ;;  %v1125_v51 = vmul.f32 %v4223_v50, %v5660_v63  ;;  %v1134_v39 = vmul.f32 %v4226_v62, %v5659_v27  ;;  %v1135_v28 = vmul.f32 %v4226_v62, %v5660_v63 }
 0x142   : >> { %v1108_v22 = vadd.f32 %v1104_v26, %v4152_v1  ;;  %v1109_v13 = vadd.f32 %v1105_v2, %v4154_v49  ;;  %v1118_v57 = vadd.f32 %v1114_v35, %v4156_v19  ;;  %v1119_v16 = vadd.f32 %v1115_v11, %v4158_v52  ;;  %v1215_v11 = vpop.permute.xlu1 %1214 }
 0x143   : >> { %v1128_v50 = vadd.f32 %v1124_v9, %v4178_v36  ;;  %v1129_v31 = vadd.f32 %v1125_v51, %v4180_v44  ;;  %v1138_v37 = vadd.f32 %v1134_v39, %v4182_v46  ;;  %v1139_v62 = vadd.f32 %v1135_v28, %v5661_v12  ;;  %v1217_v32 = vpop.permute.xlu2 %1216 }
 0x144   : >> { %v1149_v1 = vsel %vm295_vm2, %v4262_v18, %v1147_v24  ;;  %v1151_v49 = vsel %vm295_vm2, %v1147_v24, %v4262_v18  ;;  %v4359_v19 = vstv %s4292_s11  ;;  %v4362_v52 = vstv %s4298_s14  ;;  %v1219_v45 = vpop.permute.xlu0 %1218  ;;  %s4628_s11 = sld [smem:[#allocation2 + $0x98]] }
 0x145   : >> { %v1156_v36 = vmul.f32 %v4245_v15, %v1149_v1  ;;  %v1157_v44 = vmul.f32 %v4245_v15, %v1151_v49  ;;  %v1166_v46 = vmul.f32 %v4248_v14, %v1149_v1  ;;  %v1167_v29 = vmul.f32 %v4248_v14, %v1151_v49  ;;  %s4642_s14 = sld [smem:[#allocation2 + $0x12]] }
 0x146   : >> { %v1176_v7 = vmul.f32 %v4251_v61, %v1149_v1  ;;  %v1177_v30 = vmul.f32 %v4251_v61, %v1151_v49  ;;  %v1186_v23 = vmul.f32 %v4254_v58, %v1149_v1  ;;  %v1187_v18 = vmul.f32 %v4254_v58, %v1151_v49 }
 0x147   : >> { %v4372_v10 = vadd.f32 %v1156_v36, %v1088_v6  ;;  %v4374_v5 = vadd.f32 %v1157_v44, %v1089_v4  ;;  %v4376_v15 = vadd.f32 %v1166_v46, %v1098_v20  ;;  %v4378_v47 = vadd.f32 %v1167_v29, %v1099_v54 }
 0x148   : >> { %v4380_v14 = vadd.f32 %v1176_v7, %v1108_v22  ;;  %v4382_v42 = vadd.f32 %v1177_v30, %v1109_v13  ;;  %v4384_v61 = vadd.f32 %v1186_v23, %v1118_v57  ;;  %v4386_v27 = vadd.f32 %v1187_v18, %v1119_v16 }
 0x149   : >> { %v1196_v58 = vmul.f32 %v4257_v55, %v1149_v1  ;;  %v1197_v40 = vmul.f32 %v4257_v55, %v1151_v49  ;;  %v1206_v63 = vmul.f32 %v4260_v53, %v1149_v1  ;;  %v1207_v25 = vmul.f32 %v4260_v53, %v1151_v49 }
 0x14a   : >> { %v1245_v6 = vstv %s4320_s15  ;;  %v1255_v4 = vstv %s4330_s16  ;;  %v1265_v20 = vstv %s4340_s19  ;;  %v1275_v54 = vstv %s4346_s20  ;;  %s4648_s15 = sld [smem:[#allocation2 + $0x2d]] }
 0x14b   : >> { %v4396_v24 = vadd.f32 %v1196_v58, %v1128_v50  ;;  %v4398_v26 = vadd.f32 %v1197_v40, %v1129_v31  ;;  %v4400_v2 = vadd.f32 %v1206_v63, %v1138_v37  ;;  %v4402_v35 = vadd.f32 %v1207_v25, %v1139_v62  ;;  %s4660_s16 = sld [smem:[#allocation2 + $0x48]] }
 0x14c   : >> { %v1220_v55 = vsel %vm368_vm3, %v1213_v33, %v1217_v32  ;;  %v1222_v53 = vsel %vm368_vm3, %v1217_v32, %v1213_v33  ;;  %v1221_v9 = vsel %vm368_vm3, %v1215_v11, %v1219_v45  ;;  %v1223_v51 = vsel %vm368_vm3, %v1219_v45, %v1215_v11  ;;  %s4670_s19 = sld [smem:[#allocation2 + $0x63]] }
 0x14d   : >> { %v1226_v39 = vmul.f32 %v4359_v19, %v1220_v55  ;;  %v1227_v28 = vmul.f32 %v4359_v19, %v1222_v53  ;;  %v1236_v22 = vmul.f32 %v4362_v52, %v1220_v55  ;;  %v1237_v13 = vmul.f32 %v4362_v52, %v1222_v53  ;;  %s4672_s20 = sld [smem:[#allocation2 + $0x7e]] }
 0x14e   : >> { %v1246_v57 = vmul.f32 %v1245_v6, %v1220_v55  ;;  %v1247_v33 = vmul.f32 %v1245_v6, %v1222_v53  ;;  %v1256_v16 = vmul.f32 %v1255_v4, %v1220_v55  ;;  %v1257_v50 = vmul.f32 %v1255_v4, %v1222_v53 }
 0x14f   : >> { %v4425_v31 = vadd.f32 %v1226_v39, %v4276_v0  ;;  %v4428_v37 = vadd.f32 %v1227_v28, %v4278_v38  ;;  %v4431_v12 = vadd.f32 %v1236_v22, %v4280_v17  ;;  %v4434_v62 = vadd.f32 %v1237_v13, %v4282_v3 }
 0x150   : >> { %v4439_v1 = vadd.f32 %v1246_v57, %v4284_v34  ;;  %v4442_v49 = vadd.f32 %v1247_v33, %v4286_v56  ;;  %v4445_v0 = vadd.f32 %v1256_v16, %v4288_v21  ;;  %v4448_v38 = vadd.f32 %v1257_v50, %v4290_v41 }
 0x151   : >> { %v1266_v17 = vmul.f32 %v1265_v20, %v1220_v55  ;;  %v1267_v36 = vmul.f32 %v1265_v20, %v1222_v53  ;;  %v1276_v3 = vmul.f32 %v1275_v54, %v1220_v55  ;;  %v1277_v44 = vmul.f32 %v1275_v54, %v1222_v53  ;;  %v5666_v55 = vld [vmem:[#allocation20_spill] sm:$0xff] }
 0x152   : >> { %v1228_v34 = vmul.f32 %v4359_v19, %v1221_v9  ;;  %v1229_v46 = vmul.f32 %v4359_v19, %v1223_v51  ;;  %v1238_v56 = vmul.f32 %v4362_v52, %v1221_v9  ;;  %v1239_v21 = vmul.f32 %v4362_v52, %v1223_v51 }
 0x153   : >> { %v4461_v41 = vadd.f32 %v1266_v17, %v4308_v8  ;;  %v4464_v29 = vadd.f32 %v1267_v36, %v4310_v60  ;;  %v4467_v7 = vadd.f32 %v1276_v3, %v4312_v59  ;;  %v4470_v30 = vadd.f32 %v1277_v44, %v4314_v48  ;;  %v4480_v60 = vpop.permute.xlu1 %1352 }
 0x154   : >> { %v1232_v19 = vadd.f32 %v1228_v34, %v4372_v10  ;;  %v1233_v52 = vadd.f32 %v1229_v46, %v4374_v5  ;;  %v1242_v23 = vadd.f32 %v1238_v56, %v4376_v15  ;;  %v1243_v8 = vadd.f32 %v1239_v21, %v4378_v47  ;;  %5664 = vst [vmem:[#allocation30_spill] sm:$0xff] %v4480_v60 }
 0x155   : >> { %5662 = vst [vmem:[#allocation27_spill] sm:$0xff] %v4467_v7  ;;  %v1248_v18 = vmul.f32 %v1245_v6, %v1221_v9  ;;  %v1249_v59 = vmul.f32 %v1245_v6, %v1223_v51  ;;  %v1258_v58 = vmul.f32 %v1255_v4, %v1221_v9  ;;  %v1259_v48 = vmul.f32 %v1255_v4, %v1223_v51  ;;  %v5667_v7 = vld [vmem:[#allocation19_spill] sm:$0xff] }
 0x156   : >> { %5663 = vst [vmem:[#allocation29_spill] sm:$0xff] %v4470_v30  ;;  %v1268_v10 = vmul.f32 %v1265_v20, %v1221_v9  ;;  %v1269_v5 = vmul.f32 %v1265_v20, %v1223_v51  ;;  %v1278_v40 = vmul.f32 %v1275_v54, %v1221_v9  ;;  %v1279_v15 = vmul.f32 %v1275_v54, %v1223_v51 }
 0x157   : >> { %v1252_v47 = vadd.f32 %v1248_v18, %v4380_v14  ;;  %v1253_v63 = vadd.f32 %v1249_v59, %v4382_v42  ;;  %v1262_v25 = vadd.f32 %v1258_v58, %v4384_v61  ;;  %v1263_v32 = vadd.f32 %v1259_v48, %v4386_v27  ;;  %v5665_v61 = vld [vmem:[#allocation22_spill] sm:$0xff] }
 0x158   : >> { %v1272_v45 = vadd.f32 %v1268_v10, %v4396_v24  ;;  %v1273_v6 = vadd.f32 %v1269_v5, %v4398_v26  ;;  %v1282_v4 = vadd.f32 %v1278_v40, %v4400_v2  ;;  %v1283_v20 = vadd.f32 %v1279_v15, %v4402_v35  ;;  %v1355_v5 = vpop.permute.xlu2 %1354 }
 0x159   : >> { %v1293_v54 = vstv %s4404_s21  ;;  %v1303_v14 = vstv %s4414_s8  ;;  %v4497_v11 = vstv %s4420_s22  ;;  %v4500_v42 = vstv %s4422_s23  ;;  %s4684_s21 = sld [smem:[#allocation2 + $0x99]] }
 0x15a   : >> { %v1296_v27 = vmul.f32 %v1293_v54, %v5665_v61  ;;  %v1297_v24 = vmul.f32 %v1293_v54, %v5666_v55  ;;  %v1306_v26 = vmul.f32 %v1303_v14, %v5665_v61  ;;  %v1307_v2 = vmul.f32 %v1303_v14, %v5666_v55  ;;  %s4692_s8 = sld [smem:[#allocation2 + $0x13]] }
 0x15b   : >> { %v1316_v35 = vmul.f32 %v4497_v11, %v5665_v61  ;;  %v1317_v53 = vmul.f32 %v4497_v11, %v5666_v55  ;;  %v1326_v9 = vmul.f32 %v4500_v42, %v5665_v61  ;;  %v1327_v51 = vmul.f32 %v4500_v42, %v5666_v55  ;;  %v1359_v34 = vpop.permute.xlu1 %1358  ;;  %s4694_s22 = sld [smem:[#allocation2 + $0x2e]] }
 0x15c   : >> { %v1333_v39 = vstv %s4436_s24  ;;  %v4516_v28 = vstv %s4450_s25  ;;  %v4519_v22 = vstv %s4452_s0  ;;  %v4522_v13 = vstv %s4458_s1  ;;  %s4696_s23 = sld [smem:[#allocation2 + $0x49]] }
 0x15d   : >> { %v1336_v57 = vmul.f32 %v1333_v39, %v5665_v61  ;;  %v1337_v33 = vmul.f32 %v1333_v39, %v5666_v55  ;;  %v1346_v16 = vmul.f32 %v4516_v28, %v5665_v61  ;;  %v1347_v50 = vmul.f32 %v4516_v28, %v5666_v55  ;;  %s4710_s24 = sld [smem:[#allocation2 + $0x64]] }
 0x15e   : >> { %v4531_v17 = vstv %s4472_s6  ;;  %v4534_v36 = vstv %s4478_s9  ;;  %v4537_v3 = vstv %s4482_s27  ;;  %v4540_v44 = vstv %s4484_s13  ;;  %s4724_s25 = sld [smem:[#allocation2 + $0x7f]] }
 0x15f   : >> { %v1300_v46 = vadd.f32 %v1296_v27, %v1232_v19  ;;  %v1301_v56 = vadd.f32 %v1297_v24, %v1233_v52  ;;  %v1310_v21 = vadd.f32 %v1306_v26, %v1242_v23  ;;  %v1311_v18 = vadd.f32 %v1307_v2, %v1243_v8  ;;  %v5668_v52 = vld [vmem:[#allocation21_spill] sm:$0xff]  ;;  %s4726_s0 = sld [smem:[#allocation2 + $0x9a]] }
 0x160   : >> { %v1320_v59 = vadd.f32 %v1316_v35, %v1252_v47  ;;  %v1321_v58 = vadd.f32 %v1317_v53, %v1253_v63  ;;  %v1330_v48 = vadd.f32 %v1326_v9, %v1262_v25  ;;  %v1331_v10 = vadd.f32 %v1327_v51, %v1263_v32  ;;  %s4823_s1 = sld [smem:[#allocation2 + $0x14]] }
 0x161   : >> { %v1340_v40 = vadd.f32 %v1336_v57, %v1272_v45  ;;  %v1341_v15 = vadd.f32 %v1337_v33, %v1273_v6  ;;  %v1350_v61 = vadd.f32 %v1346_v16, %v1282_v4  ;;  %v1351_v55 = vadd.f32 %v1347_v50, %v1283_v20  ;;  %s4829_s6 = sld [smem:[#allocation2 + $0x2f]] }
 0x162   : >> { %v1361_v60 = vsel %vm295_vm2, %v1355_v5, %v1359_v34  ;;  %v1363_v30 = vsel %vm295_vm2, %v1359_v34, %v1355_v5  ;;  %v1294_v19 = vmul.f32 %v1293_v54, %v5667_v7  ;;  %v1295_v23 = vmul.f32 %v1293_v54, %v5668_v52  ;;  %s4857_s9 = sld [smem:[#allocation2 + $0x65]] }
 0x163   : >> { %v1368_v8 = vmul.f32 %v4519_v22, %v1361_v60  ;;  %v1369_v47 = vmul.f32 %v4519_v22, %v1363_v30  ;;  %v1378_v63 = vmul.f32 %v4522_v13, %v1361_v60  ;;  %v1379_v25 = vmul.f32 %v4522_v13, %v1363_v30  ;;  %s4863_s27 = sld [smem:[#allocation2 + $0x80]] }
 0x164   : >> { %v1388_v32 = vmul.f32 %v4531_v17, %v1361_v60  ;;  %v1389_v45 = vmul.f32 %v4531_v17, %v1363_v30  ;;  %v1398_v6 = vmul.f32 %v4534_v36, %v1361_v60  ;;  %v1399_v4 = vmul.f32 %v4534_v36, %v1363_v30  ;;  %s4869_s13 = sld [smem:[#allocation2 + $0x9b]] }
 0x165   : >> { %v4556_v20 = vadd.f32 %v1368_v8, %v1300_v46  ;;  %v4558_v27 = vadd.f32 %v1369_v47, %v1301_v56  ;;  %v4560_v54 = vadd.f32 %v1378_v63, %v1310_v21  ;;  %v4562_v24 = vadd.f32 %v1379_v25, %v1311_v18 }
 0x166   : >> { %v4564_v26 = vadd.f32 %v1388_v32, %v1320_v59  ;;  %v4566_v2 = vadd.f32 %v1389_v45, %v1321_v58  ;;  %v4568_v35 = vadd.f32 %v1398_v6, %v1330_v48  ;;  %v4570_v53 = vadd.f32 %v1399_v4, %v1331_v10  ;;  %v1357_v10 = vpop.permute.xlu0 %1356 }
 0x167   : >> { %v1408_v9 = vmul.f32 %v4537_v3, %v1361_v60  ;;  %v1409_v51 = vmul.f32 %v4537_v3, %v1363_v30  ;;  %v1418_v57 = vmul.f32 %v4540_v44, %v1361_v60  ;;  %v1419_v33 = vmul.f32 %v4540_v44, %v1363_v30 }
 0x168   : >> { %v1304_v16 = vmul.f32 %v1303_v14, %v5667_v7  ;;  %v1305_v50 = vmul.f32 %v1303_v14, %v5668_v52  ;;  %v1314_v34 = vmul.f32 %v4497_v11, %v5667_v7  ;;  %v1315_v46 = vmul.f32 %v4497_v11, %v5668_v52 }
 0x169   : >> { %v4582_v56 = vadd.f32 %v1408_v9, %v1340_v40  ;;  %v4584_v21 = vadd.f32 %v1409_v51, %v1341_v15  ;;  %v4586_v18 = vadd.f32 %v1418_v57, %v1350_v61  ;;  %v4588_v59 = vadd.f32 %v1419_v33, %v1351_v55  ;;  %v5669_v55 = vld [vmem:[#allocation27_spill] sm:$0xff] }
 0x16a   : >> { %v1324_v30 = vmul.f32 %v4500_v42, %v5667_v7  ;;  %v1325_v60 = vmul.f32 %v4500_v42, %v5668_v52  ;;  %v1334_v14 = vmul.f32 %v1333_v39, %v5667_v7  ;;  %v1335_v11 = vmul.f32 %v1333_v39, %v5668_v52 }
 0x16b   : >> { %v1344_v58 = vmul.f32 %v4516_v28, %v5667_v7  ;;  %v1345_v48 = vmul.f32 %v4516_v28, %v5668_v52  ;;  %v1298_v5 = vadd.f32 %v1294_v19, %v4425_v31  ;;  %v1299_v40 = vadd.f32 %v1295_v23, %v4428_v37  ;;  %v5670_v19 = vld [vmem:[#allocation29_spill] sm:$0xff]  ;;  %v5671_v52 = vld [vmem:[#allocation30_spill] sm:$0xff]  ;;  %v1425_v23 = vpop.permute.xlu2 %1424 }
 0x16c   : >> { %v1308_v42 = vadd.f32 %v1304_v16, %v4431_v12  ;;  %v1309_v15 = vadd.f32 %v1305_v50, %v4434_v62  ;;  %v1318_v39 = vadd.f32 %v1314_v34, %v4439_v1  ;;  %v1319_v61 = vadd.f32 %v1315_v46, %v4442_v49  ;;  %v1429_v16 = vpop.permute.xlu1 %1428 }
 0x16d   : >> { %v1328_v7 = vadd.f32 %v1324_v30, %v4445_v0  ;;  %v1329_v28 = vadd.f32 %v1325_v60, %v4448_v38  ;;  %v1338_v31 = vadd.f32 %v1334_v14, %v4461_v41  ;;  %v1339_v37 = vadd.f32 %v1335_v11, %v4464_v29 }
 0x16e   : >> { %v1348_v12 = vadd.f32 %v1344_v58, %v5669_v55  ;;  %v1349_v62 = vadd.f32 %v1345_v48, %v5670_v19  ;;  %v1360_v1 = vsel %vm295_vm2, %v5671_v52, %v1357_v10  ;;  %v1362_v49 = vsel %vm295_vm2, %v1357_v10, %v5671_v52  ;;  %v1427_v19 = vpop.permute.xlu0 %1426 }
 0x16f   : >> { %v1366_v0 = vmul.f32 %v4519_v22, %v1360_v1  ;;  %v1367_v38 = vmul.f32 %v4519_v22, %v1362_v49  ;;  %v1376_v41 = vmul.f32 %v4522_v13, %v1360_v1  ;;  %v1377_v29 = vmul.f32 %v4522_v13, %v1362_v49 }
 0x170   : >> { %v1386_v8 = vmul.f32 %v4531_v17, %v1360_v1  ;;  %v1387_v47 = vmul.f32 %v4531_v17, %v1362_v49  ;;  %v1396_v63 = vmul.f32 %v4534_v36, %v1360_v1  ;;  %v1397_v25 = vmul.f32 %v4534_v36, %v1362_v49 }
 0x171   : >> { %v1370_v32 = vadd.f32 %v1366_v0, %v1298_v5  ;;  %v1371_v45 = vadd.f32 %v1367_v38, %v1299_v40  ;;  %v1380_v22 = vadd.f32 %v1376_v41, %v1308_v42  ;;  %v1381_v6 = vadd.f32 %v1377_v29, %v1309_v15 }
 0x172   : >> { %v1390_v4 = vadd.f32 %v1386_v8, %v1318_v39  ;;  %v1391_v9 = vadd.f32 %v1387_v47, %v1319_v61  ;;  %v1400_v13 = vadd.f32 %v1396_v63, %v1328_v7  ;;  %v1401_v51 = vadd.f32 %v1397_v25, %v1329_v28 }
 0x173   : >> { %v1406_v57 = vmul.f32 %v4537_v3, %v1360_v1  ;;  %v1407_v17 = vmul.f32 %v4537_v3, %v1362_v49  ;;  %v1416_v33 = vmul.f32 %v4540_v44, %v1360_v1  ;;  %v1417_v36 = vmul.f32 %v4540_v44, %v1362_v49 }
 0x174   : >> { %v1437_v50 = vstv %s4590_s28  ;;  %v1447_v34 = vstv %s4598_s4  ;;  %v1457_v46 = vstv %s4606_s17  ;;  %v1467_v30 = vstv %s4612_s18  ;;  %s4903_s28 = sld [smem:[#allocation2 + $0x15]] }
 0x175   : >> { %v1410_v60 = vadd.f32 %v1406_v57, %v1338_v31  ;;  %v1411_v14 = vadd.f32 %v1407_v17, %v1339_v37  ;;  %v1420_v11 = vadd.f32 %v1416_v33, %v1348_v12  ;;  %v1421_v58 = vadd.f32 %v1417_v36, %v1349_v62  ;;  %v1431_v62 = vpop.permute.xlu2 %1430  ;;  %s4915_s4 = sld [smem:[#allocation2 + $0x30]] }
 0x176   : >> { %v1477_v48 = vstv %s4618_s10  ;;  %v1487_v10 = vstv %s4628_s11  ;;  %v1432_v3 = vsel %vm368_vm3, %v1425_v23, %v1429_v16  ;;  %v1434_v44 = vsel %vm368_vm3, %v1429_v16, %v1425_v23  ;;  %s4921_s17 = sld [smem:[#allocation2 + $0x4b]] }
 0x177   : >> { %v1438_v5 = vmul.f32 %v1437_v50, %v1432_v3  ;;  %v1439_v40 = vmul.f32 %v1437_v50, %v1434_v44  ;;  %v1448_v42 = vmul.f32 %v1447_v34, %v1432_v3  ;;  %v1449_v15 = vmul.f32 %v1447_v34, %v1434_v44  ;;  %s4923_s18 = sld [smem:[#allocation2 + $0x66]] }
 0x178   : >> { %v1458_v39 = vmul.f32 %v1457_v46, %v1432_v3  ;;  %v1459_v61 = vmul.f32 %v1457_v46, %v1434_v44  ;;  %v1468_v7 = vmul.f32 %v1467_v30, %v1432_v3  ;;  %v1469_v28 = vmul.f32 %v1467_v30, %v1434_v44  ;;  %s4933_s10 = sld [smem:[#allocation2 + $0x81]] }
 0x179   : >> { %v4656_v31 = vadd.f32 %v1438_v5, %v1370_v32  ;;  %v1443_v37 = vadd.f32 %v1439_v40, %v1371_v45  ;;  %v4658_v55 = vadd.f32 %v1448_v42, %v1380_v22  ;;  %v1453_v12 = vadd.f32 %v1449_v15, %v1381_v6  ;;  %s4943_s11 = sld [smem:[#allocation2 + $0x9c]] }
 0x17a   : >> { %v4662_v52 = vadd.f32 %v1458_v39, %v1390_v4  ;;  %v4664_v1 = vadd.f32 %v1459_v61, %v1391_v9  ;;  %v4666_v49 = vadd.f32 %v1468_v7, %v1400_v13  ;;  %v4668_v0 = vadd.f32 %v1469_v28, %v1401_v51 }
 0x17b   : >> { %v1478_v38 = vmul.f32 %v1477_v48, %v1432_v3  ;;  %v1479_v41 = vmul.f32 %v1477_v48, %v1434_v44  ;;  %v1488_v29 = vmul.f32 %v1487_v10, %v1432_v3  ;;  %v1489_v23 = vmul.f32 %v1487_v10, %v1434_v44 }
 0x17c   : >> { %v1433_v8 = vsel %vm368_vm3, %v1427_v19, %v1431_v62  ;;  %v1435_v47 = vsel %vm368_vm3, %v1431_v62, %v1427_v19  ;;  %v4679_v63 = vstv %s4642_s14  ;;  %v4682_v25 = vstv %s4648_s15  ;;  %s4945_s14 = sld [smem:[#allocation2 + $0x16]] }
 0x17d   : >> { %v4686_v32 = vadd.f32 %v1478_v38, %v1410_v60  ;;  %v1483_v45 = vadd.f32 %v1479_v41, %v1411_v14  ;;  %v4688_v22 = vadd.f32 %v1488_v29, %v1420_v11  ;;  %v4690_v6 = vadd.f32 %v1489_v23, %v1421_v58  ;;  %v2540_v58 = vld [vmem:[%s2662_s7 + $0x88] sm:$0xff]  ;;  %v1564_v41 = vpop.permute.xlu0 %1563  ;;  %s4951_s15 = sld [smem:[#allocation2 + $0x31]] }
 0x17e   : >> { %v1440_v4 = vmul.f32 %v1437_v50, %v1433_v8  ;;  %v1441_v9 = vmul.f32 %v1437_v50, %v1435_v47  ;;  %v1450_v13 = vmul.f32 %v1447_v34, %v1433_v8  ;;  %v1451_v51 = vmul.f32 %v1447_v34, %v1435_v47 }
 0x17f   : >> { %v1460_v57 = vmul.f32 %v1457_v46, %v1433_v8  ;;  %v1461_v17 = vmul.f32 %v1457_v46, %v1435_v47  ;;  %v1470_v33 = vmul.f32 %v1467_v30, %v1433_v8  ;;  %v1471_v36 = vmul.f32 %v1467_v30, %v1435_v47 }
 0x180   : >> { %v4699_v16 = vadd.f32 %v1440_v4, %v4556_v20  ;;  %v4702_v60 = vadd.f32 %v1441_v9, %v4558_v27  ;;  %v4705_v50 = vadd.f32 %v1450_v13, %v4560_v54  ;;  %v4708_v34 = vadd.f32 %v1451_v51, %v4562_v24  ;;  %v1568_v4 = vpop.permute.xlu2 %1567  ;;  %v4780_v9 = vpop.permute.xlu1 %1565 }
 0x181   : >> { %v4713_v46 = vadd.f32 %v1460_v57, %v4564_v26  ;;  %v4716_v30 = vadd.f32 %v1461_v17, %v4566_v2  ;;  %v4719_v20 = vadd.f32 %v1470_v33, %v4568_v35  ;;  %v4722_v27 = vadd.f32 %v1471_v36, %v4570_v53  ;;  %v2539_v26 = vld [vmem:[%s2662_s7 + $0x80] sm:$0xff] }
 0x182   : >> { %v1480_v54 = vmul.f32 %v1477_v48, %v1433_v8  ;;  %v1481_v14 = vmul.f32 %v1477_v48, %v1435_v47  ;;  %v1490_v24 = vmul.f32 %v1487_v10, %v1433_v8  ;;  %v1491_v11 = vmul.f32 %v1487_v10, %v1435_v47 }
 0x183   : >> { %v1505_v2 = vmul.f32 %v2539_v26, %v4679_v63  ;;  %v1506_v35 = vmul.f32 %v2540_v58, %v4679_v63  ;;  %v1515_v53 = vmul.f32 %v2539_v26, %v4682_v25  ;;  %v1516_v3 = vmul.f32 %v2540_v58, %v4682_v25 }
 0x184   : >> { %v4735_v48 = vadd.f32 %v1480_v54, %v4582_v56  ;;  %v4738_v10 = vadd.f32 %v1481_v14, %v4584_v21  ;;  %v4741_v44 = vadd.f32 %v1490_v24, %v4586_v18  ;;  %v4744_v5 = vadd.f32 %v1491_v11, %v4588_v59 }
 0x185   : >> { %v1510_v40 = vadd.f32 %v1506_v35, %v1443_v37  ;;  %v1520_v42 = vadd.f32 %v1516_v3, %v1453_v12  ;;  %v4747_v15 = vstv %s4660_s16  ;;  %v4750_v39 = vstv %s4670_s19  ;;  %s4961_s16 = sld [smem:[#allocation2 + $0x4c]] }
 0x186   : >> { %v1525_v61 = vmul.f32 %v2539_v26, %v4747_v15  ;;  %v1526_v56 = vmul.f32 %v2540_v58, %v4747_v15  ;;  %v1535_v21 = vmul.f32 %v2539_v26, %v4750_v39  ;;  %v1536_v18 = vmul.f32 %v2540_v58, %v4750_v39  ;;  %s4967_s19 = sld [smem:[#allocation2 + $0x67]] }
 0x187   : >> { %v4757_v7 = vstv %s4672_s20  ;;  %v4760_v59 = vstv %s4684_s21  ;;  %v4763_v28 = vstv %s4692_s8  ;;  %v4766_v37 = vstv %s4694_s22  ;;  %s4969_s20 = sld [smem:[#allocation2 + $0x82]] }
 0x188   : >> { %v1530_v12 = vadd.f32 %v1526_v56, %v4664_v1  ;;  %v1540_v19 = vadd.f32 %v1536_v18, %v4668_v0  ;;  %v1545_v62 = vmul.f32 %v2539_v26, %v4757_v7  ;;  %v1546_v38 = vmul.f32 %v2540_v58, %v4757_v7  ;;  %s4971_s21 = sld [smem:[#allocation2 + $0x9d]] }
 0x189   : >> { %v1555_v29 = vmul.f32 %v2539_v26, %v4760_v59  ;;  %v1556_v23 = vmul.f32 %v2540_v58, %v4760_v59  ;;  %v4775_v8 = vstv %s4696_s23  ;;  %v4778_v47 = vstv %s4710_s24  ;;  %s5085_s8 = sld [smem:[#allocation2 + $0x17]] }
 0x18a   : >> { %v1550_v13 = vadd.f32 %v1546_v38, %v1483_v45  ;;  %v4783_v1 = vstv %s4724_s25  ;;  %v4786_v0 = vstv %s4726_s0  ;;  %v1509_v51 = vadd.f32 %v1505_v2, %v4656_v31  ;;  %v2542_v38 = vld [vmem:[%s2662_s7 + $0xa8] sm:$0xff]  ;;  %s5093_s22 = sld [smem:[#allocation2 + $0x32]] }
 0x18b   : >> { %v1560_v57 = vadd.f32 %v1556_v23, %v4690_v6  ;;  %v1519_v17 = vadd.f32 %v1515_v53, %v4658_v55  ;;  %v1529_v33 = vadd.f32 %v1525_v61, %v4662_v52  ;;  %v1539_v36 = vadd.f32 %v1535_v21, %v4666_v49  ;;  %s5103_s23 = sld [smem:[#allocation2 + $0x4d]] }
 0x18c   : >> { %v1549_v54 = vadd.f32 %v1545_v62, %v4686_v32  ;;  %v1559_v14 = vadd.f32 %v1555_v29, %v4688_v22  ;;  %v1571_v45 = vsel %vm295_vm2, %v1564_v41, %v1568_v4  ;;  %v1573_v24 = vsel %vm295_vm2, %v1568_v4, %v1564_v41  ;;  %s5111_s24 = sld [smem:[#allocation2 + $0x68]] }
 0x18d   : >> { %v1577_v31 = vmul.f32 %v4763_v28, %v1571_v45  ;;  %v1578_v6 = vmul.f32 %v4763_v28, %v1573_v24  ;;  %v1587_v55 = vmul.f32 %v4766_v37, %v1571_v45  ;;  %v1588_v52 = vmul.f32 %v4766_v37, %v1573_v24  ;;  %s5117_s25 = sld [smem:[#allocation2 + $0x83]] }
 0x18e   : >> { %v1597_v49 = vmul.f32 %v4775_v8, %v1571_v45  ;;  %v1598_v32 = vmul.f32 %v4775_v8, %v1573_v24  ;;  %v1607_v22 = vmul.f32 %v4778_v47, %v1571_v45  ;;  %v1608_v11 = vmul.f32 %v4778_v47, %v1573_v24  ;;  %s5125_s0 = sld [smem:[#allocation2 + $0x9e]] }
 0x18f   : >> { %v4807_v26 = vadd.f32 %v1577_v31, %v1509_v51  ;;  %v4809_v2 = vadd.f32 %v1578_v6, %v1510_v40  ;;  %v4811_v58 = vadd.f32 %v1587_v55, %v1519_v17  ;;  %v4813_v35 = vadd.f32 %v1588_v52, %v1520_v42  ;;  %v2541_v42 = vld [vmem:[%s2662_s7 + $0xa0] sm:$0xff]  ;;  %v1570_v31 = vpop.permute.xlu0 %1569  ;;  %s4851_s7 = sld [smem:[#allocation2 + $0x4a]] }
 0x190   : >> { %v4815_v53 = vadd.f32 %v1597_v49, %v1529_v33  ;;  %v4817_v3 = vadd.f32 %v1598_v32, %v1530_v12  ;;  %v4819_v61 = vadd.f32 %v1607_v22, %v1539_v36  ;;  %v4821_v56 = vadd.f32 %v1608_v11, %v1540_v19  ;;  %v4845_v33 = vpop.permute.xlu1 %1635 }
 0x191   : >> { %v1617_v21 = vmul.f32 %v4783_v1, %v1571_v45  ;;  %v1618_v18 = vmul.f32 %v4783_v1, %v1573_v24  ;;  %v1627_v40 = vmul.f32 %v4786_v0, %v1571_v45  ;;  %v1628_v62 = vmul.f32 %v4786_v0, %v1573_v24 }
 0x192   : >> { %v1507_v12 = vmul.f32 %v2541_v42, %v4679_v63  ;;  %v1508_v41 = vmul.f32 %v2542_v38, %v4679_v63  ;;  %v1517_v19 = vmul.f32 %v2541_v42, %v4682_v25  ;;  %v1518_v29 = vmul.f32 %v2542_v38, %v4682_v25 }
 0x193   : >> { %v4837_v23 = vadd.f32 %v1617_v21, %v1549_v54  ;;  %v4839_v4 = vadd.f32 %v1618_v18, %v1550_v13  ;;  %v4841_v51 = vadd.f32 %v1627_v40, %v1559_v14  ;;  %v4843_v17 = vadd.f32 %v1628_v62, %v1560_v57 }
 0x194   : >> { %v1527_v36 = vmul.f32 %v2541_v42, %v4747_v15  ;;  %v1528_v45 = vmul.f32 %v2542_v38, %v4747_v15  ;;  %v1537_v63 = vmul.f32 %v2541_v42, %v4750_v39  ;;  %v1538_v24 = vmul.f32 %v2542_v38, %v4750_v39 }
 0x195   : >> { %v1547_v25 = vmul.f32 %v2541_v42, %v4757_v7  ;;  %v1548_v13 = vmul.f32 %v2542_v38, %v4757_v7  ;;  %v1557_v57 = vmul.f32 %v2541_v42, %v4760_v59  ;;  %v1558_v54 = vmul.f32 %v2542_v38, %v4760_v59 }
 0x196   : >> { %v1511_v14 = vadd.f32 %v1507_v12, %v4699_v16  ;;  %v1512_v15 = vadd.f32 %v1508_v41, %v4702_v60  ;;  %v1521_v39 = vadd.f32 %v1517_v19, %v4705_v50  ;;  %v1522_v6 = vadd.f32 %v1518_v29, %v4708_v34 }
 0x197   : >> { %v1531_v7 = vadd.f32 %v1527_v36, %v4713_v46  ;;  %v1532_v55 = vadd.f32 %v1528_v45, %v4716_v30  ;;  %v1541_v59 = vadd.f32 %v1537_v63, %v4719_v20  ;;  %v1542_v52 = vadd.f32 %v1538_v24, %v4722_v27  ;;  %v1640_v19 = vpop.permute.xlu0 %1639 }
 0x198   : >> { %v1551_v16 = vadd.f32 %v1547_v25, %v4735_v48  ;;  %v1552_v60 = vadd.f32 %v1548_v13, %v4738_v10  ;;  %v1561_v50 = vadd.f32 %v1557_v57, %v4741_v44  ;;  %v1562_v34 = vadd.f32 %v1558_v54, %v4744_v5  ;;  %v1638_v57 = vpop.permute.xlu2 %1637 }
 0x199   : >> { %v1572_v46 = vsel %vm295_vm2, %v4780_v9, %v1570_v31  ;;  %v1574_v30 = vsel %vm295_vm2, %v1570_v31, %v4780_v9  ;;  %v4882_v20 = vstv %s4823_s1  ;;  %v4885_v27 = vstv %s4829_s6  ;;  %s5155_s1 = sld [smem:[#allocation2 + $0x18]] }
 0x19a   : >> { %v1579_v48 = vmul.f32 %v4763_v28, %v1572_v46  ;;  %v1580_v10 = vmul.f32 %v4763_v28, %v1574_v30  ;;  %v1589_v44 = vmul.f32 %v4766_v37, %v1572_v46  ;;  %v1590_v5 = vmul.f32 %v4766_v37, %v1574_v30  ;;  %s5161_s6 = sld [smem:[#allocation2 + $0x33]] }
 0x19b   : >> { %v1599_v49 = vmul.f32 %v4775_v8, %v1572_v46  ;;  %v1600_v32 = vmul.f32 %v4775_v8, %v1574_v30  ;;  %v1609_v22 = vmul.f32 %v4778_v47, %v1572_v46  ;;  %v1610_v9 = vmul.f32 %v4778_v47, %v1574_v30  ;;  %v1642_v47 = vpop.permute.xlu1 %1641 }
 0x19c   : >> { %v1583_v11 = vadd.f32 %v1579_v48, %v1511_v14  ;;  %v1584_v21 = vadd.f32 %v1580_v10, %v1512_v15  ;;  %v1593_v18 = vadd.f32 %v1589_v44, %v1521_v39  ;;  %v1594_v28 = vadd.f32 %v1590_v5, %v1522_v6 }
 0x19d   : >> { %v1603_v40 = vadd.f32 %v1599_v49, %v1531_v7  ;;  %v1604_v62 = vadd.f32 %v1600_v32, %v1532_v55  ;;  %v1613_v42 = vadd.f32 %v1609_v22, %v1541_v59  ;;  %v1614_v37 = vadd.f32 %v1610_v9, %v1542_v52 }
 0x19e   : >> { %v1619_v12 = vmul.f32 %v4783_v1, %v1572_v46  ;;  %v1620_v8 = vmul.f32 %v4783_v1, %v1574_v30  ;;  %v1629_v38 = vmul.f32 %v4786_v0, %v1572_v46  ;;  %v1630_v41 = vmul.f32 %v4786_v0, %v1574_v30 }
 0x19f   : >> { %v1668_v29 = vstv %s4851_s7  ;;  %v1678_v36 = vstv %s4857_s9  ;;  %v1688_v45 = vstv %s4863_s27  ;;  %v1698_v63 = vstv %s4869_s13  ;;  %s5177_s7 = sld [smem:[#allocation2 + $0x4e]] }
 0x1a0   : >> { %v1623_v24 = vadd.f32 %v1619_v12, %v1551_v16  ;;  %v1624_v31 = vadd.f32 %v1620_v8, %v1552_v60  ;;  %v1633_v25 = vadd.f32 %v1629_v38, %v1561_v50  ;;  %v1634_v13 = vadd.f32 %v1630_v41, %v1562_v34  ;;  %s5191_s9 = sld [smem:[#allocation2 + $0x69]] }
 0x1a1   : >> { %v1644_v1 = vsel %vm368_vm3, %v1638_v57, %v1642_v47  ;;  %v1646_v54 = vsel %vm368_vm3, %v1642_v47, %v1638_v57  ;;  %v1643_v0 = vsel %vm368_vm3, %v4845_v33, %v1640_v19  ;;  %v1645_v14 = vsel %vm368_vm3, %v1640_v19, %v4845_v33  ;;  %s5205_s27 = sld [smem:[#allocation2 + $0x84]] }
 0x1a2   : >> { %v1651_v15 = vmul.f32 %v4882_v20, %v1644_v1  ;;  %v1652_v39 = vmul.f32 %v4882_v20, %v1646_v54  ;;  %v1661_v6 = vmul.f32 %v4885_v27, %v1644_v1  ;;  %v1662_v7 = vmul.f32 %v4885_v27, %v1646_v54  ;;  %s5207_s13 = sld [smem:[#allocation2 + $0x9f]] }
 0x1a3   : >> { %v1671_v55 = vmul.f32 %v1668_v29, %v1644_v1  ;;  %v1672_v59 = vmul.f32 %v1668_v29, %v1646_v54  ;;  %v1681_v52 = vmul.f32 %v1678_v36, %v1644_v1  ;;  %v1682_v16 = vmul.f32 %v1678_v36, %v1646_v54 }
 0x1a4   : >> { %v4925_v60 = vadd.f32 %v1651_v15, %v1583_v11  ;;  %v4927_v33 = vadd.f32 %v1652_v39, %v1584_v21  ;;  %v4929_v50 = vadd.f32 %v1661_v6, %v1593_v18  ;;  %v4931_v34 = vadd.f32 %v1662_v7, %v1594_v28 }
 0x1a5   : >> { %v4935_v46 = vadd.f32 %v1671_v55, %v1603_v40  ;;  %v4937_v30 = vadd.f32 %v1672_v59, %v1604_v62  ;;  %v4939_v48 = vadd.f32 %v1681_v52, %v1613_v42  ;;  %v4941_v10 = vadd.f32 %v1682_v16, %v1614_v37 }
 0x1a6   : >> { %v1691_v44 = vmul.f32 %v1688_v45, %v1644_v1  ;;  %v1692_v5 = vmul.f32 %v1688_v45, %v1646_v54  ;;  %v1701_v49 = vmul.f32 %v1698_v63, %v1644_v1  ;;  %v1702_v32 = vmul.f32 %v1698_v63, %v1646_v54 }
 0x1a7   : >> { %v1649_v22 = vmul.f32 %v4882_v20, %v1643_v0  ;;  %v1650_v9 = vmul.f32 %v4882_v20, %v1645_v14  ;;  %v1659_v11 = vmul.f32 %v4885_v27, %v1643_v0  ;;  %v1660_v21 = vmul.f32 %v4885_v27, %v1645_v14 }
 0x1a8   : >> { %v4953_v18 = vadd.f32 %v1691_v44, %v1623_v24  ;;  %v4955_v28 = vadd.f32 %v1692_v5, %v1624_v31  ;;  %v4957_v40 = vadd.f32 %v1701_v49, %v1633_v25  ;;  %v4959_v62 = vadd.f32 %v1702_v32, %v1634_v13  ;;  %v1776_v32 = vpop.permute.xlu2 %1775 }
 0x1a9   : >> { %v1653_v42 = vadd.f32 %v1649_v22, %v4807_v26  ;;  %v1654_v20 = vadd.f32 %v1650_v9, %v4809_v2  ;;  %v1663_v37 = vadd.f32 %v1659_v11, %v4811_v58  ;;  %v1664_v27 = vadd.f32 %v1660_v21, %v4813_v35  ;;  %v1780_v22 = vpop.permute.xlu1 %1779 }
 0x1aa   : >> { %5672 = vst [vmem:[#allocation33_spill] sm:$0xff] %v4955_v28  ;;  %v1669_v12 = vmul.f32 %v1668_v29, %v1643_v0  ;;  %v1670_v8 = vmul.f32 %v1668_v29, %v1645_v14  ;;  %v1679_v38 = vmul.f32 %v1678_v36, %v1643_v0  ;;  %v1680_v41 = vmul.f32 %v1678_v36, %v1645_v14 }
 0x1ab   : >> { %5673 = vst [vmem:[#allocation34_spill] sm:$0xff] %v4957_v40  ;;  %v1689_v47 = vmul.f32 %v1688_v45, %v1643_v0  ;;  %v1690_v26 = vmul.f32 %v1688_v45, %v1645_v14  ;;  %v1699_v19 = vmul.f32 %v1698_v63, %v1643_v0  ;;  %v1700_v2 = vmul.f32 %v1698_v63, %v1645_v14  ;;  %v5677_v40 = vld [vmem:[#allocation31_spill] sm:$0xff] }
 0x1ac   : >> { %5674 = vst [vmem:[#allocation35_spill] sm:$0xff] %v4959_v62  ;;  %v1673_v58 = vadd.f32 %v1669_v12, %v4815_v53  ;;  %v1674_v35 = vadd.f32 %v1670_v8, %v4817_v3  ;;  %v1683_v29 = vadd.f32 %v1679_v38, %v4819_v61  ;;  %v1684_v24 = vadd.f32 %v1680_v41, %v4821_v56  ;;  %v5675_v56 = vld [vmem:[#allocation36_spill] sm:$0xff] }
 0x1ad   : >> { %v1693_v36 = vadd.f32 %v1689_v47, %v4837_v23  ;;  %v1694_v31 = vadd.f32 %v1690_v26, %v4839_v4  ;;  %v1703_v45 = vadd.f32 %v1699_v19, %v4841_v51  ;;  %v1704_v63 = vadd.f32 %v1700_v2, %v4843_v17  ;;  %v5676_v23 = vld [vmem:[#allocation28_spill] sm:$0xff] }
 0x1ae   : >> { %v1716_v25 = vstv %s4903_s28  ;;  %v4983_v53 = vstv %s4915_s4  ;;  %v4986_v3 = vstv %s4921_s17  ;;  %v4989_v61 = vstv %s4923_s18  ;;  %s5219_s28 = sld [smem:[#allocation2 + $0x19]] }
 0x1af   : >> { %v1717_v13 = vmul.f32 %v1716_v25, %v5675_v56  ;;  %v1718_v57 = vmul.f32 %v1716_v25, %v5676_v23  ;;  %v1727_v4 = vmul.f32 %v4983_v53, %v5675_v56  ;;  %v1728_v51 = vmul.f32 %v4983_v53, %v5676_v23  ;;  %s5233_s4 = sld [smem:[#allocation2 + $0x34]] }
 0x1b0   : >> { %v1737_v17 = vmul.f32 %v4986_v3, %v5675_v56  ;;  %v1738_v1 = vmul.f32 %v4986_v3, %v5676_v23  ;;  %v1747_v54 = vmul.f32 %v4989_v61, %v5675_v56  ;;  %v1748_v0 = vmul.f32 %v4989_v61, %v5676_v23  ;;  %s5235_s17 = sld [smem:[#allocation2 + $0x4f]] }
 0x1b1   : >> { %v5006_v14 = vstv %s4933_s10  ;;  %v5009_v15 = vstv %s4943_s11  ;;  %v5012_v39 = vstv %s4945_s14  ;;  %v5015_v6 = vstv %s4951_s15  ;;  %s5239_s18 = sld [smem:[#allocation2 + $0x6a]] }
 0x1b2   : >> { %v1757_v7 = vmul.f32 %v5006_v14, %v5675_v56  ;;  %v1758_v55 = vmul.f32 %v5006_v14, %v5676_v23  ;;  %v1767_v59 = vmul.f32 %v5009_v15, %v5675_v56  ;;  %v1768_v52 = vmul.f32 %v5009_v15, %v5676_v23  ;;  %s5245_s10 = sld [smem:[#allocation2 + $0x85]] }
 0x1b3   : >> { %v5026_v16 = vstv %s4961_s16  ;;  %v5029_v44 = vstv %s4967_s19  ;;  %v5032_v5 = vstv %s4969_s20  ;;  %v5035_v49 = vstv %s4971_s21  ;;  %s5251_s11 = sld [smem:[#allocation2 + $0xa0]] }
 0x1b4   : >> { %v1721_v9 = vadd.f32 %v1717_v13, %v1653_v42  ;;  %v1722_v11 = vadd.f32 %v1718_v57, %v1654_v20  ;;  %v1731_v21 = vadd.f32 %v1727_v4, %v1663_v37  ;;  %v1732_v12 = vadd.f32 %v1728_v51, %v1664_v27  ;;  %v5678_v42 = vld [vmem:[#allocation37_spill] sm:$0xff]  ;;  %v1778_v57 = vpop.permute.xlu0 %1777  ;;  %s5339_s14 = sld [smem:[#allocation2 + $0x1a]] }
 0x1b5   : >> { %v1741_v8 = vadd.f32 %v1737_v17, %v1673_v58  ;;  %v1742_v38 = vadd.f32 %v1738_v1, %v1674_v35  ;;  %v1751_v41 = vadd.f32 %v1747_v54, %v1683_v29  ;;  %v1752_v47 = vadd.f32 %v1748_v0, %v1684_v24  ;;  %s5345_s15 = sld [smem:[#allocation2 + $0x35]] }
 0x1b6   : >> { %v1761_v26 = vadd.f32 %v1757_v7, %v1693_v36  ;;  %v1762_v19 = vadd.f32 %v1758_v55, %v1694_v31  ;;  %v1771_v2 = vadd.f32 %v1767_v59, %v1703_v45  ;;  %v1772_v56 = vadd.f32 %v1768_v52, %v1704_v63  ;;  %s5371_s16 = sld [smem:[#allocation2 + $0x50]] }
 0x1b7   : >> { %v1783_v23 = vsel %vm295_vm2, %v1776_v32, %v1780_v22  ;;  %v1785_v62 = vsel %vm295_vm2, %v1780_v22, %v1776_v32  ;;  %v1719_v28 = vmul.f32 %v1716_v25, %v5677_v40  ;;  %v1720_v20 = vmul.f32 %v1716_v25, %v5678_v42  ;;  %s5381_s19 = sld [smem:[#allocation2 + $0x6b]] }
 0x1b8   : >> { %v1789_v37 = vmul.f32 %v5012_v39, %v1783_v23  ;;  %v1790_v27 = vmul.f32 %v5012_v39, %v1785_v62  ;;  %v1799_v58 = vmul.f32 %v5015_v6, %v1783_v23  ;;  %v1800_v35 = vmul.f32 %v5015_v6, %v1785_v62  ;;  %s5387_s20 = sld [smem:[#allocation2 + $0x86]] }
 0x1b9   : >> { %v1809_v29 = vmul.f32 %v5026_v16, %v1783_v23  ;;  %v1810_v24 = vmul.f32 %v5026_v16, %v1785_v62  ;;  %v1819_v36 = vmul.f32 %v5029_v44, %v1783_v23  ;;  %v1820_v31 = vmul.f32 %v5029_v44, %v1785_v62  ;;  %s5393_s21 = sld [smem:[#allocation2 + $0xa1]] }
 0x1ba   : >> { %v5051_v45 = vadd.f32 %v1789_v37, %v1721_v9  ;;  %v5053_v63 = vadd.f32 %v1790_v27, %v1722_v11  ;;  %v5055_v25 = vadd.f32 %v1799_v58, %v1731_v21  ;;  %v5057_v13 = vadd.f32 %v1800_v35, %v1732_v12 }
 0x1bb   : >> { %v5059_v4 = vadd.f32 %v1809_v29, %v1741_v8  ;;  %v5061_v51 = vadd.f32 %v1810_v24, %v1742_v38  ;;  %v5063_v17 = vadd.f32 %v1819_v36, %v1751_v41  ;;  %v5065_v1 = vadd.f32 %v1820_v31, %v1752_v47  ;;  %v1782_v8 = vpop.permute.xlu2 %1781 }
 0x1bc   : >> { %v1829_v54 = vmul.f32 %v5032_v5, %v1783_v23  ;;  %v1830_v0 = vmul.f32 %v5032_v5, %v1785_v62  ;;  %v1839_v7 = vmul.f32 %v5035_v49, %v1783_v23  ;;  %v1840_v55 = vmul.f32 %v5035_v49, %v1785_v62  ;;  %v5681_v23 = vld [vmem:[#allocation35_spill] sm:$0xff]  ;;  %v1848_v37 = vpop.permute.xlu0 %1847 }
 0x1bd   : >> { %v1723_v59 = vadd.f32 %v1719_v28, %v4925_v60  ;;  %v1724_v52 = vadd.f32 %v1720_v20, %v4927_v33  ;;  %v1729_v32 = vmul.f32 %v4983_v53, %v5677_v40  ;;  %v1730_v22 = vmul.f32 %v4983_v53, %v5678_v42 }
 0x1be   : >> { %v5077_v9 = vadd.f32 %v1829_v54, %v1761_v26  ;;  %v5079_v11 = vadd.f32 %v1830_v0, %v1762_v19  ;;  %v5081_v21 = vadd.f32 %v1839_v7, %v1771_v2  ;;  %v5083_v12 = vadd.f32 %v1840_v55, %v1772_v56  ;;  %v5679_v2 = vld [vmem:[#allocation33_spill] sm:$0xff] }
 0x1bf   : >> { %v1733_v60 = vadd.f32 %v1729_v32, %v4929_v50  ;;  %v1734_v33 = vadd.f32 %v1730_v22, %v4931_v34  ;;  %v1739_v28 = vmul.f32 %v4986_v3, %v5677_v40  ;;  %v1740_v62 = vmul.f32 %v4986_v3, %v5678_v42 }
 0x1c0   : >> { %v1749_v53 = vmul.f32 %v4989_v61, %v5677_v40  ;;  %v1750_v38 = vmul.f32 %v4989_v61, %v5678_v42  ;;  %v1759_v41 = vmul.f32 %v5006_v14, %v5677_v40  ;;  %v1760_v50 = vmul.f32 %v5006_v14, %v5678_v42 }
 0x1c1   : >> { %v1743_v34 = vadd.f32 %v1739_v28, %v4935_v46  ;;  %v1744_v3 = vadd.f32 %v1740_v62, %v4937_v30  ;;  %v1769_v47 = vmul.f32 %v5009_v15, %v5677_v40  ;;  %v1770_v26 = vmul.f32 %v5009_v15, %v5678_v42  ;;  %v5680_v46 = vld [vmem:[#allocation34_spill] sm:$0xff]  ;;  %v1850_v62 = vpop.permute.xlu1 %1849 }
 0x1c2   : >> { %v1753_v61 = vadd.f32 %v1749_v53, %v4939_v48  ;;  %v1754_v19 = vadd.f32 %v1750_v38, %v4941_v10  ;;  %v1763_v14 = vadd.f32 %v1759_v41, %v4953_v18  ;;  %v1764_v56 = vadd.f32 %v1760_v50, %v5679_v2 }
 0x1c3   : >> { %v1773_v30 = vadd.f32 %v1769_v47, %v5680_v46  ;;  %v1774_v20 = vadd.f32 %v1770_v26, %v5681_v23  ;;  %v1784_v40 = vsel %vm295_vm2, %v1778_v57, %v1782_v8  ;;  %v1786_v15 = vsel %vm295_vm2, %v1782_v8, %v1778_v57 }
 0x1c4   : >> { %v1791_v48 = vmul.f32 %v5012_v39, %v1784_v40  ;;  %v1792_v10 = vmul.f32 %v5012_v39, %v1786_v15  ;;  %v1801_v18 = vmul.f32 %v5015_v6, %v1784_v40  ;;  %v1802_v42 = vmul.f32 %v5015_v6, %v1786_v15  ;;  %v1854_v23 = vpop.permute.xlu0 %1853 }
 0x1c5   : >> { %v1811_v27 = vmul.f32 %v5026_v16, %v1784_v40  ;;  %v1812_v58 = vmul.f32 %v5026_v16, %v1786_v15  ;;  %v1821_v35 = vmul.f32 %v5029_v44, %v1784_v40  ;;  %v1822_v29 = vmul.f32 %v5029_v44, %v1786_v15 }
 0x1c6   : >> { %v5135_v24 = vadd.f32 %v1791_v48, %v1723_v59  ;;  %v5137_v36 = vadd.f32 %v1792_v10, %v1724_v52  ;;  %v5139_v39 = vadd.f32 %v1801_v18, %v1733_v60  ;;  %v5141_v6 = vadd.f32 %v1802_v42, %v1734_v33  ;;  %v1852_v59 = vpop.permute.xlu2 %1851 }
 0x1c7   : >> { %v5143_v31 = vadd.f32 %v1811_v27, %v1743_v34  ;;  %v5145_v57 = vadd.f32 %v1812_v58, %v1744_v3  ;;  %v5147_v16 = vadd.f32 %v1821_v35, %v1753_v61  ;;  %v5149_v54 = vadd.f32 %v1822_v29, %v1754_v19 }
 0x1c8   : >> { %v1831_v44 = vmul.f32 %v5032_v5, %v1784_v40  ;;  %v1832_v0 = vmul.f32 %v5032_v5, %v1786_v15  ;;  %v1841_v7 = vmul.f32 %v5035_v49, %v1784_v40  ;;  %v1842_v55 = vmul.f32 %v5035_v49, %v1786_v15 }
 0x1c9   : >> { %v1860_v52 = vstv %s5085_s8  ;;  %v1870_v32 = vstv %s5093_s22  ;;  %v1880_v22 = vstv %s5103_s23  ;;  %v1890_v8 = vstv %s5111_s24  ;;  %s5690_s8 = sshll.u32 %s2656_s5, 3 }
 0x1ca   : >> { %v5163_v60 = vadd.f32 %v1831_v44, %v1763_v14  ;;  %v5165_v33 = vadd.f32 %v1832_v0, %v1764_v56  ;;  %v5167_v28 = vadd.f32 %v1841_v7, %v1773_v30  ;;  %v5169_v5 = vadd.f32 %v1842_v55, %v1774_v20  ;;  %v5237_v44 = vpop.permute.xlu1 %1987  ;;  %s5434_s22 = scalar_lea.vmem %s2648_s29, %s5690_s8 }
 0x1cb   : >> { %v1900_v53 = vstv %s5117_s25  ;;  %v1910_v49 = vstv %s5125_s0  ;;  %v1855_v38 = vsel %vm368_vm3, %v1848_v37, %v1852_v59  ;;  %v1857_v41 = vsel %vm368_vm3, %v1852_v59, %v1848_v37  ;;  %5683 = vst [vmem:[#allocation9_spill] sm:$0xff] %v5237_v44 }
 0x1cc   : >> { %v1861_v50 = vmul.f32 %v1860_v52, %v1855_v38  ;;  %v1862_v34 = vmul.f32 %v1860_v52, %v1857_v41  ;;  %v1871_v3 = vmul.f32 %v1870_v32, %v1855_v38  ;;  %v1872_v47 = vmul.f32 %v1870_v32, %v1857_v41 }
 0x1cd   : >> { %v1881_v26 = vmul.f32 %v1880_v22, %v1855_v38  ;;  %v1882_v61 = vmul.f32 %v1880_v22, %v1857_v41  ;;  %v1891_v19 = vmul.f32 %v1890_v8, %v1855_v38  ;;  %v1892_v14 = vmul.f32 %v1890_v8, %v1857_v41 }
 0x1ce   : >> { %v5180_v2 = vadd.f32 %v1861_v50, %v5051_v45  ;;  %v5183_v56 = vadd.f32 %v1862_v34, %v5053_v63  ;;  %v5186_v46 = vadd.f32 %v1871_v3, %v5055_v25  ;;  %v5189_v30 = vadd.f32 %v1872_v47, %v5057_v13 }
 0x1cf   : >> { %v5194_v20 = vadd.f32 %v1881_v26, %v5059_v4  ;;  %v5197_v45 = vadd.f32 %v1882_v61, %v5061_v51  ;;  %v5200_v63 = vadd.f32 %v1891_v19, %v5063_v17  ;;  %v5203_v25 = vadd.f32 %v1892_v14, %v5065_v1 }
 0x1d0   : >> { %v1901_v13 = vmul.f32 %v1900_v53, %v1855_v38  ;;  %v1902_v40 = vmul.f32 %v1900_v53, %v1857_v41  ;;  %v1911_v15 = vmul.f32 %v1910_v49, %v1855_v38  ;;  %v1912_v48 = vmul.f32 %v1910_v49, %v1857_v41 }
 0x1d1   : >> { %v1856_v4 = vsel %vm368_vm3, %v1850_v62, %v1854_v23  ;;  %v1858_v51 = vsel %vm368_vm3, %v1854_v23, %v1850_v62  ;;  %v5214_v10 = vstv %s5155_s1  ;;  %v5217_v17 = vstv %s5161_s6  ;;  %v5684_v62 = vld [vmem:[#allocation41_spill] sm:$0xff] }
 0x1d2   : >> { %v5222_v1 = vadd.f32 %v1901_v13, %v5077_v9  ;;  %v5225_v18 = vadd.f32 %v1902_v40, %v5079_v11  ;;  %v5228_v42 = vadd.f32 %v1911_v15, %v5081_v21  ;;  %v5231_v37 = vadd.f32 %v1912_v48, %v5083_v12 }
 0x1d3   : >> { %v1863_v27 = vmul.f32 %v1860_v52, %v1856_v4  ;;  %v1864_v58 = vmul.f32 %v1860_v52, %v1858_v51  ;;  %v1873_v35 = vmul.f32 %v1870_v32, %v1856_v4  ;;  %v1874_v29 = vmul.f32 %v1870_v32, %v1858_v51 }
 0x1d4   : >> { %5682 = vst [vmem:[#allocation45_spill] sm:$0xff] %v5231_v37  ;;  %v1883_v9 = vmul.f32 %v1880_v22, %v1856_v4  ;;  %v1884_v0 = vmul.f32 %v1880_v22, %v1858_v51  ;;  %v1893_v11 = vmul.f32 %v1890_v8, %v1856_v4  ;;  %v1894_v7 = vmul.f32 %v1890_v8, %v1858_v51 }
 0x1d5   : >> { %v1867_v21 = vadd.f32 %v1863_v27, %v5135_v24  ;;  %v1868_v12 = vadd.f32 %v1864_v58, %v5137_v36  ;;  %v1877_v55 = vadd.f32 %v1873_v35, %v5139_v39  ;;  %v1878_v59 = vadd.f32 %v1874_v29, %v5141_v6  ;;  %v1994_v27 = vpop.permute.xlu1 %1993  ;;  %v1990_v29 = vpop.permute.xlu2 %1989 }
 0x1d6   : >> { %v1887_v52 = vadd.f32 %v1883_v9, %v5143_v31  ;;  %v1888_v32 = vadd.f32 %v1884_v0, %v5145_v57  ;;  %v1897_v22 = vadd.f32 %v1893_v11, %v5147_v16  ;;  %v1898_v8 = vadd.f32 %v1894_v7, %v5149_v54  ;;  %v5685_v31 = vld [vmem:[#allocation39_spill] sm:$0xff] }
 0x1d7   : >> { %v1903_v24 = vmul.f32 %v1900_v53, %v1856_v4  ;;  %v1904_v36 = vmul.f32 %v1900_v53, %v1858_v51  ;;  %v1913_v39 = vmul.f32 %v1910_v49, %v1856_v4  ;;  %v1914_v6 = vmul.f32 %v1910_v49, %v1858_v51 }
 0x1d8   : >> { %v1931_v38 = vmul.f32 %v5214_v10, %v5684_v62  ;;  %v1932_v57 = vmul.f32 %v5214_v10, %v5685_v31  ;;  %v1941_v16 = vmul.f32 %v5217_v17, %v5684_v62  ;;  %v1942_v54 = vmul.f32 %v5217_v17, %v5685_v31 }
 0x1d9   : >> { %v1907_v41 = vadd.f32 %v1903_v24, %v5163_v60  ;;  %v1908_v50 = vadd.f32 %v1904_v36, %v5165_v33  ;;  %v1917_v53 = vadd.f32 %v1913_v39, %v5167_v28  ;;  %v1918_v49 = vadd.f32 %v1914_v6, %v5169_v5 }
 0x1da   : >> { %v5266_v34 = vstv %s5177_s7  ;;  %v5269_v3 = vstv %s5191_s9  ;;  %v5272_v47 = vstv %s5205_s27  ;;  %v5275_v26 = vstv %s5207_s13 }
 0x1db   : >> { %v1951_v60 = vmul.f32 %v5266_v34, %v5684_v62  ;;  %v1952_v33 = vmul.f32 %v5266_v34, %v5685_v31  ;;  %v1961_v28 = vmul.f32 %v5269_v3, %v5684_v62  ;;  %v1962_v5 = vmul.f32 %v5269_v3, %v5685_v31 }
 0x1dc   : >> { %v1971_v61 = vmul.f32 %v5272_v47, %v5684_v62  ;;  %v1972_v19 = vmul.f32 %v5272_v47, %v5685_v31  ;;  %v1981_v14 = vmul.f32 %v5275_v26, %v5684_v62  ;;  %v1982_v23 = vmul.f32 %v5275_v26, %v5685_v31 }
 0x1dd   : >> { %v5294_v13 = vstv %s5219_s28  ;;  %v5297_v40 = vstv %s5233_s4  ;;  %v5300_v15 = vstv %s5235_s17  ;;  %v5303_v48 = vstv %s5239_s18 }
 0x1de   : >> { %v5306_v4 = vstv %s5245_s10  ;;  %v5309_v51 = vstv %s5251_s11  ;;  %v1935_v58 = vadd.f32 %v1931_v38, %v1867_v21  ;;  %v1936_v35 = vadd.f32 %v1932_v57, %v1868_v12 }
 0x1df   : >> { %v1945_v9 = vadd.f32 %v1941_v16, %v1877_v55  ;;  %v1946_v0 = vadd.f32 %v1942_v54, %v1878_v59  ;;  %v1955_v11 = vadd.f32 %v1951_v60, %v1887_v52  ;;  %v1956_v7 = vadd.f32 %v1952_v33, %v1888_v32 }
 0x1e0   : >> { %v1965_v24 = vadd.f32 %v1961_v28, %v1897_v22  ;;  %v1966_v36 = vadd.f32 %v1962_v5, %v1898_v8  ;;  %v1975_v39 = vadd.f32 %v1971_v61, %v1907_v41  ;;  %v1976_v6 = vadd.f32 %v1972_v19, %v1908_v50  ;;  %v5686_v61 = vld [vmem:[#allocation38_spill] sm:$0xff] }
 0x1e1   : >> { %v1985_v62 = vadd.f32 %v1981_v14, %v1917_v53  ;;  %v1986_v31 = vadd.f32 %v1982_v23, %v1918_v49  ;;  %v1996_v44 = vsel %vm295_vm2, %v1990_v29, %v1994_v27  ;;  %v1998_v37 = vsel %vm295_vm2, %v1994_v27, %v1990_v29  ;;  %v5687_v14 = vld [vmem:[#allocation40_spill] sm:$0xff] }
 0x1e2   : >> { %v2003_v21 = vmul.f32 %v5294_v13, %v1996_v44  ;;  %v2004_v12 = vmul.f32 %v5294_v13, %v1998_v37  ;;  %v2013_v55 = vmul.f32 %v5297_v40, %v1996_v44  ;;  %v2014_v59 = vmul.f32 %v5297_v40, %v1998_v37 }
 0x1e3   : >> { %v2023_v52 = vmul.f32 %v5300_v15, %v1996_v44  ;;  %v2024_v32 = vmul.f32 %v5300_v15, %v1998_v37  ;;  %v2033_v22 = vmul.f32 %v5303_v48, %v1996_v44  ;;  %v2034_v8 = vmul.f32 %v5303_v48, %v1998_v37 }
 0x1e4   : >> { %v5323_v38 = vadd.f32 %v2003_v21, %v1935_v58  ;;  %v5325_v57 = vadd.f32 %v2004_v12, %v1936_v35  ;;  %v5327_v16 = vadd.f32 %v2013_v55, %v1945_v9  ;;  %v5329_v54 = vadd.f32 %v2014_v59, %v1946_v0  ;;  %v5688_v55 = vld [vmem:[#allocation45_spill] sm:$0xff] }
 0x1e5   : >> { %v5331_v41 = vadd.f32 %v2023_v52, %v1955_v11  ;;  %v5333_v50 = vadd.f32 %v2024_v32, %v1956_v7  ;;  %v5335_v53 = vadd.f32 %v2033_v22, %v1965_v24  ;;  %v5337_v49 = vadd.f32 %v2034_v8, %v1966_v36  ;;  %v1992_v11 = vpop.permute.xlu0 %1991  ;;  %v2060_v7 = vpop.permute.xlu2 %2059  ;;  %v5689_v59 = vld [vmem:[#allocation9_spill] sm:$0xff] }
 0x1e6   : >> { %v2043_v60 = vmul.f32 %v5306_v4, %v1996_v44  ;;  %v2044_v33 = vmul.f32 %v5306_v4, %v1998_v37  ;;  %v2053_v28 = vmul.f32 %v5309_v51, %v1996_v44  ;;  %v2054_v5 = vmul.f32 %v5309_v51, %v1998_v37 }
 0x1e7   : >> { %v1929_v19 = vmul.f32 %v5214_v10, %v5686_v61  ;;  %v1930_v23 = vmul.f32 %v5214_v10, %v5687_v14  ;;  %v1939_v27 = vmul.f32 %v5217_v17, %v5686_v61  ;;  %v1940_v58 = vmul.f32 %v5217_v17, %v5687_v14 }
 0x1e8   : >> { %v5355_v35 = vadd.f32 %v2043_v60, %v1975_v39  ;;  %v5357_v29 = vadd.f32 %v2044_v33, %v1976_v6  ;;  %v5359_v44 = vadd.f32 %v2053_v28, %v1985_v62  ;;  %v5361_v37 = vadd.f32 %v2054_v5, %v1986_v31 }
 0x1e9   : >> { %v1949_v9 = vmul.f32 %v5266_v34, %v5686_v61  ;;  %v1950_v10 = vmul.f32 %v5266_v34, %v5687_v14  ;;  %v1959_v0 = vmul.f32 %v5269_v3, %v5686_v61  ;;  %v1960_v17 = vmul.f32 %v5269_v3, %v5687_v14 }
 0x1ea   : >> { %v1969_v24 = vmul.f32 %v5272_v47, %v5686_v61  ;;  %v1970_v36 = vmul.f32 %v5272_v47, %v5687_v14  ;;  %v1979_v39 = vmul.f32 %v5275_v26, %v5686_v61  ;;  %v1980_v34 = vmul.f32 %v5275_v26, %v5687_v14 }
 0x1eb   : >> { %v1933_v3 = vadd.f32 %v1929_v19, %v5180_v2  ;;  %v1934_v6 = vadd.f32 %v1930_v23, %v5183_v56  ;;  %v1943_v62 = vadd.f32 %v1939_v27, %v5186_v46  ;;  %v1944_v31 = vadd.f32 %v1940_v58, %v5189_v30  ;;  %v2064_v23 = vpop.permute.xlu1 %2063 }
 0x1ec   : >> { %v1953_v47 = vadd.f32 %v1949_v9, %v5194_v20  ;;  %v1954_v21 = vadd.f32 %v1950_v10, %v5197_v45  ;;  %v1963_v26 = vadd.f32 %v1959_v0, %v5200_v63  ;;  %v1964_v12 = vadd.f32 %v1960_v17, %v5203_v25 }
 0x1ed   : >> { %v1973_v2 = vadd.f32 %v1969_v24, %v5222_v1  ;;  %v1974_v56 = vadd.f32 %v1970_v36, %v5225_v18  ;;  %v1983_v46 = vadd.f32 %v1979_v39, %v5228_v42  ;;  %v1984_v30 = vadd.f32 %v1980_v34, %v5688_v55  ;;  %v2062_v9 = vpop.permute.xlu0 %2061  ;;  %v2066_v10 = vpop.permute.xlu2 %2065 }
 0x1ee   : >> { %v1995_v20 = vsel %vm295_vm2, %v5689_v59, %v1992_v11  ;;  %v1997_v45 = vsel %vm295_vm2, %v1992_v11, %v5689_v59  ;;  %v2072_v63 = vstv %s5339_s14  ;;  %v2082_v25 = vstv %s5345_s15 }
 0x1ef   : >> { %v2001_v52 = vmul.f32 %v5294_v13, %v1995_v20  ;;  %v2002_v1 = vmul.f32 %v5294_v13, %v1997_v45  ;;  %v2011_v18 = vmul.f32 %v5297_v40, %v1995_v20  ;;  %v2012_v42 = vmul.f32 %v5297_v40, %v1997_v45 }
 0x1f0   : >> { %v2021_v32 = vmul.f32 %v5300_v15, %v1995_v20  ;;  %v2022_v22 = vmul.f32 %v5300_v15, %v1997_v45  ;;  %v2031_v8 = vmul.f32 %v5303_v48, %v1995_v20  ;;  %v2032_v60 = vmul.f32 %v5303_v48, %v1997_v45 }
 0x1f1   : >> { %v2005_v33 = vadd.f32 %v2001_v52, %v1933_v3  ;;  %v2006_v28 = vadd.f32 %v2002_v1, %v1934_v6  ;;  %v2015_v5 = vadd.f32 %v2011_v18, %v1943_v62  ;;  %v2016_v13 = vadd.f32 %v2012_v42, %v1944_v31 }
 0x1f2   : >> { %v2025_v61 = vadd.f32 %v2021_v32, %v1953_v47  ;;  %v2026_v19 = vadd.f32 %v2022_v22, %v1954_v21  ;;  %v2035_v14 = vadd.f32 %v2031_v8, %v1963_v26  ;;  %v2036_v40 = vadd.f32 %v2032_v60, %v1964_v12 }
 0x1f3   : >> { %v2041_v27 = vmul.f32 %v5306_v4, %v1995_v20  ;;  %v2042_v15 = vmul.f32 %v5306_v4, %v1997_v45  ;;  %v2051_v58 = vmul.f32 %v5309_v51, %v1995_v20  ;;  %v2052_v48 = vmul.f32 %v5309_v51, %v1997_v45 }
 0x1f4   : >> { %v2092_v0 = vstv %s5371_s16  ;;  %v2102_v17 = vstv %s5381_s19  ;;  %v2112_v11 = vstv %s5387_s20  ;;  %v2122_v24 = vstv %s5393_s21 }
 0x1f5   : >> { %v2045_v36 = vadd.f32 %v2041_v27, %v1973_v2  ;;  %v2046_v39 = vadd.f32 %v2042_v15, %v1974_v56  ;;  %v2055_v34 = vadd.f32 %v2051_v58, %v1983_v46  ;;  %v2056_v3 = vadd.f32 %v2052_v48, %v1984_v30 }
 0x1f6   : >> { %v2067_v6 = vsel %vm368_vm3, %v2060_v7, %v2064_v23  ;;  %v2069_v4 = vsel %vm368_vm3, %v2064_v23, %v2060_v7  ;;  %v2068_v51 = vsel %vm368_vm3, %v2062_v9, %v2066_v10  ;;  %v2070_v62 = vsel %vm368_vm3, %v2066_v10, %v2062_v9 }
 0x1f7   : >> { %v2073_v31 = vmul.f32 %v2072_v63, %v2067_v6  ;;  %v2074_v47 = vmul.f32 %v2072_v63, %v2069_v4  ;;  %v2083_v21 = vmul.f32 %v2082_v25, %v2067_v6  ;;  %v2084_v26 = vmul.f32 %v2082_v25, %v2069_v4 }
 0x1f8   : >> { %v2093_v12 = vmul.f32 %v2092_v0, %v2067_v6  ;;  %v2094_v2 = vmul.f32 %v2092_v0, %v2069_v4  ;;  %v2103_v56 = vmul.f32 %v2102_v17, %v2067_v6  ;;  %v2104_v46 = vmul.f32 %v2102_v17, %v2069_v4 }
 0x1f9   : >> { %v2077_v7 = vadd.f32 %v2073_v31, %v2005_v33  ;;  %v2078_v55 = vadd.f32 %v2074_v47, %v2006_v28  ;;  %v2087_v30 = vadd.f32 %v2083_v21, %v2015_v5  ;;  %v2088_v59 = vadd.f32 %v2084_v26, %v2016_v13 }
 0x1fa   : >> { %v2097_v20 = vadd.f32 %v2093_v12, %v2025_v61  ;;  %v2098_v43 = vadd.f32 %v2094_v2, %v2026_v19  ;;  %v2107_v45 = vadd.f32 %v2103_v56, %v2035_v14  ;;  %v2108_v52 = vadd.f32 %v2104_v46, %v2036_v40 }
 0x1fb   : >> { %v2113_v1 = vmul.f32 %v2112_v11, %v2067_v6  ;;  %v2114_v18 = vmul.f32 %v2112_v11, %v2069_v4  ;;  %v2123_v42 = vmul.f32 %v2122_v24, %v2067_v6  ;;  %v2124_v32 = vmul.f32 %v2122_v24, %v2069_v4  ;;  %2133 = vst [vmem:[%s5434_s22] sm:$0xff] %v2077_v7 }
 0x1fc   : >> { %2134 = vst [vmem:[%s5434_s22 + $0x8] sm:$0xff] %v2078_v55  ;;  %v2075_v22 = vmul.f32 %v2072_v63, %v2068_v51  ;;  %v2076_v8 = vmul.f32 %v2072_v63, %v2070_v62  ;;  %v2085_v60 = vmul.f32 %v2082_v25, %v2068_v51  ;;  %v2086_v33 = vmul.f32 %v2082_v25, %v2070_v62 }
 0x1fd   : >> { %v2117_v28 = vadd.f32 %v2113_v1, %v2045_v36  ;;  %v2118_v5 = vadd.f32 %v2114_v18, %v2046_v39  ;;  %v2127_v13 = vadd.f32 %v2123_v42, %v2055_v34  ;;  %v2128_v61 = vadd.f32 %v2124_v32, %v2056_v3  ;;  %2468 = vst [vmem:[%s5434_s22 + $0x40] sm:$0xff] %v2087_v30 }
 0x1fe   : >> { %2469 = vst [vmem:[%s5434_s22 + $0x48] sm:$0xff] %v2088_v59  ;;  %v2079_v19 = vadd.f32 %v2075_v22, %v5323_v38  ;;  %v2080_v14 = vadd.f32 %v2076_v8, %v5325_v57  ;;  %v2089_v40 = vadd.f32 %v2085_v60, %v5327_v16  ;;  %v2090_v23 = vadd.f32 %v2086_v33, %v5329_v54 }
 0x1ff   : >> { %2473 = vst [vmem:[%s5434_s22 + $0x80] sm:$0xff] %v2097_v20  ;;  %v2095_v63 = vmul.f32 %v2092_v0, %v2068_v51  ;;  %v2096_v25 = vmul.f32 %v2092_v0, %v2070_v62  ;;  %v2105_v27 = vmul.f32 %v2102_v17, %v2068_v51  ;;  %v2106_v15 = vmul.f32 %v2102_v17, %v2070_v62 }
 0x200   : >> { %2474 = vst [vmem:[%s5434_s22 + $0x88] sm:$0xff] %v2098_v43  ;;  %v2115_v58 = vmul.f32 %v2112_v11, %v2068_v51  ;;  %v2116_v48 = vmul.f32 %v2112_v11, %v2070_v62  ;;  %v2125_v38 = vmul.f32 %v2122_v24, %v2068_v51  ;;  %v2126_v57 = vmul.f32 %v2122_v24, %v2070_v62 }
 0x201   : >> { %2478 = vst [vmem:[%s5434_s22 + $0xc0] sm:$0xff] %v2107_v45  ;;  %v2099_v16 = vadd.f32 %v2095_v63, %v5331_v41  ;;  %v2100_v54 = vadd.f32 %v2096_v25, %v5333_v50  ;;  %v2109_v9 = vadd.f32 %v2105_v27, %v5335_v53  ;;  %v2110_v10 = vadd.f32 %v2106_v15, %v5337_v49 }
 0x202   : >> { %2479 = vst [vmem:[%s5434_s22 + $0xc8] sm:$0xff] %v2108_v52  ;;  %v2119_v0 = vadd.f32 %v2115_v58, %v5355_v35  ;;  %v2120_v17 = vadd.f32 %v2116_v48, %v5357_v29  ;;  %v2129_v41 = vadd.f32 %v2125_v38, %v5359_v44  ;;  %v2130_v50 = vadd.f32 %v2126_v57, %v5361_v37 }
 0x203   : >> { %2483 = vst [vmem:[%s5434_s22 + $0x100] sm:$0xff] %v2117_v28 }
 0x204   : >> { %2484 = vst [vmem:[%s5434_s22 + $0x108] sm:$0xff] %v2118_v5 }
 0x205   : >> { %2488 = vst [vmem:[%s5434_s22 + $0x140] sm:$0xff] %v2127_v13 }
 0x206   : >> { %2489 = vst [vmem:[%s5434_s22 + $0x148] sm:$0xff] %v2128_v61 }
 0x207   : >> { %2135 = vst [vmem:[%s5434_s22 + $0x20] sm:$0xff] %v2079_v19 }
 0x208   : >> { %2136 = vst [vmem:[%s5434_s22 + $0x28] sm:$0xff] %v2080_v14 }
 0x209   : >> { %2470 = vst [vmem:[%s5434_s22 + $0x60] sm:$0xff] %v2089_v40 }
 0x20a   : >> { %2471 = vst [vmem:[%s5434_s22 + $0x68] sm:$0xff] %v2090_v23 }
 0x20b   : >> { %2475 = vst [vmem:[%s5434_s22 + $0xa0] sm:$0xff] %v2099_v16 }
 0x20c   : >> { %2476 = vst [vmem:[%s5434_s22 + $0xa8] sm:$0xff] %v2100_v54 }
 0x20d   : >> { %2480 = vst [vmem:[%s5434_s22 + $0xe0] sm:$0xff] %v2109_v9 }
 0x20e   : >> { %2481 = vst [vmem:[%s5434_s22 + $0xe8] sm:$0xff] %v2110_v10  ;;  %202 = sbr.rel (!%p200_p7) target bundleno = 28 (0x1c), region = 87 }
 0x20f   : >> { %2485 = vst [vmem:[%s5434_s22 + $0x120] sm:$0xff] %v2119_v0 }
 0x210   : >> { %2486 = vst [vmem:[%s5434_s22 + $0x128] sm:$0xff] %v2120_v17 }
 0x211   : >> { %2490 = vst [vmem:[%s5434_s22 + $0x160] sm:$0xff] %v2129_v41 }
 0x212   : >> { %2491 = vst [vmem:[%s5434_s22 + $0x168] sm:$0xff] %v2130_v50 }
 0x213 PF: > { %s15_s12 = sadd.s32 1, %s2591_s12  }
 0x214   : > { %p12_p8 = scmp.ge.s32.totalorder %s15_s12, 4  }
 0x216   :  { %14 = sbr.rel (!%p12_p8) target bundleno = 5 (0x5), region = 98 }
 0x21b   :  { %2191 = vsyncpa [#allocation3], 1 }
 0x21c   :  { %2193 = vsyncpa [#allocation3 + $0x1], 1 }
 0x21d   :  { %2194 = vsyncpa [#allocation5], 1 }

</bundles_post_ra>
